<compile_context>
chip_gen: v7x
topology: tpu7x:2x2x1
jax: 0.10.0
libtpu: 0.0.40
codegen_flags: <defaults>
</compile_context>

<pallas_src>
import functools
import numpy as np
import jax
import jax.numpy as jnp
from jax import lax
from jax.experimental import pallas as pl
from jax.experimental.pallas import tpu as pltpu


def _round_up(x, m):
    return (x + m - 1) // m * m


def _pick_k_tiling(kc):
    """Choose (tile_k, padded_kc): tile_k a multiple of 128, <= 512, small padding."""
    kc128 = _round_up(kc, 128)
    if kc128 <= 512:
        return kc128, kc128
    for t in (512, 384, 256):
        pad = _round_up(kc, t)
        if pad <= kc128 + 256:          # tolerate a little zero work for fewer steps
            return t, pad
    return 128, kc128


def _conv_mm_kernel(x_ref, w_ref, b_ref, o_ref, *, act, neg_slope):
    """Grid (GP, M_tiles, K_tiles); K (contraction) innermost.  Accumulate in f32
    directly into the resident output block; bias (+leaky_relu) at the last K step."""
    k = pl.program_id(2)

    @pl.when(k == 0)
    def _():
        o_ref[...] = jnp.zeros_like(o_ref)

    o_ref[...] += jnp.dot(x_ref[...], w_ref[...],
                          preferred_element_type=jnp.float32)

    @pl.when(k == pl.num_programs(2) - 1)
    def _():
        y = o_ref[...] + b_ref[...]
        if act:
            y = jnp.where(y >= 0.0, y, neg_slope * y)
        o_ref[...] = y


def conv1d_cl_pallas(x_cl, w, b, *, stride, padding, groups=1,
                     act=False, neg_slope=0.1):
    """Grouped PyTorch-Conv1d semantics on a channels-last activation.

    x_cl: (B, T, Cin) f32,  w: (Cout, Cin_g, K),  b: (Cout,)
    returns (B, T_out, Cout) f32, optionally with fused leaky_relu(., neg_slope).
    """
    B, T, Cin = x_cl.shape
    Cout, Cin_g, K = w.shape
    G = groups
    assert Cin == Cin_g * G and Cout % G == 0
    Cout_g = Cout // G
    T_out = (T + 2 * padding - K) // stride + 1
    M = B * T_out

    # ---- pack P groups per 128-wide output tile (block-diagonal weights) ------
    P = 1
    if G > 1 and Cout_g < 128 and 128 % Cout_g == 0:
        P = min(G, 128 // Cout_g)
        while G % P:
            P //= 2
    GP = G // P

    # ---- im2col: fold K into the contraction dim, groups packed ---------------
    # TODO(synk): avoid materializing this K-times-duplicated tensor in HBM by
    # expressing taps as shifted windows (stride-phase split + element-offset DMA).
    xp = jnp.pad(x_cl, ((0, 0), (padding, padding), (0, 0))).astype(jnp.bfloat16)
    span = stride * (T_out - 1) + 1
    taps = [lax.slice(xp, (0, k, 0), (B, k + span, Cin), (1, stride, 1))
            for k in range(K)]                                 # K x (B, T_out, Cin)
    Xt = jnp.stack(taps, axis=2)                               # (B, T_out, K, Cin)
    Xt = Xt.reshape(B, T_out, K, GP, P, Cin_g)
    Xg = Xt.transpose(3, 0, 1, 4, 2, 5).reshape(GP, M, P * K * Cin_g)

    # weights: (GP, P*K*Cin_g, P*Cout_g), block-diagonal over the P packed groups
    Wd = w.reshape(GP, P, Cout_g, Cin_g, K).transpose(0, 1, 4, 3, 2)   # [gp,p,k,c,o]
    eye = jnp.eye(P, dtype=w.dtype)
    Wg = jnp.einsum('pq,gpkco->gqkcpo', eye, Wd).reshape(GP, P * K * Cin_g,
                                                         P * Cout_g)
    bg = b.reshape(GP, 1, P * Cout_g)                           # f32 bias

    # ---- tile / pad to TPU-friendly shapes -------------------------------------
    Kc = P * K * Cin_g
    Cop = P * Cout_g
    tile_k, Kc_p = _pick_k_tiling(Kc)
    Cop_p = _round_up(Cop, 128)
    tile_m = _round_up(M, 8) if M <= 512 else 512
    Mp = _round_up(M, tile_m)

    Xg = jnp.pad(Xg, ((0, 0), (0, Mp - M), (0, Kc_p - Kc)))                 # bf16
    Wg = jnp.pad(Wg, ((0, 0), (0, Kc_p - Kc), (0, Cop_p - Cop))).astype(jnp.bfloat16)
    bg = jnp.pad(bg, ((0, 0), (0, 0), (0, Cop_p - Cop)))                    # f32

    n_m = Mp // tile_m
    n_k = Kc_p // tile_k

    # explicit VMEM budget: double-buffered bf16 inputs + resident f32 output tile
    est = (2 * tile_m * tile_k * 2 + 2 * tile_k * Cop_p * 2
           + 2 * tile_m * Cop_p * 4 + 2 * Cop_p * 4)
    vmem_limit = int(min(48 * 1024 * 1024, max(4 * est, 16 * 1024 * 1024)))

    out = pl.pallas_call(
        functools.partial(_conv_mm_kernel, act=act, neg_slope=neg_slope),
        out_shape=jax.ShapeDtypeStruct((GP, Mp, Cop_p), jnp.float32),
        grid_spec=pltpu.PrefetchScalarGridSpec(
            num_scalar_prefetch=0,
            grid=(GP, n_m, n_k),                       # reduction axis (K) last
            in_specs=[
                pl.BlockSpec((None, tile_m, tile_k), lambda g, m, k: (g, m, k)),
                pl.BlockSpec((None, tile_k, Cop_p), lambda g, m, k: (g, k, 0)),
                pl.BlockSpec((None, 1, Cop_p), lambda g, m, k: (g, 0, 0)),
            ],
            out_specs=pl.BlockSpec((None, tile_m, Cop_p), lambda g, m, k: (g, m, 0)),
        ),
        compiler_params=pltpu.CompilerParams(
            dimension_semantics=("parallel", "parallel", "arbitrary"),
            vmem_limit_bytes=vmem_limit),
    )(Xg, Wg, bg)

    out = out[:, :M, :Cop]                                      # (GP, M, P*Cout_g)
    out = out.reshape(GP, B, T_out, Cop).transpose(1, 2, 0, 3)  # (B, T_out, GP, ...)
    return out.reshape(B, T_out, Cout)                          # channels-last


_INV_SQRT2 = np.float32(1.0 / np.sqrt(2.0))


def dwt_haar(x):
    """DWT1D(wave='db1', mode='symmetric'), single level, NCW input.  For
    even-length inputs the symmetric boundary padding is a no-op for the Haar
    filter, so this is exact:  cA=(x_even+x_odd)/sqrt2, cD=(x_even-x_odd)/sqrt2."""
    xe = x[:, :, 0::2]
    xo = x[:, :, 1::2]
    return (xe + xo) * _INV_SQRT2, (xe - xo) * _INV_SQRT2


# (Cin, Cout, K, stride, groups, padding) for convs1
_CONVS1_CFG = [
    (1, 128, 41, 2, 1, 20),
    (128, 128, 41, 2, 4, 20),
    (128, 256, 41, 2, 16, 20),
    (256, 512, 41, 4, 16, 20),
    (512, 1024, 41, 4, 16, 20),
    (1024, 1024, 41, 1, 16, 20),
    (1024, 1024, 5, 1, 1, 2),
]


def init_params(key):
    """Deterministic synthetic parameters (PyTorch-Conv1d-style uniform init)."""
    def conv_init(k, cin_g, cout, ksize):
        kw, kb = jax.random.split(k)
        bound = 1.0 / np.sqrt(cin_g * ksize)
        w = jax.random.uniform(kw, (cout, cin_g, ksize), jnp.float32, -bound, bound)
        b = jax.random.uniform(kb, (cout,), jnp.float32, -bound, bound)
        return w, b

    keys = jax.random.split(key, 12)
    params = {"convs1": [], "convs2": [], "convs3": []}
    ki = 0
    for (cin, cout, ksize, s, g, p) in _CONVS1_CFG:
        w, b = conv_init(keys[ki], cin // g, cout, ksize); ki += 1
        params["convs1"].append((w, b, s, p, g))
    for cin in (2, 4):
        w, b = conv_init(keys[ki], cin, 1, 1); ki += 1
        params["convs2"].append((w, b))
    for _ in range(2):
        w, b = conv_init(keys[ki], 1, 128, 1); ki += 1
        params["convs3"].append((w, b))
    params["conv_post"] = conv_init(keys[ki], 1024, 1, 3)
    return params


def discriminator_s_forward(params, x):
    """x: (B, 1, T) f32 NCW -> (flattened logits (B, T_final), fmap list in NCW)."""
    fmap = []
    wavelet = [x]                        # wavelet branch stays NCW (1-4 channels)
    h = jnp.transpose(x, (0, 2, 1))      # main chain: channels-last (B, T, C)
    for i, (w, b, stride, pad, groups) in enumerate(params["convs1"]):
        h = conv1d_cl_pallas(h, w, b, stride=stride, padding=pad, groups=groups,
                             act=True, neg_slope=0.1)
        if i < 2:
            nw_list = []
            for wv in wavelet:
                cA, cD = dwt_haar(wv)
                nw_list += [cA, cD]
            wavelet = nw_list
            nw = jnp.concatenate(nw_list, axis=1)               # (B, 2^(i+1), T')
            w2, b2 = params["convs2"][i]
            w3, b3 = params["convs3"][i]
            # convs3(convs2(.)) is a linear 1x1 chain through a width-1 bottleneck:
            # fuse analytically instead of running two padded MXU kernels.
            w23 = w3[:, 0, 0][:, None] * w2[0, :, 0][None, :]   # (128, 2^(i+1))
            b23 = w3[:, 0, 0] * b2[0] + b3                      # (128,)
            nx = jnp.einsum('bct,oc->bto', nw, w23) + b23       # channels-last
            # PyTorch does `x += nx` in place *after* fmap.append(x), so the
            # stored feature map also contains the residual; append afterwards.
            h = h + nx
        fmap.append(jnp.transpose(h, (0, 2, 1)))                # NCW for consumer
    wp, bp = params["conv_post"]
    h = conv1d_cl_pallas(h, wp, bp, stride=1, padding=1, groups=1, act=False)
    x_out = jnp.transpose(h, (0, 2, 1))                         # (B, 1, T_final)
    fmap.append(x_out)
    logits = x_out.reshape(x_out.shape[0], -1)                  # torch.flatten(x,1,-1)
    return logits, fmap


if __name__ == "__main__":
    key = jax.random.PRNGKey(0)
    pkey, xkey = jax.random.split(key)
    params = init_params(pkey)

    B, T = 2, 256          # small audio clip; (B, 1, T) as Conv1d(1, ...) implies
    x = jax.random.normal(xkey, (B, 1, T), jnp.float32)

    fwd = jax.jit(lambda inp: discriminator_s_forward(params, inp))
    out, fmap = fwd(x)
    jax.block_until_ready(out)
    jax.block_until_ready(fmap)

    assert out.shape == (B, 2)            # T=256 downsampled by 2*2*2*4*4 = 128
    assert len(fmap) == 8
    print("KERNEL_OK")
</pallas_src>

<mosaic_0001>
module attributes {stable_mosaic.version = 11 : i64} {
  func.func @_conv_mm_kernel(%arg0: i32, %arg1: i32, %arg2: i32, %arg3: memref<1x256x128xbf16, #tpu.memory_space<vmem>>, %arg4: memref<1x128x128xbf16, #tpu.memory_space<vmem>>, %arg5: memref<1x1x128xf32, #tpu.memory_space<vmem>>, %arg6: memref<1x256x128xf32, #tpu.memory_space<vmem>>) attributes {dimension_semantics = [#tpu.dimension_semantics<parallel>, #tpu.dimension_semantics<parallel>, #tpu.dimension_semantics<arbitrary>], iteration_bounds = array<i64: 1, 1, 1>, scalar_prefetch = 0 : i64, scratch_operands = 0 : i64, tpu.core_type = #tpu.core_type<tc>, window_params = [{transform_indices = @transform_0, window_bounds = array<i64: 1, 256, 128>}, {transform_indices = @transform_1, window_bounds = array<i64: 1, 128, 128>}, {transform_indices = @transform_2, window_bounds = array<i64: 1, 1, 128>}, {transform_indices = @transform_3, window_bounds = array<i64: 1, 256, 128>}]} {
    %c0_i32 = arith.constant 0 : i32
    %0 = arith.cmpi eq, %arg2, %c0_i32 : i32
    %1 = arith.extui %0 : i1 to i32
    %c0_i32_0 = arith.constant 0 : i32
    %2 = arith.cmpi ne, %1, %c0_i32_0 : i32
    scf.if %2 {
      %cst_14 = arith.constant 0.000000e+00 : f32
      %17 = vector.broadcast %cst_14 : f32 to vector<256x128xf32>
      %c0_15 = arith.constant 0 : index
      %c0_16 = arith.constant 0 : index
      %c0_17 = arith.constant 0 : index
      %18 = vector.load %arg6[%c0_15, %c0_16, %c0_17] : memref<1x256x128xf32, #tpu.memory_space<vmem>>, vector<1x256x128xf32>
      %19 = vector.shape_cast %18 : vector<1x256x128xf32> to vector<256x128xf32>
      %20 = vector.shape_cast %17 : vector<256x128xf32> to vector<1x256x128xf32>
      tpu.vector_store %arg6[%c0_15, %c0_16, %c0_17], %20 {strides = array<i32>} : memref<1x256x128xf32, #tpu.memory_space<vmem>>, vector<1x256x128xf32>,
    } else {
    }
    %c0 = arith.constant 0 : index
    %c0_1 = arith.constant 0 : index
    %c0_2 = arith.constant 0 : index
    %3 = vector.load %arg6[%c0, %c0_1, %c0_2] : memref<1x256x128xf32, #tpu.memory_space<vmem>>, vector<1x256x128xf32>
    %4 = vector.shape_cast %3 : vector<1x256x128xf32> to vector<256x128xf32>
    %c0_3 = arith.constant 0 : index
    %c0_4 = arith.constant 0 : index
    %c0_5 = arith.constant 0 : index
    %5 = vector.load %arg3[%c0_3, %c0_4, %c0_5] : memref<1x256x128xbf16, #tpu.memory_space<vmem>>, vector<1x256x128xbf16>
    %6 = vector.shape_cast %5 : vector<1x256x128xbf16> to vector<256x128xbf16>
    %c0_6 = arith.constant 0 : index
    %c0_7 = arith.constant 0 : index
    %c0_8 = arith.constant 0 : index
    %7 = vector.load %arg4[%c0_6, %c0_7, %c0_8] : memref<1x128x128xbf16, #tpu.memory_space<vmem>>, vector<1x128x128xbf16>
    %8 = vector.shape_cast %7 : vector<1x128x128xbf16> to vector<128x128xbf16>
    %cst = arith.constant dense<0.000000e+00> : vector<256x128xf32>
    %9 = tpu.matmul %6, %8, %cst {dimension_numbers = #tpu.dot_dimension_numbers<[1], [0], [0], [1], [0, 0, 1, 1], [], []>} : vector<256x128xbf16>, vector<128x128xbf16>, vector<256x128xf32> -> vector<256x128xf32>
    %10 = arith.addf %4, %9 : vector<256x128xf32>
    %c0_9 = arith.constant 0 : index
    %c0_10 = arith.constant 0 : index
    %c0_11 = arith.constant 0 : index
    %11 = vector.load %arg6[%c0_9, %c0_10, %c0_11] : memref<1x256x128xf32, #tpu.memory_space<vmem>>, vector<1x256x128xf32>
    %12 = vector.shape_cast %11 : vector<1x256x128xf32> to vector<256x128xf32>
    %13 = vector.shape_cast %10 : vector<256x128xf32> to vector<1x256x128xf32>
    tpu.vector_store %arg6[%c0_9, %c0_10, %c0_11], %13 {strides = array<i32>} : memref<1x256x128xf32, #tpu.memory_space<vmem>>, vector<1x256x128xf32>,
    %c0_i32_12 = arith.constant 0 : i32
    %14 = arith.cmpi eq, %arg2, %c0_i32_12 : i32
    %15 = arith.extui %14 : i1 to i32
    %c0_i32_13 = arith.constant 0 : i32
    %16 = arith.cmpi ne, %15, %c0_i32_13 : i32
    scf.if %16 {
      %c0_14 = arith.constant 0 : index
      %c0_15 = arith.constant 0 : index
      %c0_16 = arith.constant 0 : index
      %17 = vector.load %arg6[%c0_14, %c0_15, %c0_16] : memref<1x256x128xf32, #tpu.memory_space<vmem>>, vector<1x256x128xf32>
      %18 = vector.shape_cast %17 : vector<1x256x128xf32> to vector<256x128xf32>
      %c0_17 = arith.constant 0 : index
      %c0_18 = arith.constant 0 : index
      %c0_19 = arith.constant 0 : index
      %19 = vector.load %arg5[%c0_17, %c0_18, %c0_19] : memref<1x1x128xf32, #tpu.memory_space<vmem>>, vector<1x1x128xf32>
      %20 = vector.shape_cast %19 : vector<1x1x128xf32> to vector<1x128xf32>
      %21 = vector.broadcast %20 : vector<1x128xf32> to vector<256x128xf32>
      %22 = arith.addf %18, %21 : vector<256x128xf32>
      %cst_20 = arith.constant 0.000000e+00 : f32
      %23 = vector.broadcast %cst_20 : f32 to vector<256x128xf32>
      %24 = arith.cmpf oge, %22, %23 : vector<256x128xf32>
      %cst_21 = arith.constant 1.000000e-01 : f32
      %25 = vector.broadcast %cst_21 : f32 to vector<256x128xf32>
      %26 = arith.mulf %25, %22 : vector<256x128xf32>
      %27 = arith.select %24, %22, %26 : vector<256x128xi1>, vector<256x128xf32>
      %c0_22 = arith.constant 0 : index
      %c0_23 = arith.constant 0 : index
      %c0_24 = arith.constant 0 : index
      %28 = vector.load %arg6[%c0_22, %c0_23, %c0_24] : memref<1x256x128xf32, #tpu.memory_space<vmem>>, vector<1x256x128xf32>
      %29 = vector.shape_cast %28 : vector<1x256x128xf32> to vector<256x128xf32>
      %30 = vector.shape_cast %27 : vector<256x128xf32> to vector<1x256x128xf32>
      tpu.vector_store %arg6[%c0_22, %c0_23, %c0_24], %30 {strides = array<i32>} : memref<1x256x128xf32, #tpu.memory_space<vmem>>, vector<1x256x128xf32>,
    } else {
    }
    return
  }
  func.func @transform_0(%arg0: i32, %arg1: i32, %arg2: i32) -> (i32, i32, i32) {
    %c0_i32 = arith.constant 0 : i32
    return %arg0, %arg1, %arg2 : i32, i32, i32
  }
  func.func @transform_1(%arg0: i32, %arg1: i32, %arg2: i32) -> (i32, i32, i32) {
    %c0_i32 = arith.constant 0 : i32
    %c0_i32_0 = arith.constant 0 : i32
    return %arg0, %arg2, %c0_i32 : i32, i32, i32
  }
  func.func @transform_2(%arg0: i32, %arg1: i32, %arg2: i32) -> (i32, i32, i32) {
    %c0_i32 = arith.constant 0 : i32
    %c0_i32_0 = arith.constant 0 : i32
    %c0_i32_1 = arith.constant 0 : i32
    return %arg0, %c0_i32, %c0_i32_0 : i32, i32, i32
  }
  func.func @transform_3(%arg0: i32, %arg1: i32, %arg2: i32) -> (i32, i32, i32) {
    %c0_i32 = arith.constant 0 : i32
    %c0_i32_0 = arith.constant 0 : i32
    return %arg0, %arg1, %c0_i32 : i32, i32, i32
  }
}

module attributes {stable_mosaic.version = 11 : i64} {
  func.func @_conv_mm_kernel(%arg0: i32, %arg1: i32, %arg2: i32, %arg3: memref<1x128x384xbf16, #tpu.memory_space<vmem>>, %arg4: memref<1x384x128xbf16, #tpu.memory_space<vmem>>, %arg5: memref<1x1x128xf32, #tpu.memory_space<vmem>>, %arg6: memref<1x128x128xf32, #tpu.memory_space<vmem>>) attributes {dimension_semantics = [#tpu.dimension_semantics<parallel>, #tpu.dimension_semantics<parallel>, #tpu.dimension_semantics<arbitrary>], iteration_bounds = array<i64: 1, 1, 14>, scalar_prefetch = 0 : i64, scratch_operands = 0 : i64, tpu.core_type = #tpu.core_type<tc>, window_params = [{transform_indices = @transform_0, window_bounds = array<i64: 1, 128, 384>}, {transform_indices = @transform_1, window_bounds = array<i64: 1, 384, 128>}, {transform_indices = @transform_2, window_bounds = array<i64: 1, 1, 128>}, {transform_indices = @transform_3, window_bounds = array<i64: 1, 128, 128>}]} {
    %c0_i32 = arith.constant 0 : i32
    %0 = arith.cmpi eq, %arg2, %c0_i32 : i32
    %1 = arith.extui %0 : i1 to i32
    %c0_i32_0 = arith.constant 0 : i32
    %2 = arith.cmpi ne, %1, %c0_i32_0 : i32
    scf.if %2 {
      %cst_13 = arith.constant 0.000000e+00 : f32
      %17 = vector.broadcast %cst_13 : f32 to vector<128x128xf32>
      %c0_14 = arith.constant 0 : index
      %c0_15 = arith.constant 0 : index
      %c0_16 = arith.constant 0 : index
      %18 = vector.load %arg6[%c0_14, %c0_15, %c0_16] : memref<1x128x128xf32, #tpu.memory_space<vmem>>, vector<1x128x128xf32>
      %19 = vector.shape_cast %18 : vector<1x128x128xf32> to vector<128x128xf32>
      %20 = vector.shape_cast %17 : vector<128x128xf32> to vector<1x128x128xf32>
      tpu.vector_store %arg6[%c0_14, %c0_15, %c0_16], %20 {strides = array<i32>} : memref<1x128x128xf32, #tpu.memory_space<vmem>>, vector<1x128x128xf32>,
    } else {
    }
    %c0 = arith.constant 0 : index
    %c0_1 = arith.constant 0 : index
    %c0_2 = arith.constant 0 : index
    %3 = vector.load %arg6[%c0, %c0_1, %c0_2] : memref<1x128x128xf32, #tpu.memory_space<vmem>>, vector<1x128x128xf32>
    %4 = vector.shape_cast %3 : vector<1x128x128xf32> to vector<128x128xf32>
    %c0_3 = arith.constant 0 : index
    %c0_4 = arith.constant 0 : index
    %c0_5 = arith.constant 0 : index
    %5 = vector.load %arg3[%c0_3, %c0_4, %c0_5] : memref<1x128x384xbf16, #tpu.memory_space<vmem>>, vector<1x128x384xbf16>
    %6 = vector.shape_cast %5 : vector<1x128x384xbf16> to vector<128x384xbf16>
    %c0_6 = arith.constant 0 : index
    %c0_7 = arith.constant 0 : index
    %c0_8 = arith.constant 0 : index
    %7 = vector.load %arg4[%c0_6, %c0_7, %c0_8] : memref<1x384x128xbf16, #tpu.memory_space<vmem>>, vector<1x384x128xbf16>
    %8 = vector.shape_cast %7 : vector<1x384x128xbf16> to vector<384x128xbf16>
    %cst = arith.constant dense<0.000000e+00> : vector<128x128xf32>
    %9 = tpu.matmul %6, %8, %cst {dimension_numbers = #tpu.dot_dimension_numbers<[1], [0], [0], [1], [0, 0, 1, 1], [], []>} : vector<128x384xbf16>, vector<384x128xbf16>, vector<128x128xf32> -> vector<128x128xf32>
    %10 = arith.addf %4, %9 : vector<128x128xf32>
    %c0_9 = arith.constant 0 : index
    %c0_10 = arith.constant 0 : index
    %c0_11 = arith.constant 0 : index
    %11 = vector.load %arg6[%c0_9, %c0_10, %c0_11] : memref<1x128x128xf32, #tpu.memory_space<vmem>>, vector<1x128x128xf32>
    %12 = vector.shape_cast %11 : vector<1x128x128xf32> to vector<128x128xf32>
    %13 = vector.shape_cast %10 : vector<128x128xf32> to vector<1x128x128xf32>
    tpu.vector_store %arg6[%c0_9, %c0_10, %c0_11], %13 {strides = array<i32>} : memref<1x128x128xf32, #tpu.memory_space<vmem>>, vector<1x128x128xf32>,
    %c13_i32 = arith.constant 13 : i32
    %14 = arith.cmpi eq, %arg2, %c13_i32 : i32
    %15 = arith.extui %14 : i1 to i32
    %c0_i32_12 = arith.constant 0 : i32
    %16 = arith.cmpi ne, %15, %c0_i32_12 : i32
    scf.if %16 {
      %c0_13 = arith.constant 0 : index
      %c0_14 = arith.constant 0 : index
      %c0_15 = arith.constant 0 : index
      %17 = vector.load %arg6[%c0_13, %c0_14, %c0_15] : memref<1x128x128xf32, #tpu.memory_space<vmem>>, vector<1x128x128xf32>
      %18 = vector.shape_cast %17 : vector<1x128x128xf32> to vector<128x128xf32>
      %c0_16 = arith.constant 0 : index
      %c0_17 = arith.constant 0 : index
      %c0_18 = arith.constant 0 : index
      %19 = vector.load %arg5[%c0_16, %c0_17, %c0_18] : memref<1x1x128xf32, #tpu.memory_space<vmem>>, vector<1x1x128xf32>
      %20 = vector.shape_cast %19 : vector<1x1x128xf32> to vector<1x128xf32>
      %21 = vector.broadcast %20 : vector<1x128xf32> to vector<128x128xf32>
      %22 = arith.addf %18, %21 : vector<128x128xf32>
      %cst_19 = arith.constant 0.000000e+00 : f32
      %23 = vector.broadcast %cst_19 : f32 to vector<128x128xf32>
      %24 = arith.cmpf oge, %22, %23 : vector<128x128xf32>
      %cst_20 = arith.constant 1.000000e-01 : f32
      %25 = vector.broadcast %cst_20 : f32 to vector<128x128xf32>
      %26 = arith.mulf %25, %22 : vector<128x128xf32>
      %27 = arith.select %24, %22, %26 : vector<128x128xi1>, vector<128x128xf32>
      %c0_21 = arith.constant 0 : index
      %c0_22 = arith.constant 0 : index
      %c0_23 = arith.constant 0 : index
      %28 = vector.load %arg6[%c0_21, %c0_22, %c0_23] : memref<1x128x128xf32, #tpu.memory_space<vmem>>, vector<1x128x128xf32>
      %29 = vector.shape_cast %28 : vector<1x128x128xf32> to vector<128x128xf32>
      %30 = vector.shape_cast %27 : vector<128x128xf32> to vector<1x128x128xf32>
      tpu.vector_store %arg6[%c0_21, %c0_22, %c0_23], %30 {strides = array<i32>} : memref<1x128x128xf32, #tpu.memory_space<vmem>>, vector<1x128x128xf32>,
    } else {
    }
    return
  }
  func.func @transform_0(%arg0: i32, %arg1: i32, %arg2: i32) -> (i32, i32, i32) {
    %c0_i32 = arith.constant 0 : i32
    return %arg0, %arg1, %arg2 : i32, i32, i32
  }
  func.func @transform_1(%arg0: i32, %arg1: i32, %arg2: i32) -> (i32, i32, i32) {
    %c0_i32 = arith.constant 0 : i32
    %c0_i32_0 = arith.constant 0 : i32
    return %arg0, %arg2, %c0_i32 : i32, i32, i32
  }
  func.func @transform_2(%arg0: i32, %arg1: i32, %arg2: i32) -> (i32, i32, i32) {
    %c0_i32 = arith.constant 0 : i32
    %c0_i32_0 = arith.constant 0 : i32
    %c0_i32_1 = arith.constant 0 : i32
    return %arg0, %c0_i32, %c0_i32_0 : i32, i32, i32
  }
  func.func @transform_3(%arg0: i32, %arg1: i32, %arg2: i32) -> (i32, i32, i32) {
    %c0_i32 = arith.constant 0 : i32
    %c0_i32_0 = arith.constant 0 : i32
    return %arg0, %arg1, %c0_i32 : i32, i32, i32
  }
}

module attributes {stable_mosaic.version = 11 : i64} {
  func.func @_conv_mm_kernel(%arg0: i32, %arg1: i32, %arg2: i32, %arg3: memref<1x64x384xbf16, #tpu.memory_space<vmem>>, %arg4: memref<1x384x128xbf16, #tpu.memory_space<vmem>>, %arg5: memref<1x1x128xf32, #tpu.memory_space<vmem>>, %arg6: memref<1x64x128xf32, #tpu.memory_space<vmem>>) attributes {dimension_semantics = [#tpu.dimension_semantics<parallel>, #tpu.dimension_semantics<parallel>, #tpu.dimension_semantics<arbitrary>], iteration_bounds = array<i64: 2, 1, 7>, scalar_prefetch = 0 : i64, scratch_operands = 0 : i64, tpu.core_type = #tpu.core_type<tc>, window_params = [{transform_indices = @transform_0, window_bounds = array<i64: 1, 64, 384>}, {transform_indices = @transform_1, window_bounds = array<i64: 1, 384, 128>}, {transform_indices = @transform_2, window_bounds = array<i64: 1, 1, 128>}, {transform_indices = @transform_3, window_bounds = array<i64: 1, 64, 128>}]} {
    %c0_i32 = arith.constant 0 : i32
    %0 = arith.cmpi eq, %arg2, %c0_i32 : i32
    %1 = arith.extui %0 : i1 to i32
    %c0_i32_0 = arith.constant 0 : i32
    %2 = arith.cmpi ne, %1, %c0_i32_0 : i32
    scf.if %2 {
      %cst_13 = arith.constant 0.000000e+00 : f32
      %17 = vector.broadcast %cst_13 : f32 to vector<64x128xf32>
      %c0_14 = arith.constant 0 : index
      %c0_15 = arith.constant 0 : index
      %c0_16 = arith.constant 0 : index
      %18 = vector.load %arg6[%c0_14, %c0_15, %c0_16] : memref<1x64x128xf32, #tpu.memory_space<vmem>>, vector<1x64x128xf32>
      %19 = vector.shape_cast %18 : vector<1x64x128xf32> to vector<64x128xf32>
      %20 = vector.shape_cast %17 : vector<64x128xf32> to vector<1x64x128xf32>
      tpu.vector_store %arg6[%c0_14, %c0_15, %c0_16], %20 {strides = array<i32>} : memref<1x64x128xf32, #tpu.memory_space<vmem>>, vector<1x64x128xf32>,
    } else {
    }
    %c0 = arith.constant 0 : index
    %c0_1 = arith.constant 0 : index
    %c0_2 = arith.constant 0 : index
    %3 = vector.load %arg6[%c0, %c0_1, %c0_2] : memref<1x64x128xf32, #tpu.memory_space<vmem>>, vector<1x64x128xf32>
    %4 = vector.shape_cast %3 : vector<1x64x128xf32> to vector<64x128xf32>
    %c0_3 = arith.constant 0 : index
    %c0_4 = arith.constant 0 : index
    %c0_5 = arith.constant 0 : index
    %5 = vector.load %arg3[%c0_3, %c0_4, %c0_5] : memref<1x64x384xbf16, #tpu.memory_space<vmem>>, vector<1x64x384xbf16>
    %6 = vector.shape_cast %5 : vector<1x64x384xbf16> to vector<64x384xbf16>
    %c0_6 = arith.constant 0 : index
    %c0_7 = arith.constant 0 : index
    %c0_8 = arith.constant 0 : index
    %7 = vector.load %arg4[%c0_6, %c0_7, %c0_8] : memref<1x384x128xbf16, #tpu.memory_space<vmem>>, vector<1x384x128xbf16>
    %8 = vector.shape_cast %7 : vector<1x384x128xbf16> to vector<384x128xbf16>
    %cst = arith.constant dense<0.000000e+00> : vector<64x128xf32>
    %9 = tpu.matmul %6, %8, %cst {dimension_numbers = #tpu.dot_dimension_numbers<[1], [0], [0], [1], [0, 0, 1, 1], [], []>} : vector<64x384xbf16>, vector<384x128xbf16>, vector<64x128xf32> -> vector<64x128xf32>
    %10 = arith.addf %4, %9 : vector<64x128xf32>
    %c0_9 = arith.constant 0 : index
    %c0_10 = arith.constant 0 : index
    %c0_11 = arith.constant 0 : index
    %11 = vector.load %arg6[%c0_9, %c0_10, %c0_11] : memref<1x64x128xf32, #tpu.memory_space<vmem>>, vector<1x64x128xf32>
    %12 = vector.shape_cast %11 : vector<1x64x128xf32> to vector<64x128xf32>
    %13 = vector.shape_cast %10 : vector<64x128xf32> to vector<1x64x128xf32>
    tpu.vector_store %arg6[%c0_9, %c0_10, %c0_11], %13 {strides = array<i32>} : memref<1x64x128xf32, #tpu.memory_space<vmem>>, vector<1x64x128xf32>,
    %c6_i32 = arith.constant 6 : i32
    %14 = arith.cmpi eq, %arg2, %c6_i32 : i32
    %15 = arith.extui %14 : i1 to i32
    %c0_i32_12 = arith.constant 0 : i32
    %16 = arith.cmpi ne, %15, %c0_i32_12 : i32
    scf.if %16 {
      %c0_13 = arith.constant 0 : index
      %c0_14 = arith.constant 0 : index
      %c0_15 = arith.constant 0 : index
      %17 = vector.load %arg6[%c0_13, %c0_14, %c0_15] : memref<1x64x128xf32, #tpu.memory_space<vmem>>, vector<1x64x128xf32>
      %18 = vector.shape_cast %17 : vector<1x64x128xf32> to vector<64x128xf32>
      %c0_16 = arith.constant 0 : index
      %c0_17 = arith.constant 0 : index
      %c0_18 = arith.constant 0 : index
      %19 = vector.load %arg5[%c0_16, %c0_17, %c0_18] : memref<1x1x128xf32, #tpu.memory_space<vmem>>, vector<1x1x128xf32>
      %20 = vector.shape_cast %19 : vector<1x1x128xf32> to vector<1x128xf32>
      %21 = vector.broadcast %20 : vector<1x128xf32> to vector<64x128xf32>
      %22 = arith.addf %18, %21 : vector<64x128xf32>
      %cst_19 = arith.constant 0.000000e+00 : f32
      %23 = vector.broadcast %cst_19 : f32 to vector<64x128xf32>
      %24 = arith.cmpf oge, %22, %23 : vector<64x128xf32>
      %cst_20 = arith.constant 1.000000e-01 : f32
      %25 = vector.broadcast %cst_20 : f32 to vector<64x128xf32>
      %26 = arith.mulf %25, %22 : vector<64x128xf32>
      %27 = arith.select %24, %22, %26 : vector<64x128xi1>, vector<64x128xf32>
      %c0_21 = arith.constant 0 : index
      %c0_22 = arith.constant 0 : index
      %c0_23 = arith.constant 0 : index
      %28 = vector.load %arg6[%c0_21, %c0_22, %c0_23] : memref<1x64x128xf32, #tpu.memory_space<vmem>>, vector<1x64x128xf32>
      %29 = vector.shape_cast %28 : vector<1x64x128xf32> to vector<64x128xf32>
      %30 = vector.shape_cast %27 : vector<64x128xf32> to vector<1x64x128xf32>
      tpu.vector_store %arg6[%c0_21, %c0_22, %c0_23], %30 {strides = array<i32>} : memref<1x64x128xf32, #tpu.memory_space<vmem>>, vector<1x64x128xf32>,
    } else {
    }
    return
  }
  func.func @transform_0(%arg0: i32, %arg1: i32, %arg2: i32) -> (i32, i32, i32) {
    %c0_i32 = arith.constant 0 : i32
    return %arg0, %arg1, %arg2 : i32, i32, i32
  }
  func.func @transform_1(%arg0: i32, %arg1: i32, %arg2: i32) -> (i32, i32, i32) {
    %c0_i32 = arith.constant 0 : i32
    %c0_i32_0 = arith.constant 0 : i32
    return %arg0, %arg2, %c0_i32 : i32, i32, i32
  }
  func.func @transform_2(%arg0: i32, %arg1: i32, %arg2: i32) -> (i32, i32, i32) {
    %c0_i32 = arith.constant 0 : i32
    %c0_i32_0 = arith.constant 0 : i32
    %c0_i32_1 = arith.constant 0 : i32
    return %arg0, %c0_i32, %c0_i32_0 : i32, i32, i32
  }
  func.func @transform_3(%arg0: i32, %arg1: i32, %arg2: i32) -> (i32, i32, i32) {
    %c0_i32 = arith.constant 0 : i32
    %c0_i32_0 = arith.constant 0 : i32
    return %arg0, %arg1, %c0_i32 : i32, i32, i32
  }
}

module attributes {stable_mosaic.version = 11 : i64} {
  func.func @_conv_mm_kernel(%arg0: i32, %arg1: i32, %arg2: i32, %arg3: memref<1x16x384xbf16, #tpu.memory_space<vmem>>, %arg4: memref<1x384x128xbf16, #tpu.memory_space<vmem>>, %arg5: memref<1x1x128xf32, #tpu.memory_space<vmem>>, %arg6: memref<1x16x128xf32, #tpu.memory_space<vmem>>) attributes {dimension_semantics = [#tpu.dimension_semantics<parallel>, #tpu.dimension_semantics<parallel>, #tpu.dimension_semantics<arbitrary>], iteration_bounds = array<i64: 4, 1, 7>, scalar_prefetch = 0 : i64, scratch_operands = 0 : i64, tpu.core_type = #tpu.core_type<tc>, window_params = [{transform_indices = @transform_0, window_bounds = array<i64: 1, 16, 384>}, {transform_indices = @transform_1, window_bounds = array<i64: 1, 384, 128>}, {transform_indices = @transform_2, window_bounds = array<i64: 1, 1, 128>}, {transform_indices = @transform_3, window_bounds = array<i64: 1, 16, 128>}]} {
    %c0_i32 = arith.constant 0 : i32
    %0 = arith.cmpi eq, %arg2, %c0_i32 : i32
    %1 = arith.extui %0 : i1 to i32
    %c0_i32_0 = arith.constant 0 : i32
    %2 = arith.cmpi ne, %1, %c0_i32_0 : i32
    scf.if %2 {
      %cst_13 = arith.constant 0.000000e+00 : f32
      %17 = vector.broadcast %cst_13 : f32 to vector<16x128xf32>
      %c0_14 = arith.constant 0 : index
      %c0_15 = arith.constant 0 : index
      %c0_16 = arith.constant 0 : index
      %18 = vector.load %arg6[%c0_14, %c0_15, %c0_16] : memref<1x16x128xf32, #tpu.memory_space<vmem>>, vector<1x16x128xf32>
      %19 = vector.shape_cast %18 : vector<1x16x128xf32> to vector<16x128xf32>
      %20 = vector.shape_cast %17 : vector<16x128xf32> to vector<1x16x128xf32>
      tpu.vector_store %arg6[%c0_14, %c0_15, %c0_16], %20 {strides = array<i32>} : memref<1x16x128xf32, #tpu.memory_space<vmem>>, vector<1x16x128xf32>,
    } else {
    }
    %c0 = arith.constant 0 : index
    %c0_1 = arith.constant 0 : index
    %c0_2 = arith.constant 0 : index
    %3 = vector.load %arg6[%c0, %c0_1, %c0_2] : memref<1x16x128xf32, #tpu.memory_space<vmem>>, vector<1x16x128xf32>
    %4 = vector.shape_cast %3 : vector<1x16x128xf32> to vector<16x128xf32>
    %c0_3 = arith.constant 0 : index
    %c0_4 = arith.constant 0 : index
    %c0_5 = arith.constant 0 : index
    %5 = vector.load %arg3[%c0_3, %c0_4, %c0_5] : memref<1x16x384xbf16, #tpu.memory_space<vmem>>, vector<1x16x384xbf16>
    %6 = vector.shape_cast %5 : vector<1x16x384xbf16> to vector<16x384xbf16>
    %c0_6 = arith.constant 0 : index
    %c0_7 = arith.constant 0 : index
    %c0_8 = arith.constant 0 : index
    %7 = vector.load %arg4[%c0_6, %c0_7, %c0_8] : memref<1x384x128xbf16, #tpu.memory_space<vmem>>, vector<1x384x128xbf16>
    %8 = vector.shape_cast %7 : vector<1x384x128xbf16> to vector<384x128xbf16>
    %cst = arith.constant dense<0.000000e+00> : vector<16x128xf32>
    %9 = tpu.matmul %6, %8, %cst {dimension_numbers = #tpu.dot_dimension_numbers<[1], [0], [0], [1], [0, 0, 1, 1], [], []>} : vector<16x384xbf16>, vector<384x128xbf16>, vector<16x128xf32> -> vector<16x128xf32>
    %10 = arith.addf %4, %9 : vector<16x128xf32>
    %c0_9 = arith.constant 0 : index
    %c0_10 = arith.constant 0 : index
    %c0_11 = arith.constant 0 : index
    %11 = vector.load %arg6[%c0_9, %c0_10, %c0_11] : memref<1x16x128xf32, #tpu.memory_space<vmem>>, vector<1x16x128xf32>
    %12 = vector.shape_cast %11 : vector<1x16x128xf32> to vector<16x128xf32>
    %13 = vector.shape_cast %10 : vector<16x128xf32> to vector<1x16x128xf32>
    tpu.vector_store %arg6[%c0_9, %c0_10, %c0_11], %13 {strides = array<i32>} : memref<1x16x128xf32, #tpu.memory_space<vmem>>, vector<1x16x128xf32>,
    %c6_i32 = arith.constant 6 : i32
    %14 = arith.cmpi eq, %arg2, %c6_i32 : i32
    %15 = arith.extui %14 : i1 to i32
    %c0_i32_12 = arith.constant 0 : i32
    %16 = arith.cmpi ne, %15, %c0_i32_12 : i32
    scf.if %16 {
      %c0_13 = arith.constant 0 : index
      %c0_14 = arith.constant 0 : index
      %c0_15 = arith.constant 0 : index
      %17 = vector.load %arg6[%c0_13, %c0_14, %c0_15] : memref<1x16x128xf32, #tpu.memory_space<vmem>>, vector<1x16x128xf32>
      %18 = vector.shape_cast %17 : vector<1x16x128xf32> to vector<16x128xf32>
      %c0_16 = arith.constant 0 : index
      %c0_17 = arith.constant 0 : index
      %c0_18 = arith.constant 0 : index
      %19 = vector.load %arg5[%c0_16, %c0_17, %c0_18] : memref<1x1x128xf32, #tpu.memory_space<vmem>>, vector<1x1x128xf32>
      %20 = vector.shape_cast %19 : vector<1x1x128xf32> to vector<1x128xf32>
      %21 = vector.broadcast %20 : vector<1x128xf32> to vector<16x128xf32>
      %22 = arith.addf %18, %21 : vector<16x128xf32>
      %cst_19 = arith.constant 0.000000e+00 : f32
      %23 = vector.broadcast %cst_19 : f32 to vector<16x128xf32>
      %24 = arith.cmpf oge, %22, %23 : vector<16x128xf32>
      %cst_20 = arith.constant 1.000000e-01 : f32
      %25 = vector.broadcast %cst_20 : f32 to vector<16x128xf32>
      %26 = arith.mulf %25, %22 : vector<16x128xf32>
      %27 = arith.select %24, %22, %26 : vector<16x128xi1>, vector<16x128xf32>
      %c0_21 = arith.constant 0 : index
      %c0_22 = arith.constant 0 : index
      %c0_23 = arith.constant 0 : index
      %28 = vector.load %arg6[%c0_21, %c0_22, %c0_23] : memref<1x16x128xf32, #tpu.memory_space<vmem>>, vector<1x16x128xf32>
      %29 = vector.shape_cast %28 : vector<1x16x128xf32> to vector<16x128xf32>
      %30 = vector.shape_cast %27 : vector<16x128xf32> to vector<1x16x128xf32>
      tpu.vector_store %arg6[%c0_21, %c0_22, %c0_23], %30 {strides = array<i32>} : memref<1x16x128xf32, #tpu.memory_space<vmem>>, vector<1x16x128xf32>,
    } else {
    }
    return
  }
  func.func @transform_0(%arg0: i32, %arg1: i32, %arg2: i32) -> (i32, i32, i32) {
    %c0_i32 = arith.constant 0 : i32
    return %arg0, %arg1, %arg2 : i32, i32, i32
  }
  func.func @transform_1(%arg0: i32, %arg1: i32, %arg2: i32) -> (i32, i32, i32) {
    %c0_i32 = arith.constant 0 : i32
    %c0_i32_0 = arith.constant 0 : i32
    return %arg0, %arg2, %c0_i32 : i32, i32, i32
  }
  func.func @transform_2(%arg0: i32, %arg1: i32, %arg2: i32) -> (i32, i32, i32) {
    %c0_i32 = arith.constant 0 : i32
    %c0_i32_0 = arith.constant 0 : i32
    %c0_i32_1 = arith.constant 0 : i32
    return %arg0, %c0_i32, %c0_i32_0 : i32, i32, i32
  }
  func.func @transform_3(%arg0: i32, %arg1: i32, %arg2: i32) -> (i32, i32, i32) {
    %c0_i32 = arith.constant 0 : i32
    %c0_i32_0 = arith.constant 0 : i32
    return %arg0, %arg1, %c0_i32 : i32, i32, i32
  }
}

module attributes {stable_mosaic.version = 11 : i64} {
  func.func @_conv_mm_kernel(%arg0: i32, %arg1: i32, %arg2: i32, %arg3: memref<1x8x384xbf16, #tpu.memory_space<vmem>>, %arg4: memref<1x384x128xbf16, #tpu.memory_space<vmem>>, %arg5: memref<1x1x128xf32, #tpu.memory_space<vmem>>, %arg6: memref<1x8x128xf32, #tpu.memory_space<vmem>>) attributes {dimension_semantics = [#tpu.dimension_semantics<parallel>, #tpu.dimension_semantics<parallel>, #tpu.dimension_semantics<arbitrary>], iteration_bounds = array<i64: 8, 1, 7>, scalar_prefetch = 0 : i64, scratch_operands = 0 : i64, tpu.core_type = #tpu.core_type<tc>, window_params = [{transform_indices = @transform_0, window_bounds = array<i64: 1, 8, 384>}, {transform_indices = @transform_1, window_bounds = array<i64: 1, 384, 128>}, {transform_indices = @transform_2, window_bounds = array<i64: 1, 1, 128>}, {transform_indices = @transform_3, window_bounds = array<i64: 1, 8, 128>}]} {
    %c0_i32 = arith.constant 0 : i32
    %0 = arith.cmpi eq, %arg2, %c0_i32 : i32
    %1 = arith.extui %0 : i1 to i32
    %c0_i32_0 = arith.constant 0 : i32
    %2 = arith.cmpi ne, %1, %c0_i32_0 : i32
    scf.if %2 {
      %cst_13 = arith.constant 0.000000e+00 : f32
      %17 = vector.broadcast %cst_13 : f32 to vector<8x128xf32>
      %c0_14 = arith.constant 0 : index
      %c0_15 = arith.constant 0 : index
      %c0_16 = arith.constant 0 : index
      %18 = vector.load %arg6[%c0_14, %c0_15, %c0_16] : memref<1x8x128xf32, #tpu.memory_space<vmem>>, vector<1x8x128xf32>
      %19 = vector.shape_cast %18 : vector<1x8x128xf32> to vector<8x128xf32>
      %20 = vector.shape_cast %17 : vector<8x128xf32> to vector<1x8x128xf32>
      tpu.vector_store %arg6[%c0_14, %c0_15, %c0_16], %20 {strides = array<i32>} : memref<1x8x128xf32, #tpu.memory_space<vmem>>, vector<1x8x128xf32>,
    } else {
    }
    %c0 = arith.constant 0 : index
    %c0_1 = arith.constant 0 : index
    %c0_2 = arith.constant 0 : index
    %3 = vector.load %arg6[%c0, %c0_1, %c0_2] : memref<1x8x128xf32, #tpu.memory_space<vmem>>, vector<1x8x128xf32>
    %4 = vector.shape_cast %3 : vector<1x8x128xf32> to vector<8x128xf32>
    %c0_3 = arith.constant 0 : index
    %c0_4 = arith.constant 0 : index
    %c0_5 = arith.constant 0 : index
    %5 = vector.load %arg3[%c0_3, %c0_4, %c0_5] : memref<1x8x384xbf16, #tpu.memory_space<vmem>>, vector<1x8x384xbf16>
    %6 = vector.shape_cast %5 : vector<1x8x384xbf16> to vector<8x384xbf16>
    %c0_6 = arith.constant 0 : index
    %c0_7 = arith.constant 0 : index
    %c0_8 = arith.constant 0 : index
    %7 = vector.load %arg4[%c0_6, %c0_7, %c0_8] : memref<1x384x128xbf16, #tpu.memory_space<vmem>>, vector<1x384x128xbf16>
    %8 = vector.shape_cast %7 : vector<1x384x128xbf16> to vector<384x128xbf16>
    %cst = arith.constant dense<0.000000e+00> : vector<8x128xf32>
    %9 = tpu.matmul %6, %8, %cst {dimension_numbers = #tpu.dot_dimension_numbers<[1], [0], [0], [1], [0, 0, 1, 1], [], []>} : vector<8x384xbf16>, vector<384x128xbf16>, vector<8x128xf32> -> vector<8x128xf32>
    %10 = arith.addf %4, %9 : vector<8x128xf32>
    %c0_9 = arith.constant 0 : index
    %c0_10 = arith.constant 0 : index
    %c0_11 = arith.constant 0 : index
    %11 = vector.load %arg6[%c0_9, %c0_10, %c0_11] : memref<1x8x128xf32, #tpu.memory_space<vmem>>, vector<1x8x128xf32>
    %12 = vector.shape_cast %11 : vector<1x8x128xf32> to vector<8x128xf32>
    %13 = vector.shape_cast %10 : vector<8x128xf32> to vector<1x8x128xf32>
    tpu.vector_store %arg6[%c0_9, %c0_10, %c0_11], %13 {strides = array<i32>} : memref<1x8x128xf32, #tpu.memory_space<vmem>>, vector<1x8x128xf32>,
    %c6_i32 = arith.constant 6 : i32
    %14 = arith.cmpi eq, %arg2, %c6_i32 : i32
    %15 = arith.extui %14 : i1 to i32
    %c0_i32_12 = arith.constant 0 : i32
    %16 = arith.cmpi ne, %15, %c0_i32_12 : i32
    scf.if %16 {
      %c0_13 = arith.constant 0 : index
      %c0_14 = arith.constant 0 : index
      %c0_15 = arith.constant 0 : index
      %17 = vector.load %arg6[%c0_13, %c0_14, %c0_15] : memref<1x8x128xf32, #tpu.memory_space<vmem>>, vector<1x8x128xf32>
      %18 = vector.shape_cast %17 : vector<1x8x128xf32> to vector<8x128xf32>
      %c0_16 = arith.constant 0 : index
      %c0_17 = arith.constant 0 : index
      %c0_18 = arith.constant 0 : index
      %19 = vector.load %arg5[%c0_16, %c0_17, %c0_18] : memref<1x1x128xf32, #tpu.memory_space<vmem>>, vector<1x1x128xf32>
      %20 = vector.shape_cast %19 : vector<1x1x128xf32> to vector<1x128xf32>
      %21 = vector.broadcast %20 : vector<1x128xf32> to vector<8x128xf32>
      %22 = arith.addf %18, %21 : vector<8x128xf32>
      %cst_19 = arith.constant 0.000000e+00 : f32
      %23 = vector.broadcast %cst_19 : f32 to vector<8x128xf32>
      %24 = arith.cmpf oge, %22, %23 : vector<8x128xf32>
      %cst_20 = arith.constant 1.000000e-01 : f32
      %25 = vector.broadcast %cst_20 : f32 to vector<8x128xf32>
      %26 = arith.mulf %25, %22 : vector<8x128xf32>
      %27 = arith.select %24, %22, %26 : vector<8x128xi1>, vector<8x128xf32>
      %c0_21 = arith.constant 0 : index
      %c0_22 = arith.constant 0 : index
      %c0_23 = arith.constant 0 : index
      %28 = vector.load %arg6[%c0_21, %c0_22, %c0_23] : memref<1x8x128xf32, #tpu.memory_space<vmem>>, vector<1x8x128xf32>
      %29 = vector.shape_cast %28 : vector<1x8x128xf32> to vector<8x128xf32>
      %30 = vector.shape_cast %27 : vector<8x128xf32> to vector<1x8x128xf32>
      tpu.vector_store %arg6[%c0_21, %c0_22, %c0_23], %30 {strides = array<i32>} : memref<1x8x128xf32, #tpu.memory_space<vmem>>, vector<1x8x128xf32>,
    } else {
    }
    return
  }
  func.func @transform_0(%arg0: i32, %arg1: i32, %arg2: i32) -> (i32, i32, i32) {
    %c0_i32 = arith.constant 0 : i32
    return %arg0, %arg1, %arg2 : i32, i32, i32
  }
  func.func @transform_1(%arg0: i32, %arg1: i32, %arg2: i32) -> (i32, i32, i32) {
    %c0_i32 = arith.constant 0 : i32
    %c0_i32_0 = arith.constant 0 : i32
    return %arg0, %arg2, %c0_i32 : i32, i32, i32
  }
  func.func @transform_2(%arg0: i32, %arg1: i32, %arg2: i32) -> (i32, i32, i32) {
    %c0_i32 = arith.constant 0 : i32
    %c0_i32_0 = arith.constant 0 : i32
    %c0_i32_1 = arith.constant 0 : i32
    return %arg0, %c0_i32, %c0_i32_0 : i32, i32, i32
  }
  func.func @transform_3(%arg0: i32, %arg1: i32, %arg2: i32) -> (i32, i32, i32) {
    %c0_i32 = arith.constant 0 : i32
    %c0_i32_0 = arith.constant 0 : i32
    return %arg0, %arg1, %c0_i32 : i32, i32, i32
  }
}

module attributes {stable_mosaic.version = 11 : i64} {
  func.func @_conv_mm_kernel(%arg0: i32, %arg1: i32, %arg2: i32, %arg3: memref<1x8x384xbf16, #tpu.memory_space<vmem>>, %arg4: memref<1x384x128xbf16, #tpu.memory_space<vmem>>, %arg5: memref<1x1x128xf32, #tpu.memory_space<vmem>>, %arg6: memref<1x8x128xf32, #tpu.memory_space<vmem>>) attributes {dimension_semantics = [#tpu.dimension_semantics<parallel>, #tpu.dimension_semantics<parallel>, #tpu.dimension_semantics<arbitrary>], iteration_bounds = array<i64: 8, 1, 14>, scalar_prefetch = 0 : i64, scratch_operands = 0 : i64, tpu.core_type = #tpu.core_type<tc>, window_params = [{transform_indices = @transform_0, window_bounds = array<i64: 1, 8, 384>}, {transform_indices = @transform_1, window_bounds = array<i64: 1, 384, 128>}, {transform_indices = @transform_2, window_bounds = array<i64: 1, 1, 128>}, {transform_indices = @transform_3, window_bounds = array<i64: 1, 8, 128>}]} {
    %c0_i32 = arith.constant 0 : i32
    %0 = arith.cmpi eq, %arg2, %c0_i32 : i32
    %1 = arith.extui %0 : i1 to i32
    %c0_i32_0 = arith.constant 0 : i32
    %2 = arith.cmpi ne, %1, %c0_i32_0 : i32
    scf.if %2 {
      %cst_13 = arith.constant 0.000000e+00 : f32
      %17 = vector.broadcast %cst_13 : f32 to vector<8x128xf32>
      %c0_14 = arith.constant 0 : index
      %c0_15 = arith.constant 0 : index
      %c0_16 = arith.constant 0 : index
      %18 = vector.load %arg6[%c0_14, %c0_15, %c0_16] : memref<1x8x128xf32, #tpu.memory_space<vmem>>, vector<1x8x128xf32>
      %19 = vector.shape_cast %18 : vector<1x8x128xf32> to vector<8x128xf32>
      %20 = vector.shape_cast %17 : vector<8x128xf32> to vector<1x8x128xf32>
      tpu.vector_store %arg6[%c0_14, %c0_15, %c0_16], %20 {strides = array<i32>} : memref<1x8x128xf32, #tpu.memory_space<vmem>>, vector<1x8x128xf32>,
    } else {
    }
    %c0 = arith.constant 0 : index
    %c0_1 = arith.constant 0 : index
    %c0_2 = arith.constant 0 : index
    %3 = vector.load %arg6[%c0, %c0_1, %c0_2] : memref<1x8x128xf32, #tpu.memory_space<vmem>>, vector<1x8x128xf32>
    %4 = vector.shape_cast %3 : vector<1x8x128xf32> to vector<8x128xf32>
    %c0_3 = arith.constant 0 : index
    %c0_4 = arith.constant 0 : index
    %c0_5 = arith.constant 0 : index
    %5 = vector.load %arg3[%c0_3, %c0_4, %c0_5] : memref<1x8x384xbf16, #tpu.memory_space<vmem>>, vector<1x8x384xbf16>
    %6 = vector.shape_cast %5 : vector<1x8x384xbf16> to vector<8x384xbf16>
    %c0_6 = arith.constant 0 : index
    %c0_7 = arith.constant 0 : index
    %c0_8 = arith.constant 0 : index
    %7 = vector.load %arg4[%c0_6, %c0_7, %c0_8] : memref<1x384x128xbf16, #tpu.memory_space<vmem>>, vector<1x384x128xbf16>
    %8 = vector.shape_cast %7 : vector<1x384x128xbf16> to vector<384x128xbf16>
    %cst = arith.constant dense<0.000000e+00> : vector<8x128xf32>
    %9 = tpu.matmul %6, %8, %cst {dimension_numbers = #tpu.dot_dimension_numbers<[1], [0], [0], [1], [0, 0, 1, 1], [], []>} : vector<8x384xbf16>, vector<384x128xbf16>, vector<8x128xf32> -> vector<8x128xf32>
    %10 = arith.addf %4, %9 : vector<8x128xf32>
    %c0_9 = arith.constant 0 : index
    %c0_10 = arith.constant 0 : index
    %c0_11 = arith.constant 0 : index
    %11 = vector.load %arg6[%c0_9, %c0_10, %c0_11] : memref<1x8x128xf32, #tpu.memory_space<vmem>>, vector<1x8x128xf32>
    %12 = vector.shape_cast %11 : vector<1x8x128xf32> to vector<8x128xf32>
    %13 = vector.shape_cast %10 : vector<8x128xf32> to vector<1x8x128xf32>
    tpu.vector_store %arg6[%c0_9, %c0_10, %c0_11], %13 {strides = array<i32>} : memref<1x8x128xf32, #tpu.memory_space<vmem>>, vector<1x8x128xf32>,
    %c13_i32 = arith.constant 13 : i32
    %14 = arith.cmpi eq, %arg2, %c13_i32 : i32
    %15 = arith.extui %14 : i1 to i32
    %c0_i32_12 = arith.constant 0 : i32
    %16 = arith.cmpi ne, %15, %c0_i32_12 : i32
    scf.if %16 {
      %c0_13 = arith.constant 0 : index
      %c0_14 = arith.constant 0 : index
      %c0_15 = arith.constant 0 : index
      %17 = vector.load %arg6[%c0_13, %c0_14, %c0_15] : memref<1x8x128xf32, #tpu.memory_space<vmem>>, vector<1x8x128xf32>
      %18 = vector.shape_cast %17 : vector<1x8x128xf32> to vector<8x128xf32>
      %c0_16 = arith.constant 0 : index
      %c0_17 = arith.constant 0 : index
      %c0_18 = arith.constant 0 : index
      %19 = vector.load %arg5[%c0_16, %c0_17, %c0_18] : memref<1x1x128xf32, #tpu.memory_space<vmem>>, vector<1x1x128xf32>
      %20 = vector.shape_cast %19 : vector<1x1x128xf32> to vector<1x128xf32>
      %21 = vector.broadcast %20 : vector<1x128xf32> to vector<8x128xf32>
      %22 = arith.addf %18, %21 : vector<8x128xf32>
      %cst_19 = arith.constant 0.000000e+00 : f32
      %23 = vector.broadcast %cst_19 : f32 to vector<8x128xf32>
      %24 = arith.cmpf oge, %22, %23 : vector<8x128xf32>
      %cst_20 = arith.constant 1.000000e-01 : f32
      %25 = vector.broadcast %cst_20 : f32 to vector<8x128xf32>
      %26 = arith.mulf %25, %22 : vector<8x128xf32>
      %27 = arith.select %24, %22, %26 : vector<8x128xi1>, vector<8x128xf32>
      %c0_21 = arith.constant 0 : index
      %c0_22 = arith.constant 0 : index
      %c0_23 = arith.constant 0 : index
      %28 = vector.load %arg6[%c0_21, %c0_22, %c0_23] : memref<1x8x128xf32, #tpu.memory_space<vmem>>, vector<1x8x128xf32>
      %29 = vector.shape_cast %28 : vector<1x8x128xf32> to vector<8x128xf32>
      %30 = vector.shape_cast %27 : vector<8x128xf32> to vector<1x8x128xf32>
      tpu.vector_store %arg6[%c0_21, %c0_22, %c0_23], %30 {strides = array<i32>} : memref<1x8x128xf32, #tpu.memory_space<vmem>>, vector<1x8x128xf32>,
    } else {
    }
    return
  }
  func.func @transform_0(%arg0: i32, %arg1: i32, %arg2: i32) -> (i32, i32, i32) {
    %c0_i32 = arith.constant 0 : i32
    return %arg0, %arg1, %arg2 : i32, i32, i32
  }
  func.func @transform_1(%arg0: i32, %arg1: i32, %arg2: i32) -> (i32, i32, i32) {
    %c0_i32 = arith.constant 0 : i32
    %c0_i32_0 = arith.constant 0 : i32
    return %arg0, %arg2, %c0_i32 : i32, i32, i32
  }
  func.func @transform_2(%arg0: i32, %arg1: i32, %arg2: i32) -> (i32, i32, i32) {
    %c0_i32 = arith.constant 0 : i32
    %c0_i32_0 = arith.constant 0 : i32
    %c0_i32_1 = arith.constant 0 : i32
    return %arg0, %c0_i32, %c0_i32_0 : i32, i32, i32
  }
  func.func @transform_3(%arg0: i32, %arg1: i32, %arg2: i32) -> (i32, i32, i32) {
    %c0_i32 = arith.constant 0 : i32
    %c0_i32_0 = arith.constant 0 : i32
    return %arg0, %arg1, %c0_i32 : i32, i32, i32
  }
}

module attributes {stable_mosaic.version = 11 : i64} {
  func.func @_conv_mm_kernel(%arg0: i32, %arg1: i32, %arg2: i32, %arg3: memref<1x8x512xbf16, #tpu.memory_space<vmem>>, %arg4: memref<1x512x1024xbf16, #tpu.memory_space<vmem>>, %arg5: memref<1x1x1024xf32, #tpu.memory_space<vmem>>, %arg6: memref<1x8x1024xf32, #tpu.memory_space<vmem>>) attributes {dimension_semantics = [#tpu.dimension_semantics<parallel>, #tpu.dimension_semantics<parallel>, #tpu.dimension_semantics<arbitrary>], iteration_bounds = array<i64: 1, 1, 10>, scalar_prefetch = 0 : i64, scratch_operands = 0 : i64, tpu.core_type = #tpu.core_type<tc>, window_params = [{transform_indices = @transform_0, window_bounds = array<i64: 1, 8, 512>}, {transform_indices = @transform_1, window_bounds = array<i64: 1, 512, 1024>}, {transform_indices = @transform_2, window_bounds = array<i64: 1, 1, 1024>}, {transform_indices = @transform_3, window_bounds = array<i64: 1, 8, 1024>}]} {
    %c0_i32 = arith.constant 0 : i32
    %0 = arith.cmpi eq, %arg2, %c0_i32 : i32
    %1 = arith.extui %0 : i1 to i32
    %c0_i32_0 = arith.constant 0 : i32
    %2 = arith.cmpi ne, %1, %c0_i32_0 : i32
    scf.if %2 {
      %cst_13 = arith.constant 0.000000e+00 : f32
      %17 = vector.broadcast %cst_13 : f32 to vector<8x1024xf32>
      %c0_14 = arith.constant 0 : index
      %c0_15 = arith.constant 0 : index
      %c0_16 = arith.constant 0 : index
      %18 = vector.load %arg6[%c0_14, %c0_15, %c0_16] : memref<1x8x1024xf32, #tpu.memory_space<vmem>>, vector<1x8x1024xf32>
      %19 = vector.shape_cast %18 : vector<1x8x1024xf32> to vector<8x1024xf32>
      %20 = vector.shape_cast %17 : vector<8x1024xf32> to vector<1x8x1024xf32>
      tpu.vector_store %arg6[%c0_14, %c0_15, %c0_16], %20 {strides = array<i32>} : memref<1x8x1024xf32, #tpu.memory_space<vmem>>, vector<1x8x1024xf32>,
    } else {
    }
    %c0 = arith.constant 0 : index
    %c0_1 = arith.constant 0 : index
    %c0_2 = arith.constant 0 : index
    %3 = vector.load %arg6[%c0, %c0_1, %c0_2] : memref<1x8x1024xf32, #tpu.memory_space<vmem>>, vector<1x8x1024xf32>
    %4 = vector.shape_cast %3 : vector<1x8x1024xf32> to vector<8x1024xf32>
    %c0_3 = arith.constant 0 : index
    %c0_4 = arith.constant 0 : index
    %c0_5 = arith.constant 0 : index
    %5 = vector.load %arg3[%c0_3, %c0_4, %c0_5] : memref<1x8x512xbf16, #tpu.memory_space<vmem>>, vector<1x8x512xbf16>
    %6 = vector.shape_cast %5 : vector<1x8x512xbf16> to vector<8x512xbf16>
    %c0_6 = arith.constant 0 : index
    %c0_7 = arith.constant 0 : index
    %c0_8 = arith.constant 0 : index
    %7 = vector.load %arg4[%c0_6, %c0_7, %c0_8] : memref<1x512x1024xbf16, #tpu.memory_space<vmem>>, vector<1x512x1024xbf16>
    %8 = vector.shape_cast %7 : vector<1x512x1024xbf16> to vector<512x1024xbf16>
    %cst = arith.constant dense<0.000000e+00> : vector<8x1024xf32>
    %9 = tpu.matmul %6, %8, %cst {dimension_numbers = #tpu.dot_dimension_numbers<[1], [0], [0], [1], [0, 0, 1, 1], [], []>} : vector<8x512xbf16>, vector<512x1024xbf16>, vector<8x1024xf32> -> vector<8x1024xf32>
    %10 = arith.addf %4, %9 : vector<8x1024xf32>
    %c0_9 = arith.constant 0 : index
    %c0_10 = arith.constant 0 : index
    %c0_11 = arith.constant 0 : index
    %11 = vector.load %arg6[%c0_9, %c0_10, %c0_11] : memref<1x8x1024xf32, #tpu.memory_space<vmem>>, vector<1x8x1024xf32>
    %12 = vector.shape_cast %11 : vector<1x8x1024xf32> to vector<8x1024xf32>
    %13 = vector.shape_cast %10 : vector<8x1024xf32> to vector<1x8x1024xf32>
    tpu.vector_store %arg6[%c0_9, %c0_10, %c0_11], %13 {strides = array<i32>} : memref<1x8x1024xf32, #tpu.memory_space<vmem>>, vector<1x8x1024xf32>,
    %c9_i32 = arith.constant 9 : i32
    %14 = arith.cmpi eq, %arg2, %c9_i32 : i32
    %15 = arith.extui %14 : i1 to i32
    %c0_i32_12 = arith.constant 0 : i32
    %16 = arith.cmpi ne, %15, %c0_i32_12 : i32
    scf.if %16 {
      %c0_13 = arith.constant 0 : index
      %c0_14 = arith.constant 0 : index
      %c0_15 = arith.constant 0 : index
      %17 = vector.load %arg6[%c0_13, %c0_14, %c0_15] : memref<1x8x1024xf32, #tpu.memory_space<vmem>>, vector<1x8x1024xf32>
      %18 = vector.shape_cast %17 : vector<1x8x1024xf32> to vector<8x1024xf32>
      %c0_16 = arith.constant 0 : index
      %c0_17 = arith.constant 0 : index
      %c0_18 = arith.constant 0 : index
      %19 = vector.load %arg5[%c0_16, %c0_17, %c0_18] : memref<1x1x1024xf32, #tpu.memory_space<vmem>>, vector<1x1x1024xf32>
      %20 = vector.shape_cast %19 : vector<1x1x1024xf32> to vector<1x1024xf32>
      %21 = vector.broadcast %20 : vector<1x1024xf32> to vector<8x1024xf32>
      %22 = arith.addf %18, %21 : vector<8x1024xf32>
      %cst_19 = arith.constant 0.000000e+00 : f32
      %23 = vector.broadcast %cst_19 : f32 to vector<8x1024xf32>
      %24 = arith.cmpf oge, %22, %23 : vector<8x1024xf32>
      %cst_20 = arith.constant 1.000000e-01 : f32
      %25 = vector.broadcast %cst_20 : f32 to vector<8x1024xf32>
      %26 = arith.mulf %25, %22 : vector<8x1024xf32>
      %27 = arith.select %24, %22, %26 : vector<8x1024xi1>, vector<8x1024xf32>
      %c0_21 = arith.constant 0 : index
      %c0_22 = arith.constant 0 : index
      %c0_23 = arith.constant 0 : index
      %28 = vector.load %arg6[%c0_21, %c0_22, %c0_23] : memref<1x8x1024xf32, #tpu.memory_space<vmem>>, vector<1x8x1024xf32>
      %29 = vector.shape_cast %28 : vector<1x8x1024xf32> to vector<8x1024xf32>
      %30 = vector.shape_cast %27 : vector<8x1024xf32> to vector<1x8x1024xf32>
      tpu.vector_store %arg6[%c0_21, %c0_22, %c0_23], %30 {strides = array<i32>} : memref<1x8x1024xf32, #tpu.memory_space<vmem>>, vector<1x8x1024xf32>,
    } else {
    }
    return
  }
  func.func @transform_0(%arg0: i32, %arg1: i32, %arg2: i32) -> (i32, i32, i32) {
    %c0_i32 = arith.constant 0 : i32
    return %arg0, %arg1, %arg2 : i32, i32, i32
  }
  func.func @transform_1(%arg0: i32, %arg1: i32, %arg2: i32) -> (i32, i32, i32) {
    %c0_i32 = arith.constant 0 : i32
    %c0_i32_0 = arith.constant 0 : i32
    return %arg0, %arg2, %c0_i32 : i32, i32, i32
  }
  func.func @transform_2(%arg0: i32, %arg1: i32, %arg2: i32) -> (i32, i32, i32) {
    %c0_i32 = arith.constant 0 : i32
    %c0_i32_0 = arith.constant 0 : i32
    %c0_i32_1 = arith.constant 0 : i32
    return %arg0, %c0_i32, %c0_i32_0 : i32, i32, i32
  }
  func.func @transform_3(%arg0: i32, %arg1: i32, %arg2: i32) -> (i32, i32, i32) {
    %c0_i32 = arith.constant 0 : i32
    %c0_i32_0 = arith.constant 0 : i32
    return %arg0, %arg1, %c0_i32 : i32, i32, i32
  }
}

module attributes {stable_mosaic.version = 11 : i64} {
  func.func @_conv_mm_kernel(%arg0: i32, %arg1: i32, %arg2: i32, %arg3: memref<1x8x512xbf16, #tpu.memory_space<vmem>>, %arg4: memref<1x512x128xbf16, #tpu.memory_space<vmem>>, %arg5: memref<1x1x128xf32, #tpu.memory_space<vmem>>, %arg6: memref<1x8x128xf32, #tpu.memory_space<vmem>>) attributes {dimension_semantics = [#tpu.dimension_semantics<parallel>, #tpu.dimension_semantics<parallel>, #tpu.dimension_semantics<arbitrary>], iteration_bounds = array<i64: 1, 1, 6>, scalar_prefetch = 0 : i64, scratch_operands = 0 : i64, tpu.core_type = #tpu.core_type<tc>, window_params = [{transform_indices = @transform_0, window_bounds = array<i64: 1, 8, 512>}, {transform_indices = @transform_1, window_bounds = array<i64: 1, 512, 128>}, {transform_indices = @transform_2, window_bounds = array<i64: 1, 1, 128>}, {transform_indices = @transform_3, window_bounds = array<i64: 1, 8, 128>}]} {
    %c0_i32 = arith.constant 0 : i32
    %0 = arith.cmpi eq, %arg2, %c0_i32 : i32
    %1 = arith.extui %0 : i1 to i32
    %c0_i32_0 = arith.constant 0 : i32
    %2 = arith.cmpi ne, %1, %c0_i32_0 : i32
    scf.if %2 {
      %cst_13 = arith.constant 0.000000e+00 : f32
      %17 = vector.broadcast %cst_13 : f32 to vector<8x128xf32>
      %c0_14 = arith.constant 0 : index
      %c0_15 = arith.constant 0 : index
      %c0_16 = arith.constant 0 : index
      %18 = vector.load %arg6[%c0_14, %c0_15, %c0_16] : memref<1x8x128xf32, #tpu.memory_space<vmem>>, vector<1x8x128xf32>
      %19 = vector.shape_cast %18 : vector<1x8x128xf32> to vector<8x128xf32>
      %20 = vector.shape_cast %17 : vector<8x128xf32> to vector<1x8x128xf32>
      tpu.vector_store %arg6[%c0_14, %c0_15, %c0_16], %20 {strides = array<i32>} : memref<1x8x128xf32, #tpu.memory_space<vmem>>, vector<1x8x128xf32>,
    } else {
    }
    %c0 = arith.constant 0 : index
    %c0_1 = arith.constant 0 : index
    %c0_2 = arith.constant 0 : index
    %3 = vector.load %arg6[%c0, %c0_1, %c0_2] : memref<1x8x128xf32, #tpu.memory_space<vmem>>, vector<1x8x128xf32>
    %4 = vector.shape_cast %3 : vector<1x8x128xf32> to vector<8x128xf32>
    %c0_3 = arith.constant 0 : index
    %c0_4 = arith.constant 0 : index
    %c0_5 = arith.constant 0 : index
    %5 = vector.load %arg3[%c0_3, %c0_4, %c0_5] : memref<1x8x512xbf16, #tpu.memory_space<vmem>>, vector<1x8x512xbf16>
    %6 = vector.shape_cast %5 : vector<1x8x512xbf16> to vector<8x512xbf16>
    %c0_6 = arith.constant 0 : index
    %c0_7 = arith.constant 0 : index
    %c0_8 = arith.constant 0 : index
    %7 = vector.load %arg4[%c0_6, %c0_7, %c0_8] : memref<1x512x128xbf16, #tpu.memory_space<vmem>>, vector<1x512x128xbf16>
    %8 = vector.shape_cast %7 : vector<1x512x128xbf16> to vector<512x128xbf16>
    %cst = arith.constant dense<0.000000e+00> : vector<8x128xf32>
    %9 = tpu.matmul %6, %8, %cst {dimension_numbers = #tpu.dot_dimension_numbers<[1], [0], [0], [1], [0, 0, 1, 1], [], []>} : vector<8x512xbf16>, vector<512x128xbf16>, vector<8x128xf32> -> vector<8x128xf32>
    %10 = arith.addf %4, %9 : vector<8x128xf32>
    %c0_9 = arith.constant 0 : index
    %c0_10 = arith.constant 0 : index
    %c0_11 = arith.constant 0 : index
    %11 = vector.load %arg6[%c0_9, %c0_10, %c0_11] : memref<1x8x128xf32, #tpu.memory_space<vmem>>, vector<1x8x128xf32>
    %12 = vector.shape_cast %11 : vector<1x8x128xf32> to vector<8x128xf32>
    %13 = vector.shape_cast %10 : vector<8x128xf32> to vector<1x8x128xf32>
    tpu.vector_store %arg6[%c0_9, %c0_10, %c0_11], %13 {strides = array<i32>} : memref<1x8x128xf32, #tpu.memory_space<vmem>>, vector<1x8x128xf32>,
    %c5_i32 = arith.constant 5 : i32
    %14 = arith.cmpi eq, %arg2, %c5_i32 : i32
    %15 = arith.extui %14 : i1 to i32
    %c0_i32_12 = arith.constant 0 : i32
    %16 = arith.cmpi ne, %15, %c0_i32_12 : i32
    scf.if %16 {
      %c0_13 = arith.constant 0 : index
      %c0_14 = arith.constant 0 : index
      %c0_15 = arith.constant 0 : index
      %17 = vector.load %arg6[%c0_13, %c0_14, %c0_15] : memref<1x8x128xf32, #tpu.memory_space<vmem>>, vector<1x8x128xf32>
      %18 = vector.shape_cast %17 : vector<1x8x128xf32> to vector<8x128xf32>
      %c0_16 = arith.constant 0 : index
      %c0_17 = arith.constant 0 : index
      %c0_18 = arith.constant 0 : index
      %19 = vector.load %arg5[%c0_16, %c0_17, %c0_18] : memref<1x1x128xf32, #tpu.memory_space<vmem>>, vector<1x1x128xf32>
      %20 = vector.shape_cast %19 : vector<1x1x128xf32> to vector<1x128xf32>
      %21 = vector.broadcast %20 : vector<1x128xf32> to vector<8x128xf32>
      %22 = arith.addf %18, %21 : vector<8x128xf32>
      %c0_19 = arith.constant 0 : index
      %c0_20 = arith.constant 0 : index
      %c0_21 = arith.constant 0 : index
      %23 = vector.load %arg6[%c0_19, %c0_20, %c0_21] : memref<1x8x128xf32, #tpu.memory_space<vmem>>, vector<1x8x128xf32>
      %24 = vector.shape_cast %23 : vector<1x8x128xf32> to vector<8x128xf32>
      %25 = vector.shape_cast %22 : vector<8x128xf32> to vector<1x8x128xf32>
      tpu.vector_store %arg6[%c0_19, %c0_20, %c0_21], %25 {strides = array<i32>} : memref<1x8x128xf32, #tpu.memory_space<vmem>>, vector<1x8x128xf32>,
    } else {
    }
    return
  }
  func.func @transform_0(%arg0: i32, %arg1: i32, %arg2: i32) -> (i32, i32, i32) {
    %c0_i32 = arith.constant 0 : i32
    return %arg0, %arg1, %arg2 : i32, i32, i32
  }
  func.func @transform_1(%arg0: i32, %arg1: i32, %arg2: i32) -> (i32, i32, i32) {
    %c0_i32 = arith.constant 0 : i32
    %c0_i32_0 = arith.constant 0 : i32
    return %arg0, %arg2, %c0_i32 : i32, i32, i32
  }
  func.func @transform_2(%arg0: i32, %arg1: i32, %arg2: i32) -> (i32, i32, i32) {
    %c0_i32 = arith.constant 0 : i32
    %c0_i32_0 = arith.constant 0 : i32
    %c0_i32_1 = arith.constant 0 : i32
    return %arg0, %c0_i32, %c0_i32_0 : i32, i32, i32
  }
  func.func @transform_3(%arg0: i32, %arg1: i32, %arg2: i32) -> (i32, i32, i32) {
    %c0_i32 = arith.constant 0 : i32
    %c0_i32_0 = arith.constant 0 : i32
    return %arg0, %arg1, %c0_i32 : i32, i32, i32
  }
}

</mosaic_0001>

<bundles_post_ra>
// kernel: _lambda_.8
= control target key start
LH: loop header
LB: loop body
LE: loop exit
PB: predicated region body
PF: predicated region fallthrough
CT: control target
= control target key end

     0   :  { %8 = vsyncpa [#allocation3], 0  ;;  %s1150_s0 = inlined_call_operand.vmem [shape: bf16[1,256,128], index: 0, kind: input, shape index: {}]   ;;  %s1151_s1 = inlined_call_operand.hbm [shape: bf16[1,128,128], index: 1, kind: input, shape index: {}]   ;;  %s1152_s2 = inlined_call_operand.hbm [shape: f32[1,1,128], index: 2, kind: input, shape index: {}]   ;;  %s1153_s3 = inlined_call_operand.vmem [shape: f32[1,256,128], index: 3, kind: output, shape index: {}]  }
   0x1   :  { %9 = vsyncpa [#allocation5], 0  ;;  %s924_s12 = smov [#allocation2]   ;;  %s876_s16 = scalar_lea.hbm %s1151_s1, 1024 }
   0x2   :  { %s17_s13 = sshll.u32 %s924_s12, 4  ;;  %p877_p0 = scmp.ne.s32.totalorder %s1151_s1, %s876_s16  ;;  %s18_s13 = int_to_ptr.vmem [resolvable:$true] %s17_s13 }
   0x3   :  { %p880_p1 = scmp.lt.u32.totalorder %s876_s16, %s1151_s1 }
   0x5   :  { %p882_p2 = pnand %p880_p1, %p877_p0 }
   0x7   :  { %885 = shalt.err (!%p882_p2)
}
   0x8   :  { %s886_s21 = scalar_lea.vmem %s18_s13, 1024  ;;  %p891_p4 = scmp.lt.s32.totalorder %s18_s13, %s18_s13 }
   0x9   :  { %p887_p3 = scmp.ne.s32.totalorder %s18_s13, %s886_s21  ;;  %p892_p5 = scmp.lt.s32.totalorder %s886_s21, %s886_s21 }
   0xb   :  { %p893_p6 = por %p892_p5, %p891_p4 }
   0xd   :  { %p894_p7 = pnand %p893_p6, %p887_p3 }
   0xf   :  { %897 = shalt.err (!%p894_p7)
}
  0x10   :  { %s925_s22 = smov 64   ;;  %s926_s23 = smov 4  }
  0x11   :  { %23 = dma.hbm_to_vmem [thread:$0]  %s1151_s1, 1024, %s18_s13, [#allocation3], %s925_s22, %s925_s22, %s926_s23  }
  0x12   :  { %s927_s26 = smov [#allocation4]   ;;  %s898_s30 = scalar_lea.hbm %s1152_s2, 16 }
  0x13   :  { %s30_s27 = sshll.u32 %s927_s26, 4  ;;  %p899_p8 = scmp.ne.s32.totalorder %s1152_s2, %s898_s30  ;;  %s31_s27 = int_to_ptr.vmem [resolvable:$true] %s30_s27 }
  0x14   :  { %p902_p9 = scmp.lt.u32.totalorder %s898_s30, %s1152_s2 }
  0x16   :  { %p904_p10 = pnand %p902_p9, %p899_p8 }
  0x18   :  { %907 = shalt.err (!%p904_p10)
}
  0x19   :  { %s908_s8 = scalar_lea.vmem %s31_s27, 16  ;;  %s912_s1 = scalar_lea.vmem %s31_s27, 32 }
  0x1a   :  { %p909_p11 = scmp.ne.s32.totalorder %s31_s27, %s908_s8  ;;  %p913_p12 = scmp.lt.s32.totalorder %s31_s27, %s31_s27 }
  0x1b   :  { %p914_p13 = scmp.lt.s32.totalorder %s912_s1, %s908_s8 }
  0x1d   :  { %p915_p0 = por %p914_p13, %p913_p12 }
  0x1f   :  { %p916_p1 = pnand %p915_p0, %p909_p11 }
  0x21   :  { %919 = shalt.err (!%p916_p1)
}
  0x22   :  { %33 = dma.hbm_to_vmem [thread:$0]  %s1152_s2, 16, %s31_s27, [#allocation5]  }
  0x23   :  { %920 = dma.done.wait [#allocation3], 1024  }
  0x24   :  { %921 = vsyncadd [#allocation3], 4294966272 }
  0x25   :  { %922 = dma.done.wait [#allocation5], 16  }
  0x26   :  { %923 = vsyncadd [#allocation5], 4294967280  ;;  %v852_v0 = vld [vmem:[#allocation2] sm:$0xff]   ;;  %v853_v1 = vld [vmem:[#allocation2 + $0x8] sm:$0xff]  }
  0x27   :  { %783 = vmatprep.subr.bf16.mxu0 %v852_v0  ;;  %831 = vmatprep.subr.bf16.mxu1 %v852_v0  ;;  %v854_v2 = vld [vmem:[#allocation2 + $0x10] sm:$0xff]   ;;  %v855_v3 = vld [vmem:[#allocation2 + $0x18] sm:$0xff]   ;;  %v860_v4 = vld [vmem:[%s1150_s0] sm:$0xff]  }
  0x28   :  { %784 = vmatpush3.bf16.msra.mxu0 %v852_v0  ;;  %839 = vmatpush3.bf16.msra.mxu1 %v852_v0  ;;  %v861_v5 = vld [vmem:[%s1150_s0 + $0x40] sm:$0xff]   ;;  %v857_v7 = vld [vmem:[#allocation2 + $0x28] sm:$0xff]   ;;  %v858_v8 = vld [vmem:[#allocation2 + $0x30] sm:$0xff]  }
  0x29   :  { %785 = vmatprep.subr.bf16.mxu0 %v853_v1  ;;  %832 = vmatprep.subr.bf16.mxu1 %v853_v1  ;;  %v856_v6 = vld [vmem:[#allocation2 + $0x20] sm:$0xff]   ;;  %v859_v9 = vld [vmem:[#allocation2 + $0x38] sm:$0xff]   ;;  %v862_v10 = vld [vmem:[%s1150_s0 + $0x8] sm:$0xff]  }
  0x2a   :  { %799 = vmatprep.mubr.bf16.mxu0 %v860_v4  ;;  %815 = vmatprep.mubr.bf16.mxu1 %v861_v5  ;;  %v863_v11 = vld [vmem:[%s1150_s0 + $0x48] sm:$0xff]   ;;  %v864_v12 = vld [vmem:[%s1150_s0 + $0x10] sm:$0xff]   ;;  %v866_v14 = vld [vmem:[%s1150_s0 + $0x18] sm:$0xff]  }
  0x2b   :  { %v865_v13 = vld [vmem:[%s1150_s0 + $0x50] sm:$0xff]   ;;  %v867_v15 = vld [vmem:[%s1150_s0 + $0x58] sm:$0xff]   ;;  %v868_v16 = vld [vmem:[%s1150_s0 + $0x20] sm:$0xff]  }
  0x2c   :  { %786 = vmatpush3.bf16.msra.mxu0 %v853_v1  ;;  %840 = vmatpush3.bf16.msra.mxu1 %v853_v1  ;;  %v869_v17 = vld [vmem:[%s1150_s0 + $0x60] sm:$0xff]   ;;  %v870_v18 = vld [vmem:[%s1150_s0 + $0x28] sm:$0xff]   ;;  %v872_v20 = vld [vmem:[%s1150_s0 + $0x30] sm:$0xff]  }
  0x2d   :  { %787 = vmatprep.subr.bf16.mxu0 %v854_v2  ;;  %833 = vmatprep.subr.bf16.mxu1 %v854_v2  ;;  %v871_v19 = vld [vmem:[%s1150_s0 + $0x68] sm:$0xff]   ;;  %v873_v21 = vld [vmem:[%s1150_s0 + $0x70] sm:$0xff]   ;;  %v874_v22 = vld [vmem:[%s1150_s0 + $0x38] sm:$0xff]  }
  0x2e   :  { %v875_v23 = vld [vmem:[%s1150_s0 + $0x78] sm:$0xff]   ;;  %v1020_v25 = vld [vmem:[#allocation4] ss:$0 sm:$0xff] }
  0x30   :  { %788 = vmatpush3.bf16.msra.mxu0 %v854_v2  ;;  %841 = vmatpush3.bf16.msra.mxu1 %v854_v2 }
  0x31   :  { %789 = vmatprep.subr.bf16.mxu0 %v855_v3  ;;  %834 = vmatprep.subr.bf16.mxu1 %v855_v3 }
  0x34   :  { %790 = vmatpush3.bf16.msra.mxu0 %v855_v3  ;;  %842 = vmatpush3.bf16.msra.mxu1 %v855_v3 }
  0x35   :  { %791 = vmatprep.subr.bf16.mxu0 %v856_v6  ;;  %835 = vmatprep.subr.bf16.mxu1 %v856_v6 }
  0x38   :  { %792 = vmatpush3.bf16.msra.mxu0 %v856_v6  ;;  %843 = vmatpush3.bf16.msra.mxu1 %v856_v6 }
  0x39   :  { %793 = vmatprep.subr.bf16.mxu0 %v857_v7  ;;  %836 = vmatprep.subr.bf16.mxu1 %v857_v7 }
  0x3c   :  { %794 = vmatpush3.bf16.msra.mxu0 %v857_v7  ;;  %844 = vmatpush3.bf16.msra.mxu1 %v857_v7 }
  0x3d   :  { %795 = vmatprep.subr.bf16.mxu0 %v858_v8  ;;  %837 = vmatprep.subr.bf16.mxu1 %v858_v8 }
  0x40   :  { %796 = vmatpush3.bf16.msra.mxu0 %v858_v8  ;;  %845 = vmatpush3.bf16.msra.mxu1 %v858_v8 }
  0x41   :  { %797 = vmatprep.subr.bf16.mxu0 %v859_v9  ;;  %838 = vmatprep.subr.bf16.mxu1 %v859_v9 }
  0x44   :  { %798 = vmatpush3.bf16.msra.mxu0 %v859_v9  ;;  %846 = vmatpush3.bf16.msra.mxu1 %v859_v9 }
  0x47   :  { %800 = vmatmul.mubr.bf16.vlgmr.msra.gmra.mrb[0].mxu0 %v862_v10  ;;  %816 = vmatmul.mubr.bf16.vlgmr.msra.gmra.mrb[0].mxu1 %v863_v11 }
  0x48   :  { %803 = vmatprep.mubr.bf16.mxu0 %v864_v12  ;;  %819 = vmatprep.mubr.bf16.mxu1 %v865_v13 }
  0x4f   :  { %804 = vmatmul.mubr.bf16.gmra.mrb[4].mxu0 %v866_v14  ;;  %820 = vmatmul.mubr.bf16.gmra.mrb[4].mxu1 %v867_v15 }
  0x50   :  { %807 = vmatprep.mubr.bf16.mxu0 %v868_v16  ;;  %823 = vmatprep.mubr.bf16.mxu1 %v869_v17 }
  0x57   :  { %808 = vmatmul.mubr.bf16.gmra.mrb[8].mxu0 %v870_v18  ;;  %824 = vmatmul.mubr.bf16.gmra.mrb[8].mxu1 %v871_v19 }
  0x58   :  { %811 = vmatprep.mubr.bf16.mxu0 %v872_v20  ;;  %827 = vmatprep.mubr.bf16.mxu1 %v873_v21 }
  0x5f   :  { %812 = vmatmul.mubr.bf16.gmra.mrb[12].mxu0 %v874_v22  ;;  %828 = vmatmul.mubr.bf16.gmra.mrb[12].mxu1 %v875_v23 }
 0x11a   :  { %v801_v24 = vpop.f32.mrb[0].mxu0  ;;  %v817_v26 = vpop.f32.mrb[0].mxu1 }
 0x11b   :  { %v335_v27 = vpop.f32.mrb[1].mxu0  ;;  %v399_v28 = vpop.f32.mrb[1].mxu1  ;;  %v570_v31 = vadd.f32 %v801_v24, %v1020_v25  ;;  %v586_v32 = vadd.f32 %v817_v26, %v1020_v25 }
 0x11c   :  { %v802_v29 = vpop.f32.mrb[2].mxu0  ;;  %v818_v30 = vpop.f32.mrb[2].mxu1  ;;  %v568_v35 = vadd.f32 %v1020_v25, %v335_v27  ;;  %v584_v36 = vadd.f32 %v1020_v25, %v399_v28 }
 0x11d   :  { %v338_v33 = vpop.f32.mrb[3].mxu0  ;;  %v402_v34 = vpop.f32.mrb[3].mxu1  ;;  %vm602_vm0 = vcmp.ge.f32.partialorder %v570_v31, 0.0  ;;  %v634_v37 = vmul.f32 0.1, %v570_v31  ;;  %vm618_vm1 = vcmp.ge.f32.partialorder %v586_v32, 0.0  ;;  %v571_v43 = vadd.f32 %v802_v29, %v1020_v25 }
 0x11e   :  { %v650_v38 = vmul.f32 0.1, %v586_v32  ;;  %vm600_vm2 = vcmp.ge.f32.partialorder %v568_v35, 0.0  ;;  %v632_v39 = vmul.f32 0.1, %v568_v35  ;;  %vm616_vm3 = vcmp.ge.f32.partialorder %v584_v36, 0.0 }
 0x11f   :  { %v648_v40 = vmul.f32 0.1, %v584_v36  ;;  %v666_v41 = vsel %vm602_vm0, %v570_v31, %v634_v37  ;;  %v587_v44 = vadd.f32 %v818_v30, %v1020_v25  ;;  %v569_v47 = vadd.f32 %v1020_v25, %v338_v33 }
 0x120   :  { %v682_v42 = vsel %vm618_vm1, %v586_v32, %v650_v38  ;;  %698 = vst [vmem:[%s1153_s3 + $0x10] sm:$0xff] %v666_v41  ;;  %v664_v45 = vsel %vm600_vm2, %v568_v35, %v632_v39  ;;  %v585_v48 = vadd.f32 %v1020_v25, %v402_v34  ;;  %vm603_vm4 = vcmp.ge.f32.partialorder %v571_v43, 0.0 }
 0x121   :  { %714 = vst [vmem:[%s1153_s3 + $0x90] sm:$0xff] %v682_v42  ;;  %v680_v46 = vsel %vm616_vm3, %v584_v36, %v648_v40  ;;  %696 = vst [vmem:[%s1153_s3] sm:$0xff] %v664_v45  ;;  %v635_v51 = vmul.f32 0.1, %v571_v43  ;;  %vm619_vm5 = vcmp.ge.f32.partialorder %v587_v44, 0.0  ;;  %v651_v52 = vmul.f32 0.1, %v587_v44 }
 0x122   :  { %v805_v49 = vpop.f32.mrb[4].mxu0  ;;  %v821_v50 = vpop.f32.mrb[4].mxu1  ;;  %712 = vst [vmem:[%s1153_s3 + $0x80] sm:$0xff] %v680_v46  ;;  %vm601_vm6 = vcmp.ge.f32.partialorder %v569_v47, 0.0  ;;  %v633_v53 = vmul.f32 0.1, %v569_v47 }
 0x123   :  { %vm617_vm7 = vcmp.ge.f32.partialorder %v585_v48, 0.0  ;;  %v649_v54 = vmul.f32 0.1, %v585_v48  ;;  %v667_v55 = vsel %vm603_vm4, %v571_v43, %v635_v51  ;;  %v683_v56 = vsel %vm619_vm5, %v587_v44, %v651_v52  ;;  %v351_v57 = vpop.f32.mrb[5].mxu0  ;;  %v415_v58 = vpop.f32.mrb[5].mxu1 }
 0x124   :  { %699 = vst [vmem:[%s1153_s3 + $0x18] sm:$0xff] %v667_v55  ;;  %715 = vst [vmem:[%s1153_s3 + $0x98] sm:$0xff] %v683_v56  ;;  %v665_v59 = vsel %vm601_vm6, %v569_v47, %v633_v53  ;;  %v806_v61 = vpop.f32.mrb[6].mxu0  ;;  %v822_v62 = vpop.f32.mrb[6].mxu1  ;;  %v574_v63 = vadd.f32 %v805_v49, %v1020_v25  ;;  %v590_v0 = vadd.f32 %v821_v50, %v1020_v25 }
 0x125   :  { %v681_v60 = vsel %vm617_vm7, %v585_v48, %v649_v54  ;;  %697 = vst [vmem:[%s1153_s3 + $0x8] sm:$0xff] %v665_v59  ;;  %v354_v1 = vpop.f32.mrb[7].mxu0  ;;  %v418_v2 = vpop.f32.mrb[7].mxu1  ;;  %v572_v3 = vadd.f32 %v1020_v25, %v351_v57  ;;  %v588_v4 = vadd.f32 %v1020_v25, %v415_v58  ;;  %v575_v11 = vadd.f32 %v806_v61, %v1020_v25 }
 0x126   :  { %713 = vst [vmem:[%s1153_s3 + $0x88] sm:$0xff] %v681_v60  ;;  %vm606_vm8 = vcmp.ge.f32.partialorder %v574_v63, 0.0  ;;  %v638_v5 = vmul.f32 0.1, %v574_v63  ;;  %vm622_vm9 = vcmp.ge.f32.partialorder %v590_v0, 0.0  ;;  %v591_v12 = vadd.f32 %v822_v62, %v1020_v25 }
 0x127   :  { %v654_v6 = vmul.f32 0.1, %v590_v0  ;;  %vm604_vm10 = vcmp.ge.f32.partialorder %v572_v3, 0.0  ;;  %v636_v7 = vmul.f32 0.1, %v572_v3  ;;  %vm620_vm11 = vcmp.ge.f32.partialorder %v588_v4, 0.0 }
 0x128   :  { %v652_v8 = vmul.f32 0.1, %v588_v4  ;;  %v670_v9 = vsel %vm606_vm8, %v574_v63, %v638_v5  ;;  %v573_v17 = vadd.f32 %v1020_v25, %v354_v1  ;;  %v589_v18 = vadd.f32 %v1020_v25, %v418_v2 }
 0x129   :  { %v686_v10 = vsel %vm622_vm9, %v590_v0, %v654_v6  ;;  %702 = vst [vmem:[%s1153_s3 + $0x30] sm:$0xff] %v670_v9  ;;  %v668_v15 = vsel %vm604_vm10, %v572_v3, %v636_v7  ;;  %vm607_vm12 = vcmp.ge.f32.partialorder %v575_v11, 0.0  ;;  %v639_v21 = vmul.f32 0.1, %v575_v11 }
 0x12a   :  { %v809_v13 = vpop.f32.mrb[8].mxu0  ;;  %v825_v14 = vpop.f32.mrb[8].mxu1  ;;  %718 = vst [vmem:[%s1153_s3 + $0xb0] sm:$0xff] %v686_v10  ;;  %v684_v16 = vsel %vm620_vm11, %v588_v4, %v652_v8  ;;  %700 = vst [vmem:[%s1153_s3 + $0x20] sm:$0xff] %v668_v15  ;;  %vm623_vm13 = vcmp.ge.f32.partialorder %v591_v12, 0.0  ;;  %vm605_vm14 = vcmp.ge.f32.partialorder %v573_v17, 0.0 }
 0x12b   :  { %v367_v19 = vpop.f32.mrb[9].mxu0  ;;  %v431_v20 = vpop.f32.mrb[9].mxu1  ;;  %716 = vst [vmem:[%s1153_s3 + $0xa0] sm:$0xff] %v684_v16  ;;  %v655_v22 = vmul.f32 0.1, %v591_v12  ;;  %vm621_vm15 = vcmp.ge.f32.partialorder %v589_v18, 0.0  ;;  %v671_v26 = vsel %vm607_vm12, %v575_v11, %v639_v21  ;;  %v578_v34 = vadd.f32 %v809_v13, %v1020_v25 }
 0x12c   :  { %v637_v23 = vmul.f32 0.1, %v573_v17  ;;  %v653_v24 = vmul.f32 0.1, %v589_v18  ;;  %v810_v28 = vpop.f32.mrb[10].mxu0  ;;  %v826_v29 = vpop.f32.mrb[10].mxu1  ;;  %v594_v35 = vadd.f32 %v825_v14, %v1020_v25  ;;  %v576_v36 = vadd.f32 %v1020_v25, %v367_v19 }
 0x12d   :  { %v687_v27 = vsel %vm623_vm13, %v591_v12, %v655_v22  ;;  %703 = vst [vmem:[%s1153_s3 + $0x38] sm:$0xff] %v671_v26  ;;  %v370_v32 = vpop.f32.mrb[11].mxu0  ;;  %v434_v33 = vpop.f32.mrb[11].mxu1  ;;  %v592_v37 = vadd.f32 %v1020_v25, %v431_v20  ;;  %vm610_vm0 = vcmp.ge.f32.partialorder %v578_v34, 0.0  ;;  %v642_v40 = vmul.f32 0.1, %v578_v34 }
 0x12e   :  { %719 = vst [vmem:[%s1153_s3 + $0xb8] sm:$0xff] %v687_v27  ;;  %v669_v30 = vsel %vm605_vm14, %v573_v17, %v637_v23  ;;  %v685_v31 = vsel %vm621_vm15, %v589_v18, %v653_v24  ;;  %vm626_vm1 = vcmp.ge.f32.partialorder %v594_v35, 0.0  ;;  %v658_v41 = vmul.f32 0.1, %v594_v35 }
 0x12f   :  { %701 = vst [vmem:[%s1153_s3 + $0x28] sm:$0xff] %v669_v30  ;;  %717 = vst [vmem:[%s1153_s3 + $0xa8] sm:$0xff] %v685_v31  ;;  %vm608_vm2 = vcmp.ge.f32.partialorder %v576_v36, 0.0  ;;  %v640_v42 = vmul.f32 0.1, %v576_v36  ;;  %vm624_vm3 = vcmp.ge.f32.partialorder %v592_v37, 0.0  ;;  %v674_v44 = vsel %vm610_vm0, %v578_v34, %v642_v40 }
 0x130   :  { %v656_v43 = vmul.f32 0.1, %v592_v37  ;;  %v690_v45 = vsel %vm626_vm1, %v594_v35, %v658_v41  ;;  %v579_v46 = vadd.f32 %v810_v28, %v1020_v25  ;;  %v595_v47 = vadd.f32 %v826_v29, %v1020_v25  ;;  %706 = vst [vmem:[%s1153_s3 + $0x50] sm:$0xff] %v674_v44 }
 0x131   :  { %722 = vst [vmem:[%s1153_s3 + $0xd0] sm:$0xff] %v690_v45  ;;  %v672_v50 = vsel %vm608_vm2, %v576_v36, %v640_v42  ;;  %v577_v52 = vadd.f32 %v1020_v25, %v370_v32  ;;  %v593_v53 = vadd.f32 %v1020_v25, %v434_v33 }
 0x132   :  { %v813_v38 = vpop.f32.mrb[12].mxu0  ;;  %v829_v39 = vpop.f32.mrb[12].mxu1  ;;  %v688_v51 = vsel %vm624_vm3, %v592_v37, %v656_v43  ;;  %704 = vst [vmem:[%s1153_s3 + $0x40] sm:$0xff] %v672_v50  ;;  %vm611_vm4 = vcmp.ge.f32.partialorder %v579_v46, 0.0  ;;  %v643_v56 = vmul.f32 0.1, %v579_v46 }
 0x133   :  { %v383_v48 = vpop.f32.mrb[13].mxu0  ;;  %v447_v49 = vpop.f32.mrb[13].mxu1  ;;  %720 = vst [vmem:[%s1153_s3 + $0xc0] sm:$0xff] %v688_v51  ;;  %vm627_vm5 = vcmp.ge.f32.partialorder %v595_v47, 0.0  ;;  %v659_v57 = vmul.f32 0.1, %v595_v47  ;;  %v582_v2 = vadd.f32 %v813_v38, %v1020_v25  ;;  %v598_v3 = vadd.f32 %v829_v39, %v1020_v25 }
 0x134   :  { %v814_v54 = vpop.f32.mrb[14].mxu0  ;;  %v830_v55 = vpop.f32.mrb[14].mxu1  ;;  %vm609_vm6 = vcmp.ge.f32.partialorder %v577_v52, 0.0  ;;  %v641_v58 = vmul.f32 0.1, %v577_v52  ;;  %vm625_vm7 = vcmp.ge.f32.partialorder %v593_v53, 0.0  ;;  %v675_v60 = vsel %vm611_vm4, %v579_v46, %v643_v56 }
 0x135   :  { %v657_v59 = vmul.f32 0.1, %v593_v53  ;;  %v691_v61 = vsel %vm627_vm5, %v595_v47, %v659_v57  ;;  %v386_v62 = vpop.f32.mrb[15].mxu0  ;;  %v450_v63 = vpop.f32.mrb[15].mxu1  ;;  %707 = vst [vmem:[%s1153_s3 + $0x58] sm:$0xff] %v675_v60  ;;  %v580_v4 = vadd.f32 %v1020_v25, %v383_v48  ;;  %v596_v5 = vadd.f32 %v1020_v25, %v447_v49 }
 0x136   :  { %723 = vst [vmem:[%s1153_s3 + $0xd8] sm:$0xff] %v691_v61  ;;  %v673_v0 = vsel %vm609_vm6, %v577_v52, %v641_v58  ;;  %vm614_vm8 = vcmp.ge.f32.partialorder %v582_v2, 0.0  ;;  %v646_v6 = vmul.f32 0.1, %v582_v2  ;;  %vm630_vm9 = vcmp.ge.f32.partialorder %v598_v3, 0.0 }
 0x137   :  { %v689_v1 = vsel %vm625_vm7, %v593_v53, %v657_v59  ;;  %705 = vst [vmem:[%s1153_s3 + $0x48] sm:$0xff] %v673_v0  ;;  %v662_v7 = vmul.f32 0.1, %v598_v3  ;;  %vm612_vm10 = vcmp.ge.f32.partialorder %v580_v4, 0.0  ;;  %v644_v8 = vmul.f32 0.1, %v580_v4 }
 0x138   :  { %721 = vst [vmem:[%s1153_s3 + $0xc8] sm:$0xff] %v689_v1  ;;  %vm628_vm11 = vcmp.ge.f32.partialorder %v596_v5, 0.0  ;;  %v660_v9 = vmul.f32 0.1, %v596_v5  ;;  %v678_v10 = vsel %vm614_vm8, %v582_v2, %v646_v6  ;;  %v583_v12 = vadd.f32 %v814_v54, %v1020_v25 }
 0x139   :  { %v694_v11 = vsel %vm630_vm9, %v598_v3, %v662_v7  ;;  %v599_v13 = vadd.f32 %v830_v55, %v1020_v25  ;;  %710 = vst [vmem:[%s1153_s3 + $0x70] sm:$0xff] %v678_v10  ;;  %v676_v14 = vsel %vm612_vm10, %v580_v4, %v644_v8  ;;  %v581_v16 = vadd.f32 %v1020_v25, %v386_v62 }
 0x13a   :  { %726 = vst [vmem:[%s1153_s3 + $0xf0] sm:$0xff] %v694_v11  ;;  %v692_v15 = vsel %vm628_vm11, %v596_v5, %v660_v9  ;;  %v597_v17 = vadd.f32 %v1020_v25, %v450_v63  ;;  %708 = vst [vmem:[%s1153_s3 + $0x60] sm:$0xff] %v676_v14  ;;  %vm615_vm12 = vcmp.ge.f32.partialorder %v583_v12, 0.0  ;;  %v647_v18 = vmul.f32 0.1, %v583_v12 }
 0x13b   :  { %724 = vst [vmem:[%s1153_s3 + $0xe0] sm:$0xff] %v692_v15  ;;  %vm631_vm13 = vcmp.ge.f32.partialorder %v599_v13, 0.0  ;;  %v663_v19 = vmul.f32 0.1, %v599_v13  ;;  %vm613_vm14 = vcmp.ge.f32.partialorder %v581_v16, 0.0 }
 0x13c   :  { %v645_v20 = vmul.f32 0.1, %v581_v16  ;;  %vm629_vm15 = vcmp.ge.f32.partialorder %v597_v17, 0.0  ;;  %v661_v21 = vmul.f32 0.1, %v597_v17  ;;  %v679_v22 = vsel %vm615_vm12, %v583_v12, %v647_v18 }
 0x13d   :  { %v695_v23 = vsel %vm631_vm13, %v599_v13, %v663_v19  ;;  %711 = vst [vmem:[%s1153_s3 + $0x78] sm:$0xff] %v679_v22 }
 0x13e   :  { %727 = vst [vmem:[%s1153_s3 + $0xf8] sm:$0xff] %v695_v23  ;;  %v677_v25 = vsel %vm613_vm14, %v581_v16, %v645_v20  ;;  %v693_v24 = vsel %vm629_vm15, %v597_v17, %v661_v21 }
 0x13f   :  { %709 = vst [vmem:[%s1153_s3 + $0x68] sm:$0xff] %v677_v25  ;;  %725 = vst [vmem:[%s1153_s3 + $0xe8] sm:$0xff] %v693_v24 }
 0x140   :  { %732 = vsyncpa [#allocation3], 1 }
 0x141   :  { %733 = vsyncpa [#allocation5], 1 }

// kernel: _lambda_.9
= control target key start
LH: loop header
LB: loop body
LE: loop exit
PB: predicated region body
PF: predicated region fallthrough
CT: control target
= control target key end

     0   :  { %s1568_s12 = smov 0   ;;  %s1570_s13 = smov 0   ;;  %s2016_s0 = inlined_call_operand.vmem [shape: bf16[1,128,5376], index: 0, kind: input, shape index: {}]   ;;  %s2017_s1 = inlined_call_operand.vmem [shape: bf16[1,5376,128], index: 1, kind: input, shape index: {}]   ;;  %s2018_s2 = inlined_call_operand.vmem [shape: f32[1,1,128], index: 2, kind: input, shape index: {}]   ;;  %s2019_s3 = inlined_call_operand.vmem [shape: f32[1,128,128], index: 3, kind: output, shape index: {}]  }
   0x1   :  { %s1572_s14 = smov 0   ;;  %s1574_s15 = smov 0  }
   0x2   :  { %s1576_s16 = smov 0  }
   0x3 LB: > { %s25_s17 = sadd.s32 1, %s1541_s15  ;;  %p50_p1 = scmp.ne.s32.totalorder %s1533_s13, %s1529_s12  ;;  %s1545_s16 = sphi %s1576_s16, %s13_s16   ;;  %s1541_s15 = sphi %s1574_s15, %s2023_s15   ;;  %s1537_s14 = sphi %s1572_s14, %s2022_s14   ;;  %s1533_s13 = sphi %s1570_s13, %s2021_s13   ;;  %s1529_s12 = sphi %s1568_s12, %s2020_s12  }
   0x4   : > { %p26_p0 = scmp.ge.s32.totalorder %s25_s17, 14  ;;  %p51_p2 = scmp.eq.s32.totalorder %s1545_s16, 0 }
   0x5   : > { %s43_s19 = sadd.s32 1, %s1533_s13  ;;  %p1204_p5 = scmp.ge.s32.totalorder %s1545_s16, 14 }
   0x6   : > { %s2025_s17 = smov (%p26_p0, %s25_s17), 0  ;;  %p52_p3 = por %p51_p2, %p50_p1 }
   0x7   : > { %s39_s18 = ssub.s32 %s1541_s15, %s2025_s17  ;;  %164 = sbr.rel (%p1204_p5) target bundleno = 37 (0x25), region = 20 }
   0x8   : > { %p41_p4 = scmp.eq.s32.totalorder %s39_s18, 0 }
   0xa   : > { %s1603_s20 = scalar_select %p41_p4, %s1533_s13, %s43_s19  }
   0xe   : > { %167 = sbr.rel (!%p52_p3) target bundleno = 37 (0x25), region = 24  ;;  %s169_s21 = sand.u32 (%p52_p3), 1, %s1533_s13  }
   0xf   : > { %s1295_s22 = smul.u32 (%p52_p3), 12, %s1541_s15 }
  0x10   : > { %s1408_s23 = smul.u32 (%p52_p3), 192, %s169_s21 }
  0x11   : > { %s1611_s26 = scalar_lea.vmem (%p52_p3), %s2016_s0, %s1295_s22 }
  0x12   : > { %v194_v0 = vld [vmem:[%s1611_s26] sm:$0xff] (%p52_p3)  ;;  %v196_v1 = vld [vmem:[%s1611_s26 + $0xa8] sm:$0xff] (%p52_p3)  ;;  %v198_v2 = vld [vmem:[%s1611_s26 + $0x150] sm:$0xff] (%p52_p3)  ;;  %s1616_s27 = scalar_lea.vmem (%p52_p3), [#allocation2], %s1408_s23 }
  0x13   : > { %195 = vst [vmem:[%s1616_s27] sm:$0xff] (%p52_p3), %v194_v0  ;;  %197 = vst [vmem:[%s1616_s27 + $0xc] sm:$0xff] (%p52_p3), %v196_v1  ;;  %v200_v3 = vld [vmem:[%s1611_s26 + $0x1f8] sm:$0xff] (%p52_p3)  ;;  %v202_v4 = vld [vmem:[%s1611_s26 + $0x2a0] sm:$0xff] (%p52_p3) }
  0x14   : > { %199 = vst [vmem:[%s1616_s27 + $0x18] sm:$0xff] (%p52_p3), %v198_v2  ;;  %v204_v5 = vld [vmem:[%s1611_s26 + $0x348] sm:$0xff] (%p52_p3)  ;;  %201 = vst [vmem:[%s1616_s27 + $0x24] sm:$0xff] (%p52_p3), %v200_v3  ;;  %v206_v6 = vld [vmem:[%s1611_s26 + $0x3f0] sm:$0xff] (%p52_p3) }
  0x15   : > { %203 = vst [vmem:[%s1616_s27 + $0x30] sm:$0xff] %v202_v4  ;;  %205 = vst [vmem:[%s1616_s27 + $0x3c] sm:$0xff] %v204_v5  ;;  %v208_v7 = vld [vmem:[%s1611_s26 + $0x498] sm:$0xff]  ;;  %v210_v8 = vld [vmem:[%s1611_s26 + $0x540] sm:$0xff] }
  0x16   : > { %207 = vst [vmem:[%s1616_s27 + $0x48] sm:$0xff] %v206_v6  ;;  %209 = vst [vmem:[%s1616_s27 + $0x54] sm:$0xff] %v208_v7  ;;  %v212_v9 = vld [vmem:[%s1611_s26 + $0x5e8] sm:$0xff]  ;;  %v214_v10 = vld [vmem:[%s1611_s26 + $0x690] sm:$0xff] }
  0x17   : > { %211 = vst [vmem:[%s1616_s27 + $0x60] sm:$0xff] %v210_v8  ;;  %v216_v11 = vld [vmem:[%s1611_s26 + $0x738] sm:$0xff]  ;;  %213 = vst [vmem:[%s1616_s27 + $0x6c] sm:$0xff] %v212_v9  ;;  %v218_v12 = vld [vmem:[%s1611_s26 + $0x7e0] sm:$0xff] }
  0x18   : > { %215 = vst [vmem:[%s1616_s27 + $0x78] sm:$0xff] %v214_v10  ;;  %217 = vst [vmem:[%s1616_s27 + $0x84] sm:$0xff] %v216_v11  ;;  %v220_v13 = vld [vmem:[%s1611_s26 + $0x888] sm:$0xff]  ;;  %v222_v14 = vld [vmem:[%s1611_s26 + $0x930] sm:$0xff] }
  0x19   : > { %219 = vst [vmem:[%s1616_s27 + $0x90] sm:$0xff] %v218_v12  ;;  %221 = vst [vmem:[%s1616_s27 + $0x9c] sm:$0xff] %v220_v13  ;;  %v224_v15 = vld [vmem:[%s1611_s26 + $0x9d8] sm:$0xff]  ;;  %v1206_v16 = vld [vmem:[%s1611_s26 + $0x8] sm:$0xf] }
  0x1a   : > { %223 = vst [vmem:[%s1616_s27 + $0xa8] sm:$0xff] %v222_v14  ;;  %v1208_v17 = vld [vmem:[%s1611_s26 + $0xb0] sm:$0xf]  ;;  %225 = vst [vmem:[%s1616_s27 + $0xb4] sm:$0xff] %v224_v15  ;;  %v1210_v18 = vld [vmem:[%s1611_s26 + $0x158] sm:$0xf] }
  0x1b   : > { %1207 = vst [vmem:[%s1616_s27 + $0x8] sm:$0xf] %v1206_v16  ;;  %1209 = vst [vmem:[%s1616_s27 + $0x14] sm:$0xf] %v1208_v17  ;;  %v1212_v19 = vld [vmem:[%s1611_s26 + $0x200] sm:$0xf] }
  0x1c   : > { %v1214_v20 = vld [vmem:[%s1611_s26 + $0x2a8] sm:$0xf]  ;;  %1211 = vst [vmem:[%s1616_s27 + $0x20] sm:$0xf] %v1210_v18  ;;  %1213 = vst [vmem:[%s1616_s27 + $0x2c] sm:$0xf] %v1212_v19 }
  0x1d   : > { %1215 = vst [vmem:[%s1616_s27 + $0x38] sm:$0xf] %v1214_v20  ;;  %v1216_v21 = vld [vmem:[%s1611_s26 + $0x350] sm:$0xf]  ;;  %v1218_v22 = vld [vmem:[%s1611_s26 + $0x3f8] sm:$0xf] }
  0x1e   : > { %v1220_v23 = vld [vmem:[%s1611_s26 + $0x4a0] sm:$0xf]  ;;  %1217 = vst [vmem:[%s1616_s27 + $0x44] sm:$0xf] %v1216_v21  ;;  %1219 = vst [vmem:[%s1616_s27 + $0x50] sm:$0xf] %v1218_v22 }
  0x1f   : > { %1221 = vst [vmem:[%s1616_s27 + $0x5c] sm:$0xf] %v1220_v23  ;;  %v1222_v24 = vld [vmem:[%s1611_s26 + $0x548] sm:$0xf]  ;;  %v1224_v25 = vld [vmem:[%s1611_s26 + $0x5f0] sm:$0xf] }
  0x20   : > { %v1226_v26 = vld [vmem:[%s1611_s26 + $0x698] sm:$0xf]  ;;  %1223 = vst [vmem:[%s1616_s27 + $0x68] sm:$0xf] %v1222_v24  ;;  %1225 = vst [vmem:[%s1616_s27 + $0x74] sm:$0xf] %v1224_v25 }
  0x21   : > { %1227 = vst [vmem:[%s1616_s27 + $0x80] sm:$0xf] %v1226_v26  ;;  %v1228_v27 = vld [vmem:[%s1611_s26 + $0x740] sm:$0xf]  ;;  %v1230_v28 = vld [vmem:[%s1611_s26 + $0x7e8] sm:$0xf] }
  0x22   : > { %v1232_v29 = vld [vmem:[%s1611_s26 + $0x890] sm:$0xf]  ;;  %1229 = vst [vmem:[%s1616_s27 + $0x8c] sm:$0xf] %v1228_v27  ;;  %1231 = vst [vmem:[%s1616_s27 + $0x98] sm:$0xf] %v1230_v28 }
  0x23   : > { %1233 = vst [vmem:[%s1616_s27 + $0xa4] sm:$0xf] %v1232_v29  ;;  %v1234_v30 = vld [vmem:[%s1611_s26 + $0x938] sm:$0xf]  ;;  %v1236_v31 = vld [vmem:[%s1611_s26 + $0x9e0] sm:$0xf] }
  0x24   : > { %1235 = vst [vmem:[%s1616_s27 + $0xb0] sm:$0xf] %v1234_v30  ;;  %1237 = vst [vmem:[%s1616_s27 + $0xbc] sm:$0xf] %v1236_v31 }
  0x25 PF: > { %p1238_p6 = scmp.ge.s32.totalorder %s1545_s16, 1  ;;  %p282_p7 = scmp.lt.s32.totalorder %s1545_s16, 15 }
  0x27   : > { %p283_p8 = pnand %p1238_p6, %p282_p7 }
  0x28   : > { %s289_s28 = sand.u32 (!%p283_p8), 1, %s1529_s12   ;;  %s330_s29 = smul.u32 (!%p283_p8), 48, %s1537_s14 }
  0x29   : > { %286 = sbr.rel (%p283_p8) target bundleno = 382 (0x17e), region = 54  ;;  %p1240_p10 = scmp.ne.s32.totalorder (!%p283_p8), %s1537_s14, 0 }
  0x2a   : > { %s1409_s30 = smul.u32 (!%p283_p8), 192, %s289_s28  ;;  %p333_p9 = scmp.lt.s32.totalorder (!%p283_p8), %s330_s29, 671 }
  0x2c   : > { %s1688_s8 = scalar_lea.vmem (!%p283_p8), [#allocation2], %s1409_s30 }
  0x30   : > { %s2027_s29 = smov (!%p333_p9, %s330_s29), 671  ;;  %357 = sbr.rel (%p1240_p10) target bundleno = 58 (0x3a), region = 62 }
  0x31   : > { %s1239_s4 = sshll.u32 %s2027_s29, 2  ;;  %v1547_v32 = vmov (!%p1240_p10), 0.0  }
  0x32   : > { %s1686_s7 = scalar_lea.vmem %s2017_s1, %s1239_s4  ;;  %358 = vst [vmem:[%s2019_s3] sm:$0xff] (!%p1240_p10), %v1547_v32  ;;  %359 = vst [vmem:[%s2019_s3 + $0x8] sm:$0xff] (!%p1240_p10), %v1547_v32 }
  0x33   : > { %360 = vst [vmem:[%s2019_s3 + $0x10] sm:$0xff] (!%p1240_p10), %v1547_v32  ;;  %361 = vst [vmem:[%s2019_s3 + $0x18] sm:$0xff] (!%p1240_p10), %v1547_v32 }
  0x34   : > { %362 = vst [vmem:[%s2019_s3 + $0x20] sm:$0xff] (!%p1240_p10), %v1547_v32  ;;  %363 = vst [vmem:[%s2019_s3 + $0x28] sm:$0xff] (!%p1240_p10), %v1547_v32 }
  0x35   : > { %364 = vst [vmem:[%s2019_s3 + $0x30] sm:$0xff] (!%p1240_p10), %v1547_v32  ;;  %365 = vst [vmem:[%s2019_s3 + $0x38] sm:$0xff] (!%p1240_p10), %v1547_v32 }
  0x36   : > { %366 = vst [vmem:[%s2019_s3 + $0x40] sm:$0xff] (!%p1240_p10), %v1547_v32  ;;  %367 = vst [vmem:[%s2019_s3 + $0x48] sm:$0xff] (!%p1240_p10), %v1547_v32 }
  0x37   : > { %368 = vst [vmem:[%s2019_s3 + $0x50] sm:$0xff] %v1547_v32  ;;  %369 = vst [vmem:[%s2019_s3 + $0x58] sm:$0xff] %v1547_v32 }
  0x38   : > { %370 = vst [vmem:[%s2019_s3 + $0x60] sm:$0xff] %v1547_v32  ;;  %371 = vst [vmem:[%s2019_s3 + $0x68] sm:$0xff] %v1547_v32 }
  0x39   : > { %372 = vst [vmem:[%s2019_s3 + $0x70] sm:$0xff] %v1547_v32  ;;  %373 = vst [vmem:[%s2019_s3 + $0x78] sm:$0xff] %v1547_v32 }
  0x3a PF: > { %v1451_v33 = vld [vmem:[%s1686_s7 + $0x40] sm:$0xff]   ;;  %v1454_v36 = vld [vmem:[%s1686_s7 + $0x48] sm:$0xff]   ;;  %v1457_v39 = vld [vmem:[%s1686_s7 + $0x50] sm:$0xff]   ;;  %p1289_p11 = scmp.ne.s32.totalorder %s1537_s14, 13 }
  0x3b   : > { %v1452_v34 = vld [vmem:[%s1686_s7] sm:$0xff]   ;;  %1296 = vmatprep.subr.bf16.mxu0 %v1451_v33  ;;  %v1455_v37 = vld [vmem:[%s1686_s7 + $0x8] sm:$0xff]   ;;  %v1458_v40 = vld [vmem:[%s1686_s7 + $0x10] sm:$0xff]  }
  0x3c   : > { %v1453_v35 = vld [vmem:[%s1686_s7 + $0x80] sm:$0xff]   ;;  %1297 = vmatpush3.bf16.msra.mxu0 %v1452_v34  ;;  %v1456_v38 = vld [vmem:[%s1686_s7 + $0x88] sm:$0xff]   ;;  %v1459_v41 = vld [vmem:[%s1686_s7 + $0x90] sm:$0xff]  }
  0x3d   : > { %1376 = vmatprep.subr.bf16.mxu1 %v1453_v35  ;;  %1298 = vmatprep.subr.bf16.mxu0 %v1454_v36  ;;  %v1460_v42 = vld [vmem:[%s1686_s7 + $0x58] sm:$0xff]   ;;  %v1463_v45 = vld [vmem:[%s1686_s7 + $0x60] sm:$0xff]   ;;  %v1466_v48 = vld [vmem:[%s1686_s7 + $0x68] sm:$0xff]  }
  0x3e   : > { %1377 = vmatpush3.bf16.msra.mxu1 %v1453_v35  ;;  %v1461_v43 = vld [vmem:[%s1686_s7 + $0x18] sm:$0xff]   ;;  %v1465_v46 = vld [vmem:[%s1686_s7 + $0xa0] sm:$0xff]   ;;  %v1468_v49 = vld [vmem:[%s1686_s7 + $0xa8] sm:$0xff]  }
  0x3f   : > { %1378 = vmatprep.subr.bf16.mxu1 %v1456_v38  ;;  %v1462_v44 = vld [vmem:[%s1686_s7 + $0x98] sm:$0xff]   ;;  %v1464_v47 = vld [vmem:[%s1686_s7 + $0x20] sm:$0xff]   ;;  %v1467_v50 = vld [vmem:[%s1686_s7 + $0x28] sm:$0xff]  }
  0x40   : > { %1299 = vmatpush3.bf16.msra.mxu0 %v1455_v37  ;;  %v1469_v51 = vld [vmem:[%s1686_s7 + $0x70] sm:$0xff]   ;;  %v1472_v54 = vld [vmem:[%s1686_s7 + $0x78] sm:$0xff]   ;;  %v1475_v59 = vld [vmem:[%s1688_s8] ss:$12 sps:$4 sm:$0xff]  }
  0x41   : > { %1300 = vmatprep.subr.bf16.mxu0 %v1457_v39  ;;  %v1470_v52 = vld [vmem:[%s1686_s7 + $0x30] sm:$0xff]   ;;  %v1474_v55 = vld [vmem:[%s1686_s7 + $0xb8] sm:$0xff]   ;;  %v1479_v61 = vld [vmem:[%s1688_s8 + $0x20] ss:$12 sps:$4 sm:$0xff]  }
  0x42   : > { %1379 = vmatpush3.bf16.msra.mxu1 %v1456_v38  ;;  %v1471_v53 = vld [vmem:[%s1686_s7 + $0xb0] sm:$0xff]   ;;  %v1473_v58 = vld [vmem:[%s1686_s7 + $0x38] sm:$0xff]   ;;  %v1495_v5 = vld [vmem:[%s1688_s8 + $0x80] ss:$12 sps:$4 sm:$0xff]  }
  0x43   : > { %1380 = vmatprep.subr.bf16.mxu1 %v1459_v41  ;;  %v1477_v56 = vld [vmem:[%s1688_s8 + $0x4] ss:$12 sps:$4 sm:$0xff]   ;;  %v1478_v57 = vld [vmem:[%s1688_s8 + $0x8] ss:$12 sps:$4 sm:$0xff]   ;;  %v1488_v4 = vld [vmem:[%s1688_s8 + $0x4c] ss:$12 sps:$4 sm:$0xff]  }
  0x44   : > { %1301 = vmatpush3.bf16.msra.mxu0 %v1458_v40  ;;  %774 = vmatprep.mubr.bf16.mxu0 %v1477_v56  ;;  %v1480_v60 = vld [vmem:[%s1688_s8 + $0x1c] ss:$12 sps:$4 sm:$0xff]   ;;  %v1486_v62 = vld [vmem:[%s1688_s8 + $0x38] ss:$12 sps:$4 sm:$0xff]   ;;  %v1483_v0 = vld [vmem:[%s1688_s8 + $0x34] ss:$12 sps:$4 sm:$0xff]  }
  0x45   : > { %1302 = vmatprep.subr.bf16.mxu0 %v1460_v42  ;;  %1392 = vmatprep.mubr.bf16.mxu1 %v1478_v57  ;;  %v1482_v63 = vld [vmem:[%s1688_s8 + $0x18] ss:$12 sps:$4 sm:$0xff]   ;;  %v1487_v1 = vld [vmem:[%s1688_s8 + $0x50] ss:$12 sps:$4 sm:$0xff]   ;;  %v1494_v2 = vld [vmem:[%s1688_s8 + $0x68] ss:$12 sps:$4 sm:$0xff]  }
  0x46   : > { %1381 = vmatpush3.bf16.msra.mxu1 %v1459_v41  ;;  %v1485_v3 = vld [vmem:[%s1688_s8 + $0x30] ss:$12 sps:$4 sm:$0xff]   ;;  %v1502_v6 = vld [vmem:[%s1688_s8 + $0x98] ss:$12 sps:$4 sm:$0xff]   ;;  %v1490_v7 = vld [vmem:[%s1688_s8 + $0x48] ss:$12 sps:$4 sm:$0xff]  }
  0x47   : > { %1382 = vmatprep.subr.bf16.mxu1 %v1462_v44  ;;  %v1491_v8 = vld [vmem:[%s1688_s8 + $0x64] ss:$12 sps:$4 sm:$0xff]   ;;  %v1493_v10 = vld [vmem:[%s1688_s8 + $0x60] ss:$12 sps:$4 sm:$0xff]   ;;  %v1496_v11 = vld [vmem:[%s1688_s8 + $0x7c] ss:$12 sps:$4 sm:$0xff]  }
  0x48   : > { %1303 = vmatpush3.bf16.msra.mxu0 %v1461_v43  ;;  %v1503_v9 = vld [vmem:[%s1688_s8 + $0xb0] ss:$12 sps:$4 sm:$0xff]   ;;  %v1498_v12 = vld [vmem:[%s1688_s8 + $0x78] ss:$12 sps:$4 sm:$0xff]   ;;  %v1499_v13 = vld [vmem:[%s1688_s8 + $0x94] ss:$12 sps:$4 sm:$0xff]  }
  0x49   : > { %1304 = vmatprep.subr.bf16.mxu0 %v1463_v45  ;;  %v1501_v14 = vld [vmem:[%s1688_s8 + $0x90] ss:$12 sps:$4 sm:$0xff]   ;;  %v1504_v15 = vld [vmem:[%s1688_s8 + $0xac] ss:$12 sps:$4 sm:$0xff]   ;;  %v1506_v16 = vld [vmem:[%s1688_s8 + $0xa8] ss:$12 sps:$4 sm:$0xff]  }
  0x4a   : > { %1383 = vmatpush3.bf16.msra.mxu1 %v1462_v44  ;;  %v374_v23 = vld [vmem:[%s2019_s3] sm:$0xff]  ;;  %v375_v28 = vld [vmem:[%s2019_s3 + $0x8] sm:$0xff]  ;;  %v376_v38 = vld [vmem:[%s2019_s3 + $0x10] sm:$0xff] }
  0x4b   : > { %1384 = vmatprep.subr.bf16.mxu1 %v1465_v46  ;;  %v377_v44 = vld [vmem:[%s2019_s3 + $0x18] sm:$0xff] }
  0x4c   : > { %1305 = vmatpush3.bf16.msra.mxu0 %v1464_v47 }
  0x4d   : > { %1306 = vmatprep.subr.bf16.mxu0 %v1466_v48 }
  0x4e   : > { %1385 = vmatpush3.bf16.msra.mxu1 %v1465_v46 }
  0x4f   : > { %1386 = vmatprep.subr.bf16.mxu1 %v1468_v49 }
  0x50   : > { %1307 = vmatpush3.bf16.msra.mxu0 %v1467_v50 }
  0x51   : > { %1308 = vmatprep.subr.bf16.mxu0 %v1469_v51 }
  0x52   : > { %1387 = vmatpush3.bf16.msra.mxu1 %v1468_v49 }
  0x53   : > { %1388 = vmatprep.subr.bf16.mxu1 %v1471_v53 }
  0x54   : > { %1309 = vmatpush3.bf16.msra.mxu0 %v1470_v52 }
  0x55   : > { %1310 = vmatprep.subr.bf16.mxu0 %v1472_v54 }
  0x56   : > { %1389 = vmatpush3.bf16.msra.mxu1 %v1471_v53 }
  0x57   : > { %1390 = vmatprep.subr.bf16.mxu1 %v1474_v55 }
  0x58   : > { %1311 = vmatpush3.bf16.msra.mxu0 %v1473_v58 }
  0x5a   : > { %1391 = vmatpush3.bf16.msra.mxu1 %v1474_v55  ;;  %v378_v55 = vld [vmem:[%s2019_s3 + $0x20] sm:$0xff] }
  0x5b   : > { %775 = vmatmul.mubr.bf16.vlgmr.msra.gmra.mrb[0].mxu0 %v1475_v59 }
  0x5c   : > { %782 = vmatprep.mubr.bf16.mxu0 %v1480_v60  ;;  %v379_v60 = vld [vmem:[%s2019_s3 + $0x28] sm:$0xff] }
  0x5d   : > { %1393 = vmatmul.mubr.bf16.vlgmr.msra.gmra.mrb[0].mxu1 %v1479_v61 }
  0x5e   : > { %1396 = vmatprep.mubr.bf16.mxu1 %v1486_v62 }
  0x63   : > { %783 = vmatmul.mubr.bf16.gmra.mrb[4].mxu0 %v1482_v63 }
  0x64   : > { %790 = vmatprep.mubr.bf16.mxu0 %v1483_v0 }
  0x65   : > { %1397 = vmatmul.mubr.bf16.gmra.mrb[4].mxu1 %v1487_v1 }
  0x66   : > { %1400 = vmatprep.mubr.bf16.mxu1 %v1494_v2 }
  0x6b   : > { %791 = vmatmul.mubr.bf16.gmra.mrb[8].mxu0 %v1485_v3 }
  0x6c   : > { %798 = vmatprep.mubr.bf16.mxu0 %v1488_v4 }
  0x6d   : > { %1401 = vmatmul.mubr.bf16.gmra.mrb[8].mxu1 %v1495_v5 }
  0x6e   : > { %1404 = vmatprep.mubr.bf16.mxu1 %v1502_v6  ;;  %v380_v6 = vld [vmem:[%s2019_s3 + $0x30] sm:$0xff] }
  0x73   : > { %799 = vmatmul.mubr.bf16.gmra.mrb[12].mxu0 %v1490_v7 }
  0x74   : > { %806 = vmatprep.mubr.bf16.mxu0 %v1491_v8 }
  0x75   : > { %1405 = vmatmul.mubr.bf16.gmra.mrb[12].mxu1 %v1503_v9 }
  0x7b   : > { %807 = vmatmul.mubr.bf16.gmra.mrb[16].mxu0 %v1493_v10 }
  0x7c   : > { %814 = vmatprep.mubr.bf16.mxu0 %v1496_v11 }
  0x83   : > { %815 = vmatmul.mubr.bf16.gmra.mrb[20].mxu0 %v1498_v12  ;;  %v381_v12 = vld [vmem:[%s2019_s3 + $0x38] sm:$0xff] }
  0x84   : > { %822 = vmatprep.mubr.bf16.mxu0 %v1499_v13 }
  0x8b   : > { %823 = vmatmul.mubr.bf16.gmra.mrb[24].mxu0 %v1501_v14 }
  0x8c   : > { %830 = vmatprep.mubr.bf16.mxu0 %v1504_v15 }
  0x93   : > { %831 = vmatmul.mubr.bf16.gmra.mrb[28].mxu0 %v1506_v16 }
 0x12e   : > { %v1312_v17 = vpop.f32.mrb[0].mxu0 }
 0x12f   : > { %v1313_v18 = vpop.f32.mrb[1].mxu0 }
 0x130   : > { %v1314_v19 = vadd.f32 %v1313_v18, %v1312_v17  ;;  %v1315_v20 = vpop.f32.mrb[2].mxu0  ;;  %v1394_v21 = vpop.f32.mrb[0].mxu1 }
 0x131   : > { %v1316_v22 = vpop.f32.mrb[3].mxu0  ;;  %v873_v24 = vpop.f32.mrb[1].mxu1 }
 0x132   : > { %v1317_v25 = vadd.f32 %v1316_v22, %v1315_v20  ;;  %v874_v26 = vadd.f32 %v1314_v19, %v873_v24  ;;  %v1395_v27 = vpop.f32.mrb[2].mxu1  ;;  %v382_v22 = vld [vmem:[%s2019_s3 + $0x40] sm:$0xff] }
 0x133   : > { %v876_v29 = vpop.f32.mrb[3].mxu1 }
 0x134   : > { %v936_v30 = vadd.f32 %v874_v26, %v374_v23  ;;  %v877_v31 = vadd.f32 %v1317_v25, %v876_v29  ;;  %v383_v25 = vld [vmem:[%s2019_s3 + $0x48] sm:$0xff] }
 0x136   : > { %952 = vst [vmem:[%s2019_s3] sm:$0xff] %v936_v30  ;;  %v937_v32 = vadd.f32 %v877_v31, %v375_v28  ;;  %v1318_v33 = vpop.f32.mrb[4].mxu0 }
 0x137   : > { %v1319_v34 = vpop.f32.mrb[5].mxu0 }
 0x138   : > { %953 = vst [vmem:[%s2019_s3 + $0x8] sm:$0xff] %v937_v32  ;;  %v1320_v35 = vadd.f32 %v1319_v34, %v1318_v33  ;;  %v1321_v36 = vpop.f32.mrb[6].mxu0  ;;  %v1398_v37 = vpop.f32.mrb[4].mxu1  ;;  %v384_v33 = vld [vmem:[%s2019_s3 + $0x50] sm:$0xff] }
 0x139   : > { %v1322_v39 = vpop.f32.mrb[7].mxu0  ;;  %v889_v40 = vpop.f32.mrb[5].mxu1 }
 0x13a   : > { %v882_v41 = vadd.f32 %v1394_v21, %v1320_v35  ;;  %v1323_v42 = vadd.f32 %v1322_v39, %v1321_v36  ;;  %v1399_v43 = vpop.f32.mrb[6].mxu1 }
 0x13b   : > { %v892_v45 = vpop.f32.mrb[7].mxu1 }
 0x13c   : > { %v938_v46 = vadd.f32 %v882_v41, %v376_v38  ;;  %v885_v47 = vadd.f32 %v1395_v27, %v1323_v42 }
 0x13e   : > { %954 = vst [vmem:[%s2019_s3 + $0x10] sm:$0xff] %v938_v46  ;;  %v939_v48 = vadd.f32 %v885_v47, %v377_v44  ;;  %v1324_v49 = vpop.f32.mrb[8].mxu0  ;;  %v386_v46 = vld [vmem:[%s2019_s3 + $0x60] sm:$0xff] }
 0x13f   : > { %v1325_v50 = vpop.f32.mrb[9].mxu0 }
 0x140   : > { %955 = vst [vmem:[%s2019_s3 + $0x18] sm:$0xff] %v939_v48  ;;  %v1326_v51 = vadd.f32 %v1325_v50, %v1324_v49  ;;  %v1327_v52 = vpop.f32.mrb[10].mxu0  ;;  %v1402_v53 = vpop.f32.mrb[8].mxu1  ;;  %v387_v49 = vld [vmem:[%s2019_s3 + $0x68] sm:$0xff] }
 0x141   : > { %v1328_v54 = vpop.f32.mrb[11].mxu0  ;;  %v905_v56 = vpop.f32.mrb[9].mxu1 }
 0x142   : > { %v1329_v57 = vadd.f32 %v1328_v54, %v1327_v52  ;;  %v890_v58 = vadd.f32 %v1326_v51, %v889_v40  ;;  %v1403_v59 = vpop.f32.mrb[10].mxu1 }
 0x143   : > { %v908_v61 = vpop.f32.mrb[11].mxu1 }
 0x144   : > { %v940_v62 = vadd.f32 %v890_v58, %v378_v55  ;;  %v893_v63 = vadd.f32 %v1329_v57, %v892_v45  ;;  %v388_v57 = vld [vmem:[%s2019_s3 + $0x70] sm:$0xff] }
 0x146   : > { %956 = vst [vmem:[%s2019_s3 + $0x20] sm:$0xff] %v940_v62  ;;  %v941_v0 = vadd.f32 %v893_v63, %v379_v60  ;;  %v1330_v1 = vpop.f32.mrb[12].mxu0 }
 0x147   : > { %v1331_v2 = vpop.f32.mrb[13].mxu0 }
 0x148   : > { %957 = vst [vmem:[%s2019_s3 + $0x28] sm:$0xff] %v941_v0  ;;  %v1332_v3 = vadd.f32 %v1331_v2, %v1330_v1  ;;  %v1333_v4 = vpop.f32.mrb[14].mxu0  ;;  %v1406_v5 = vpop.f32.mrb[12].mxu1  ;;  %v972_v1 = vld [vmem:[%s2019_s3] sm:$0xff] (!%p1289_p11) }
 0x149   : > { %v1334_v7 = vpop.f32.mrb[15].mxu0  ;;  %v921_v8 = vpop.f32.mrb[13].mxu1  ;;  %v1890_v2 = vld [vmem:[%s2018_s2] ss:$0 sm:$0xff] (!%p1289_p11) }
 0x14a   : > { %v898_v9 = vadd.f32 %v1398_v37, %v1332_v3  ;;  %v1335_v10 = vadd.f32 %v1334_v7, %v1333_v4  ;;  %v1407_v11 = vpop.f32.mrb[14].mxu1  ;;  %v385_v37 = vld [vmem:[%s2019_s3 + $0x58] sm:$0xff]  ;;  %v973_v3 = vld [vmem:[%s2019_s3 + $0x8] sm:$0xff] (!%p1289_p11)  ;;  %v995_v4 = vadd.f32 (!%p1289_p11), %v1890_v2, %v972_v1 }
 0x14b   : > { %v924_v13 = vpop.f32.mrb[15].mxu1  ;;  %v975_v7 = vld [vmem:[%s2019_s3 + $0x18] sm:$0xff] (!%p1289_p11) }
 0x14c   : > { %v942_v14 = vadd.f32 %v898_v9, %v380_v6  ;;  %v901_v15 = vadd.f32 %v1399_v43, %v1335_v10  ;;  %v974_v6 = vld [vmem:[%s2019_s3 + $0x10] sm:$0xff] (!%p1289_p11)  ;;  %v998_v10 = vadd.f32 (!%p1289_p11), %v1890_v2, %v975_v7  ;;  %vm1011_vm0 = vcmp.ge.f32.partialorder (!%p1289_p11), %v995_v4, 0.0 }
 0x14d   : > { %v997_v9 = vadd.f32 (!%p1289_p11), %v1890_v2, %v974_v6 }
 0x14e   : > { %958 = vst [vmem:[%s2019_s3 + $0x30] sm:$0xff] %v942_v14  ;;  %v943_v16 = vadd.f32 %v901_v15, %v381_v12  ;;  %v1336_v17 = vpop.f32.mrb[16].mxu0  ;;  %v1027_v15 = vmul.f32 (!%p1289_p11), 0.1, %v995_v4  ;;  %vm1014_vm3 = vcmp.ge.f32.partialorder (!%p1289_p11), %v998_v10, 0.0 }
 0x14f   : > { %v1337_v18 = vpop.f32.mrb[17].mxu0  ;;  %v977_v12 = vld [vmem:[%s2019_s3 + $0x28] sm:$0xff] (!%p1289_p11)  ;;  %vm1013_vm2 = vcmp.ge.f32.partialorder (!%p1289_p11), %v997_v9, 0.0 }
 0x150   : > { %959 = vst [vmem:[%s2019_s3 + $0x38] sm:$0xff] %v943_v16  ;;  %v1338_v19 = vadd.f32 %v1337_v18, %v1336_v17  ;;  %v1339_v20 = vpop.f32.mrb[18].mxu0  ;;  %v1029_v17 = vmul.f32 (!%p1289_p11), 0.1, %v997_v9  ;;  %v1030_v18 = vmul.f32 (!%p1289_p11), 0.1, %v998_v10 }
 0x151   : > { %v1340_v21 = vpop.f32.mrb[19].mxu0 }
 0x152   : > { %v1341_v23 = vadd.f32 %v1340_v21, %v1339_v20  ;;  %v906_v24 = vadd.f32 %v1338_v19, %v905_v56  ;;  %v1043_v19 = vsel (!%p1289_p11), %vm1011_vm0, %v995_v4, %v1027_v15 }
 0x153   : > { %1059 = vst [vmem:[%s2019_s3] sm:$0xff] (!%p1289_p11), %v1043_v19 }
 0x154   : > { %v944_v26 = vadd.f32 %v906_v24, %v382_v22  ;;  %v909_v27 = vadd.f32 %v1341_v23, %v908_v61  ;;  %v389_v61 = vld [vmem:[%s2019_s3 + $0x78] sm:$0xff]  ;;  %v1045_v24 = vsel (!%p1289_p11), %vm1013_vm2, %v997_v9, %v1029_v17 }
 0x155   : > { %1061 = vst [vmem:[%s2019_s3 + $0x10] sm:$0xff] (!%p1289_p11), %v1045_v24 }
 0x156   : > { %960 = vst [vmem:[%s2019_s3 + $0x40] sm:$0xff] %v944_v26  ;;  %v945_v28 = vadd.f32 %v909_v27, %v383_v25  ;;  %v1342_v29 = vpop.f32.mrb[20].mxu0  ;;  %v1046_v25 = vsel (!%p1289_p11), %vm1014_vm3, %v998_v10, %v1030_v18  ;;  %v1000_v26 = vadd.f32 (!%p1289_p11), %v1890_v2, %v977_v12 }
 0x157   : > { %v1343_v30 = vpop.f32.mrb[21].mxu0  ;;  %v979_v14 = vld [vmem:[%s2019_s3 + $0x38] sm:$0xff] (!%p1289_p11)  ;;  %1062 = vst [vmem:[%s2019_s3 + $0x18] sm:$0xff] (!%p1289_p11), %v1046_v25 }
 0x158   : > { %961 = vst [vmem:[%s2019_s3 + $0x48] sm:$0xff] %v945_v28  ;;  %v1344_v31 = vadd.f32 %v1343_v30, %v1342_v29  ;;  %v1345_v32 = vpop.f32.mrb[22].mxu0  ;;  %vm1016_vm5 = vcmp.ge.f32.partialorder (!%p1289_p11), %v1000_v26, 0.0 }
 0x159   : > { %v1346_v34 = vpop.f32.mrb[23].mxu0 }
 0x15a   : > { %v914_v35 = vadd.f32 %v1402_v53, %v1344_v31  ;;  %v1347_v36 = vadd.f32 %v1346_v34, %v1345_v32  ;;  %v1002_v31 = vadd.f32 (!%p1289_p11), %v1890_v2, %v979_v14 }
 0x15c   : > { %v946_v38 = vadd.f32 %v914_v35, %v384_v33  ;;  %v917_v39 = vadd.f32 %v1403_v59, %v1347_v36  ;;  %vm1018_vm7 = vcmp.ge.f32.partialorder (!%p1289_p11), %v1002_v31, 0.0 }
 0x15d   : > { %v980_v22 = vld [vmem:[%s2019_s3 + $0x40] sm:$0xff] (!%p1289_p11) }
 0x15e   : > { %962 = vst [vmem:[%s2019_s3 + $0x50] sm:$0xff] %v946_v38  ;;  %v947_v40 = vadd.f32 %v917_v39, %v385_v37  ;;  %v1348_v41 = vpop.f32.mrb[24].mxu0  ;;  %v1003_v32 = vadd.f32 (!%p1289_p11), %v1890_v2, %v980_v22  ;;  %v1032_v37 = vmul.f32 (!%p1289_p11), 0.1, %v1000_v26  ;;  %v1034_v39 = vmul.f32 (!%p1289_p11), 0.1, %v1002_v31 }
 0x15f   : > { %v1349_v42 = vpop.f32.mrb[25].mxu0  ;;  %v981_v23 = vld [vmem:[%s2019_s3 + $0x48] sm:$0xff] (!%p1289_p11) }
 0x160   : > { %963 = vst [vmem:[%s2019_s3 + $0x58] sm:$0xff] %v947_v40  ;;  %v1350_v43 = vadd.f32 %v1349_v42, %v1348_v41  ;;  %v1351_v44 = vpop.f32.mrb[26].mxu0  ;;  %v1004_v33 = vadd.f32 (!%p1289_p11), %v1890_v2, %v981_v23  ;;  %vm1019_vm8 = vcmp.ge.f32.partialorder (!%p1289_p11), %v1003_v32, 0.0  ;;  %v1035_v40 = vmul.f32 (!%p1289_p11), 0.1, %v1003_v32 }
 0x161   : > { %v1352_v45 = vpop.f32.mrb[27].mxu0  ;;  %v1048_v41 = vsel (!%p1289_p11), %vm1016_vm5, %v1000_v26, %v1032_v37 }
 0x162   : > { %v1353_v47 = vadd.f32 %v1352_v45, %v1351_v44  ;;  %v922_v48 = vadd.f32 %v1350_v43, %v921_v8  ;;  %v976_v8 = vld [vmem:[%s2019_s3 + $0x20] sm:$0xff] (!%p1289_p11)  ;;  %vm1020_vm9 = vcmp.ge.f32.partialorder (!%p1289_p11), %v1004_v33, 0.0  ;;  %v1036_v43 = vmul.f32 (!%p1289_p11), 0.1, %v1004_v33  ;;  %1064 = vst [vmem:[%s2019_s3 + $0x28] sm:$0xff] (!%p1289_p11), %v1048_v41 }
 0x163   : > { %v1050_v44 = vsel (!%p1289_p11), %vm1018_vm7, %v1002_v31, %v1034_v39  ;;  %v1051_v45 = vsel (!%p1289_p11), %vm1019_vm8, %v1003_v32, %v1035_v40 }
 0x164   : > { %v948_v50 = vadd.f32 %v922_v48, %v386_v46  ;;  %v925_v51 = vadd.f32 %v1353_v47, %v924_v13  ;;  %v978_v13 = vld [vmem:[%s2019_s3 + $0x30] sm:$0xff] (!%p1289_p11)  ;;  %1066 = vst [vmem:[%s2019_s3 + $0x38] sm:$0xff] (!%p1289_p11), %v1050_v44  ;;  %1067 = vst [vmem:[%s2019_s3 + $0x40] sm:$0xff] (!%p1289_p11), %v1051_v45  ;;  %v1052_v48 = vsel (!%p1289_p11), %vm1020_vm9, %v1004_v33, %v1036_v43 }
 0x165   : > { %v1001_v27 = vadd.f32 (!%p1289_p11), %v1890_v2, %v978_v13  ;;  %v982_v28 = vld [vmem:[%s2019_s3 + $0x50] sm:$0xff] (!%p1289_p11)  ;;  %1068 = vst [vmem:[%s2019_s3 + $0x48] sm:$0xff] (!%p1289_p11), %v1052_v48 }
 0x166   : > { %964 = vst [vmem:[%s2019_s3 + $0x60] sm:$0xff] %v948_v50  ;;  %v949_v52 = vadd.f32 %v925_v51, %v387_v49  ;;  %v1354_v53 = vpop.f32.mrb[28].mxu0  ;;  %v1005_v46 = vadd.f32 (!%p1289_p11), %v1890_v2, %v982_v28 }
 0x167   : > { %v1355_v54 = vpop.f32.mrb[29].mxu0  ;;  %v983_v29 = vld [vmem:[%s2019_s3 + $0x58] sm:$0xff] (!%p1289_p11)  ;;  %vm1017_vm6 = vcmp.ge.f32.partialorder (!%p1289_p11), %v1001_v27, 0.0  ;;  %v1033_v38 = vmul.f32 (!%p1289_p11), 0.1, %v1001_v27 }
 0x168   : > { %965 = vst [vmem:[%s2019_s3 + $0x68] sm:$0xff] %v949_v52  ;;  %v1356_v55 = vadd.f32 %v1355_v54, %v1354_v53  ;;  %v1357_v56 = vpop.f32.mrb[30].mxu0  ;;  %v1006_v47 = vadd.f32 (!%p1289_p11), %v1890_v2, %v983_v29  ;;  %vm1021_vm10 = vcmp.ge.f32.partialorder (!%p1289_p11), %v1005_v46, 0.0  ;;  %v1037_v53 = vmul.f32 (!%p1289_p11), 0.1, %v1005_v46 }
 0x169   : > { %v1358_v58 = vpop.f32.mrb[31].mxu0  ;;  %v1049_v42 = vsel (!%p1289_p11), %vm1017_vm6, %v1001_v27, %v1033_v38 }
 0x16a   : > { %v930_v59 = vadd.f32 %v1406_v5, %v1356_v55  ;;  %v1359_v60 = vadd.f32 %v1358_v58, %v1357_v56  ;;  %971 = sbr.rel (%p1289_p11) target bundleno = 382 (0x17e), region = 66  ;;  %v996_v5 = vadd.f32 (!%p1289_p11), %v1890_v2, %v973_v3  ;;  %1065 = vst [vmem:[%s2019_s3 + $0x30] sm:$0xff] (!%p1289_p11), %v1049_v42  ;;  %vm1022_vm11 = vcmp.ge.f32.partialorder (!%p1289_p11), %v1006_v47, 0.0 }
 0x16b   : > { %v1038_v54 = vmul.f32 (!%p1289_p11), 0.1, %v1006_v47 }
 0x16c   : > { %v950_v62 = vadd.f32 %v930_v59, %v388_v57  ;;  %v933_v63 = vadd.f32 %v1407_v11, %v1359_v60  ;;  %v999_v11 = vadd.f32 (!%p1289_p11), %v1890_v2, %v976_v8  ;;  %vm1012_vm1 = vcmp.ge.f32.partialorder (!%p1289_p11), %v996_v5, 0.0 }
 0x16d   : > { %v1028_v16 = vmul.f32 (!%p1289_p11), 0.1, %v996_v5  ;;  %v984_v34 = vld [vmem:[%s2019_s3 + $0x60] sm:$0xff] (!%p1289_p11)  ;;  %v1053_v57 = vsel (!%p1289_p11), %vm1021_vm10, %v1005_v46, %v1037_v53  ;;  %v1054_v58 = vsel (!%p1289_p11), %vm1022_vm11, %v1006_v47, %v1038_v54 }
 0x16e   : > { %966 = vst [vmem:[%s2019_s3 + $0x70] sm:$0xff] %v950_v62  ;;  %v951_v0 = vadd.f32 %v933_v63, %v389_v61  ;;  %vm1015_vm4 = vcmp.ge.f32.partialorder (!%p1289_p11), %v999_v11, 0.0  ;;  %v1031_v21 = vmul.f32 (!%p1289_p11), 0.1, %v999_v11  ;;  %v1007_v49 = vadd.f32 (!%p1289_p11), %v1890_v2, %v984_v34  ;;  %1069 = vst [vmem:[%s2019_s3 + $0x50] sm:$0xff] (!%p1289_p11), %v1053_v57 }
 0x16f   : > { %v1044_v20 = vsel (!%p1289_p11), %vm1012_vm1, %v996_v5, %v1028_v16  ;;  %v985_v35 = vld [vmem:[%s2019_s3 + $0x68] sm:$0xff] (!%p1289_p11)  ;;  %1070 = vst [vmem:[%s2019_s3 + $0x58] sm:$0xff] (!%p1289_p11), %v1054_v58 }
 0x170   : > { %967 = vst [vmem:[%s2019_s3 + $0x78] sm:$0xff] %v951_v0  ;;  %1060 = vst [vmem:[%s2019_s3 + $0x8] sm:$0xff] (!%p1289_p11), %v1044_v20  ;;  %v1047_v30 = vsel (!%p1289_p11), %vm1015_vm4, %v999_v11, %v1031_v21  ;;  %v1008_v50 = vadd.f32 (!%p1289_p11), %v1890_v2, %v985_v35  ;;  %vm1023_vm12 = vcmp.ge.f32.partialorder (!%p1289_p11), %v1007_v49, 0.0  ;;  %v1039_v55 = vmul.f32 (!%p1289_p11), 0.1, %v1007_v49 }
 0x171   : > { %1063 = vst [vmem:[%s2019_s3 + $0x20] sm:$0xff] %v1047_v30 }
 0x172   : > { %vm1024_vm13 = vcmp.ge.f32.partialorder %v1008_v50, 0.0  ;;  %v1040_v56 = vmul.f32 0.1, %v1008_v50  ;;  %v1055_v60 = vsel %vm1023_vm12, %v1007_v49, %v1039_v55 }
 0x173   : > { %1071 = vst [vmem:[%s2019_s3 + $0x60] sm:$0xff] %v1055_v60 }
 0x174   : > { %v1056_v61 = vsel %vm1024_vm13, %v1008_v50, %v1040_v56 }
 0x175   : > { %v986_v36 = vld [vmem:[%s2019_s3 + $0x70] sm:$0xff]  ;;  %1072 = vst [vmem:[%s2019_s3 + $0x68] sm:$0xff] %v1056_v61 }
 0x176   : > { %v1009_v51 = vadd.f32 %v1890_v2, %v986_v36 }
 0x177   : > { %v987_v52 = vld [vmem:[%s2019_s3 + $0x78] sm:$0xff] }
 0x178   : > { %vm1025_vm14 = vcmp.ge.f32.partialorder %v1009_v51, 0.0  ;;  %v1041_v59 = vmul.f32 0.1, %v1009_v51  ;;  %v1010_v62 = vadd.f32 %v1890_v2, %v987_v52 }
 0x17a   : > { %v1057_v63 = vsel %vm1025_vm14, %v1009_v51, %v1041_v59  ;;  %vm1026_vm15 = vcmp.ge.f32.partialorder %v1010_v62, 0.0  ;;  %v1042_v0 = vmul.f32 0.1, %v1010_v62 }
 0x17b   : > { %1073 = vst [vmem:[%s2019_s3 + $0x70] sm:$0xff] %v1057_v63 }
 0x17c   : > { %v1058_v1 = vsel %vm1026_vm15, %v1010_v62, %v1042_v0 }
 0x17d   : > { %1074 = vst [vmem:[%s2019_s3 + $0x78] sm:$0xff] %v1058_v1 }
 0x17e PF: > { %s13_s16 = sadd.s32 1, %s1545_s16   ;;  %s2020_s12 = smov %s1533_s13 }
 0x17f   : > { %p10_p12 = scmp.ge.s32.totalorder %s13_s16, 16   ;;  %s2021_s13 = smov %s1603_s20 }
 0x180   : > { %s2022_s14 = smov %s1541_s15  ;;  %s2023_s15 = smov %s2025_s17 }
 0x181   :  { %12 = sbr.rel (!%p10_p12) target bundleno = 3 (0x3), region = 113 }

// kernel: _lambda_.10
= control target key start
LH: loop header
LB: loop body
LE: loop exit
PB: predicated region body
PF: predicated region fallthrough
CT: control target
= control target key end

     0   :  { %s1269_s12 = smov 0   ;;  %s1271_s13 = smov 0   ;;  %s1477_s0 = inlined_call_operand.vmem [shape: bf16[2,64,2688], index: 0, kind: input, shape index: {}]   ;;  %s1478_s1 = inlined_call_operand.vmem [shape: bf16[2,2688,128], index: 1, kind: input, shape index: {}]   ;;  %s1479_s2 = inlined_call_operand.vmem [shape: f32[2,1,128], index: 2, kind: input, shape index: {}]   ;;  %s1480_s3 = inlined_call_operand.vmem [shape: f32[2,64,128], index: 3, kind: output, shape index: {}]  }
   0x1   :  { %s1273_s14 = smov 0   ;;  %s1275_s15 = smov 0  }
   0x2   :  { %s1277_s16 = smov 0   ;;  %s1279_s17 = smov 0  }
   0x3   :  { %s1281_s18 = smov 0  }
   0x4 LB: > { %s25_s19 = sadd.s32 1, %s1238_s16  ;;  %s32_s20 = sadd.s32 1, %s1242_s17  ;;  %s1246_s18 = sphi %s1281_s18, %s13_s18   ;;  %s1242_s17 = sphi %s1279_s17, %s1486_s17   ;;  %s1238_s16 = sphi %s1277_s16, %s1485_s16   ;;  %s1234_s15 = sphi %s1275_s15, %s1484_s15   ;;  %s1230_s14 = sphi %s1273_s14, %s1483_s14   ;;  %s1226_s13 = sphi %s1271_s13, %s1482_s13   ;;  %s1222_s12 = sphi %s1269_s12, %s1481_s12  }
   0x5   : > { %p26_p0 = scmp.ge.s32.totalorder %s25_s19, 7  ;;  %p50_p1 = scmp.ne.s32.totalorder %s1226_s13, %s1222_s12 }
   0x6   : > { %p51_p2 = scmp.eq.s32.totalorder %s1246_s18, 0  ;;  %s43_s24 = sadd.s32 1, %s1226_s13 }
   0x7   : > { %s1488_s19 = smov (%p26_p0, %s25_s19), 0  ;;  %s1490_s20 = smov (!%p26_p0, %s32_s20), %s1242_s17 }
   0x8   : > { %p52_p3 = por %p51_p2, %p50_p1  ;;  %p34_p4 = scmp.ge.s32.totalorder %s1490_s20, 2 }
   0x9   : > { %s39_s21 = ssub.s32 %s1238_s16, %s1488_s19  ;;  %p951_p6 = scmp.ge.s32.totalorder %s1246_s18, 14 }
   0xa   : > { %s1492_s20 = smov (%p34_p4, %s1490_s20), 0 }
   0xb   : > { %s36_s22 = ssub.s32 %s1242_s17, %s1492_s20  ;;  %158 = sbr.rel (%p951_p6) target bundleno = 36 (0x24), region = 16 }
   0xc   : > { %s40_s23 = sor.u32 %s39_s21, %s36_s22 }
   0xd   : > { %p41_p5 = scmp.eq.s32.totalorder %s40_s23, 0 }
   0xf   : > { %s1320_s25 = scalar_select %p41_p5, %s1226_s13, %s43_s24  }
  0x12   : > { %161 = sbr.rel (!%p52_p3) target bundleno = 36 (0x24), region = 20  ;;  %s163_s26 = sand.u32 (%p52_p3), 1, %s1226_s13  }
  0x13   : > { %s167_s27 = smul.u32 (%p52_p3), 3, %s1238_s16 }
  0x14   : > { %s1091_s28 = smul.u32 (%p52_p3), 96, %s163_s26 }
  0x15   : > { %s1092_s29 = smul.u32 (%p52_p3), 168, %s1242_s17 }
  0x16   : > { %s165_s8 = scalar_lea.vmem (%p52_p3), [#allocation2], %s1091_s28 }
  0x17   : > { %s171_s30 = sadd.s32 (%p52_p3), %s1092_s29, %s167_s27 }
  0x18   : > { %s952_s4 = sshll.u32 (%p52_p3), %s171_s30, 2 }
  0x19   : > { %s1329_s7 = scalar_lea.vmem %s1477_s0, %s952_s4 }
  0x1a   : > { %v188_v0 = vld [vmem:[%s1329_s7] sm:$0xff]  ;;  %v190_v1 = vld [vmem:[%s1329_s7 + $0x54] sm:$0xff]  ;;  %v192_v2 = vld [vmem:[%s1329_s7 + $0xa8] sm:$0xff] }
  0x1b   : > { %189 = vst [vmem:[%s165_s8] sm:$0xff] %v188_v0  ;;  %191 = vst [vmem:[%s165_s8 + $0xc] sm:$0xff] %v190_v1  ;;  %v194_v3 = vld [vmem:[%s1329_s7 + $0xfc] sm:$0xff]  ;;  %v196_v4 = vld [vmem:[%s1329_s7 + $0x150] sm:$0xff] }
  0x1c   : > { %193 = vst [vmem:[%s165_s8 + $0x18] sm:$0xff] %v192_v2  ;;  %v198_v5 = vld [vmem:[%s1329_s7 + $0x1a4] sm:$0xff]  ;;  %195 = vst [vmem:[%s165_s8 + $0x24] sm:$0xff] %v194_v3  ;;  %v200_v6 = vld [vmem:[%s1329_s7 + $0x1f8] sm:$0xff] }
  0x1d   : > { %197 = vst [vmem:[%s165_s8 + $0x30] sm:$0xff] %v196_v4  ;;  %199 = vst [vmem:[%s165_s8 + $0x3c] sm:$0xff] %v198_v5  ;;  %v202_v7 = vld [vmem:[%s1329_s7 + $0x24c] sm:$0xff]  ;;  %v953_v8 = vld [vmem:[%s1329_s7 + $0x8] sm:$0xf] }
  0x1e   : > { %201 = vst [vmem:[%s165_s8 + $0x48] sm:$0xff] %v200_v6  ;;  %203 = vst [vmem:[%s165_s8 + $0x54] sm:$0xff] %v202_v7  ;;  %v955_v9 = vld [vmem:[%s1329_s7 + $0x5c] sm:$0xf]  ;;  %v957_v10 = vld [vmem:[%s1329_s7 + $0xb0] sm:$0xf] }
  0x1f   : > { %954 = vst [vmem:[%s165_s8 + $0x8] sm:$0xf] %v953_v8  ;;  %v959_v11 = vld [vmem:[%s1329_s7 + $0x104] sm:$0xf]  ;;  %956 = vst [vmem:[%s165_s8 + $0x14] sm:$0xf] %v955_v9 }
  0x20   : > { %958 = vst [vmem:[%s165_s8 + $0x20] sm:$0xf] %v957_v10  ;;  %960 = vst [vmem:[%s165_s8 + $0x2c] sm:$0xf] %v959_v11  ;;  %v961_v12 = vld [vmem:[%s1329_s7 + $0x158] sm:$0xf] }
  0x21   : > { %v963_v13 = vld [vmem:[%s1329_s7 + $0x1ac] sm:$0xf]  ;;  %v965_v14 = vld [vmem:[%s1329_s7 + $0x200] sm:$0xf]  ;;  %962 = vst [vmem:[%s165_s8 + $0x38] sm:$0xf] %v961_v12 }
  0x22   : > { %964 = vst [vmem:[%s165_s8 + $0x44] sm:$0xf] %v963_v13  ;;  %966 = vst [vmem:[%s165_s8 + $0x50] sm:$0xf] %v965_v14  ;;  %v967_v15 = vld [vmem:[%s1329_s7 + $0x254] sm:$0xf] }
  0x23   : > { %968 = vst [vmem:[%s165_s8 + $0x5c] sm:$0xf] %v967_v15 }
  0x24 PF: > { %p969_p7 = scmp.ge.s32.totalorder %s1246_s18, 1  ;;  %p250_p8 = scmp.lt.s32.totalorder %s1246_s18, 15 }
  0x26   : > { %p251_p9 = pnand %p969_p7, %p250_p8 }
  0x27   : > { %s257_s9 = sand.u32 (!%p251_p9), 1, %s1222_s12   ;;  %s298_s10 = smul.u32 (!%p251_p9), 48, %s1230_s14 }
  0x28   : > { %254 = sbr.rel (%p251_p9) target bundleno = 348 (0x15c), region = 54  ;;  %p299_p10 = scmp.lt.s32.totalorder (!%p251_p9), %s1234_s15, 1 }
  0x29   : > { %s1093_s11 = smul.u32 (!%p251_p9), 96, %s257_s9  ;;  %p301_p11 = scmp.lt.s32.totalorder (!%p251_p9), %s298_s10, 335 }
  0x2a   : > { %p973_p12 = scmp.ne.s32.totalorder (!%p251_p9), %s1230_s14, 0 }
  0x2b   : > { %s1371_s7 = scalar_lea.vmem (!%p251_p9), [#allocation2], %s1093_s11 }
  0x2f   : > { %s1494_s15 = smov (!%p299_p10, %s1234_s15), 1  ;;  %s1496_s10 = smov (!%p301_p11, %s298_s10), 335 }
  0x30   : > { %s1094_s21 = smul.u32 336, %s1494_s15  ;;  %s310_s24 = scalar_lea.vmem %s1479_s2, %s1494_s15  ;;  %v1248_v16 = vmov (!%p973_p12), 0.0  }
  0x31   : > { %s1014_s26 = sshll.u32 %s1494_s15, 6  ;;  %325 = sbr.rel (%p973_p12) target bundleno = 56 (0x38), region = 62 }
  0x32   : > { %s304_s27 = sadd.s32 %s1094_s21, %s1496_s10  ;;  %s1364_s12 = scalar_lea.vmem %s1480_s3, %s1014_s26 }
  0x33   : > { %s970_s30 = sshll.u32 %s304_s27, 2  ;;  %326 = vst [vmem:[%s1364_s12] sm:$0xff] (!%p973_p12), %v1248_v16  ;;  %327 = vst [vmem:[%s1364_s12 + $0x8] sm:$0xff] (!%p973_p12), %v1248_v16 }
  0x34   : > { %s1369_s6 = scalar_lea.vmem %s1478_s1, %s970_s30  ;;  %328 = vst [vmem:[%s1364_s12 + $0x10] sm:$0xff] (!%p973_p12), %v1248_v16  ;;  %329 = vst [vmem:[%s1364_s12 + $0x18] sm:$0xff] (!%p973_p12), %v1248_v16 }
  0x35   : > { %330 = vst [vmem:[%s1364_s12 + $0x20] sm:$0xff] (!%p973_p12), %v1248_v16  ;;  %331 = vst [vmem:[%s1364_s12 + $0x28] sm:$0xff] (!%p973_p12), %v1248_v16 }
  0x36   : > { %332 = vst [vmem:[%s1364_s12 + $0x30] sm:$0xff] (!%p973_p12), %v1248_v16  ;;  %333 = vst [vmem:[%s1364_s12 + $0x38] sm:$0xff] (!%p973_p12), %v1248_v16 }
  0x38 PF: > { %v1152_v17 = vld [vmem:[%s1369_s6 + $0x40] sm:$0xff]   ;;  %v1155_v20 = vld [vmem:[%s1369_s6 + $0x48] sm:$0xff]   ;;  %v1158_v23 = vld [vmem:[%s1369_s6 + $0x50] sm:$0xff]   ;;  %p1010_p13 = scmp.ne.s32.totalorder %s1230_s14, 6 }
  0x39   : > { %v1153_v18 = vld [vmem:[%s1369_s6] sm:$0xff]   ;;  %1015 = vmatprep.subr.bf16.mxu0 %v1152_v17  ;;  %v1156_v21 = vld [vmem:[%s1369_s6 + $0x8] sm:$0xff]   ;;  %v1159_v24 = vld [vmem:[%s1369_s6 + $0x10] sm:$0xff]  }
  0x3a   : > { %v1154_v19 = vld [vmem:[%s1369_s6 + $0x80] sm:$0xff]   ;;  %1016 = vmatpush3.bf16.msra.mxu0 %v1153_v18  ;;  %v1157_v22 = vld [vmem:[%s1369_s6 + $0x88] sm:$0xff]   ;;  %v1160_v25 = vld [vmem:[%s1369_s6 + $0x90] sm:$0xff]  }
  0x3b   : > { %1067 = vmatprep.subr.bf16.mxu1 %v1154_v19  ;;  %1017 = vmatprep.subr.bf16.mxu0 %v1155_v20  ;;  %v1161_v26 = vld [vmem:[%s1369_s6 + $0x58] sm:$0xff]   ;;  %v1164_v29 = vld [vmem:[%s1369_s6 + $0x60] sm:$0xff]   ;;  %v1167_v32 = vld [vmem:[%s1369_s6 + $0x68] sm:$0xff]  }
  0x3c   : > { %1068 = vmatpush3.bf16.msra.mxu1 %v1154_v19  ;;  %v1162_v27 = vld [vmem:[%s1369_s6 + $0x18] sm:$0xff]   ;;  %v1166_v30 = vld [vmem:[%s1369_s6 + $0xa0] sm:$0xff]   ;;  %v1169_v33 = vld [vmem:[%s1369_s6 + $0xa8] sm:$0xff]  }
  0x3d   : > { %1069 = vmatprep.subr.bf16.mxu1 %v1157_v22  ;;  %v1163_v28 = vld [vmem:[%s1369_s6 + $0x98] sm:$0xff]   ;;  %v1165_v31 = vld [vmem:[%s1369_s6 + $0x20] sm:$0xff]   ;;  %v1168_v34 = vld [vmem:[%s1369_s6 + $0x28] sm:$0xff]  }
  0x3e   : > { %1018 = vmatpush3.bf16.msra.mxu0 %v1156_v21  ;;  %v1170_v35 = vld [vmem:[%s1369_s6 + $0x70] sm:$0xff]   ;;  %v1173_v38 = vld [vmem:[%s1369_s6 + $0x78] sm:$0xff]   ;;  %v1176_v43 = vld [vmem:[%s1371_s7] ss:$12 sps:$4 sm:$0xff]  }
  0x3f   : > { %1019 = vmatprep.subr.bf16.mxu0 %v1158_v23  ;;  %v1171_v36 = vld [vmem:[%s1369_s6 + $0x30] sm:$0xff]   ;;  %v1175_v39 = vld [vmem:[%s1369_s6 + $0xb8] sm:$0xff]   ;;  %v1180_v45 = vld [vmem:[%s1371_s7 + $0x20] ss:$12 sps:$4 sm:$0xff]  }
  0x40   : > { %1070 = vmatpush3.bf16.msra.mxu1 %v1157_v22  ;;  %v1172_v37 = vld [vmem:[%s1369_s6 + $0xb0] sm:$0xff]   ;;  %v1174_v42 = vld [vmem:[%s1369_s6 + $0x38] sm:$0xff]   ;;  %v334_v59 = vld [vmem:[%s1364_s12] sm:$0xff] }
  0x41   : > { %1071 = vmatprep.subr.bf16.mxu1 %v1160_v25  ;;  %v1178_v40 = vld [vmem:[%s1371_s7 + $0x4] ss:$12 sps:$4 sm:$0xff]   ;;  %v1179_v41 = vld [vmem:[%s1371_s7 + $0x8] ss:$12 sps:$4 sm:$0xff]   ;;  %v1189_v51 = vld [vmem:[%s1371_s7 + $0x4c] ss:$12 sps:$4 sm:$0xff]  }
  0x42   : > { %1020 = vmatpush3.bf16.msra.mxu0 %v1159_v24  ;;  %646 = vmatprep.mubr.bf16.mxu0 %v1178_v40  ;;  %v1181_v44 = vld [vmem:[%s1371_s7 + $0x1c] ss:$12 sps:$4 sm:$0xff]   ;;  %v1187_v46 = vld [vmem:[%s1371_s7 + $0x38] ss:$12 sps:$4 sm:$0xff]   ;;  %v1184_v48 = vld [vmem:[%s1371_s7 + $0x34] ss:$12 sps:$4 sm:$0xff]  }
  0x43   : > { %1021 = vmatprep.subr.bf16.mxu0 %v1161_v26  ;;  %1083 = vmatprep.mubr.bf16.mxu1 %v1179_v41  ;;  %v1183_v47 = vld [vmem:[%s1371_s7 + $0x18] ss:$12 sps:$4 sm:$0xff]   ;;  %v1188_v49 = vld [vmem:[%s1371_s7 + $0x50] ss:$12 sps:$4 sm:$0xff]   ;;  %v1191_v52 = vld [vmem:[%s1371_s7 + $0x48] ss:$12 sps:$4 sm:$0xff]  }
  0x44   : > { %1072 = vmatpush3.bf16.msra.mxu1 %v1160_v25  ;;  %v1186_v50 = vld [vmem:[%s1371_s7 + $0x30] ss:$12 sps:$4 sm:$0xff]   ;;  %v335_v0 = vld [vmem:[%s1364_s12 + $0x8] sm:$0xff]  ;;  %v338_v26 = vld [vmem:[%s1364_s12 + $0x20] sm:$0xff] }
  0x45   : > { %1073 = vmatprep.subr.bf16.mxu1 %v1163_v28  ;;  %v336_v10 = vld [vmem:[%s1364_s12 + $0x10] sm:$0xff]  ;;  %v337_v16 = vld [vmem:[%s1364_s12 + $0x18] sm:$0xff] }
  0x46   : > { %1022 = vmatpush3.bf16.msra.mxu0 %v1162_v27  ;;  %v341_v41 = vld [vmem:[%s1364_s12 + $0x38] sm:$0xff] }
  0x47   : > { %1023 = vmatprep.subr.bf16.mxu0 %v1164_v29  ;;  %v339_v29 = vld [vmem:[%s1364_s12 + $0x28] sm:$0xff] }
  0x48   : > { %1074 = vmatpush3.bf16.msra.mxu1 %v1163_v28 }
  0x49   : > { %1075 = vmatprep.subr.bf16.mxu1 %v1166_v30 }
  0x4a   : > { %1024 = vmatpush3.bf16.msra.mxu0 %v1165_v31 }
  0x4b   : > { %1025 = vmatprep.subr.bf16.mxu0 %v1167_v32 }
  0x4c   : > { %1076 = vmatpush3.bf16.msra.mxu1 %v1166_v30 }
  0x4d   : > { %1077 = vmatprep.subr.bf16.mxu1 %v1169_v33 }
  0x4e   : > { %1026 = vmatpush3.bf16.msra.mxu0 %v1168_v34 }
  0x4f   : > { %1027 = vmatprep.subr.bf16.mxu0 %v1170_v35 }
  0x50   : > { %1078 = vmatpush3.bf16.msra.mxu1 %v1169_v33 }
  0x51   : > { %1079 = vmatprep.subr.bf16.mxu1 %v1172_v37 }
  0x52   : > { %1028 = vmatpush3.bf16.msra.mxu0 %v1171_v36 }
  0x53   : > { %1029 = vmatprep.subr.bf16.mxu0 %v1173_v38 }
  0x54   : > { %1080 = vmatpush3.bf16.msra.mxu1 %v1172_v37  ;;  %v340_v37 = vld [vmem:[%s1364_s12 + $0x30] sm:$0xff] }
  0x55   : > { %1081 = vmatprep.subr.bf16.mxu1 %v1175_v39 }
  0x56   : > { %1030 = vmatpush3.bf16.msra.mxu0 %v1174_v42 }
  0x58   : > { %1082 = vmatpush3.bf16.msra.mxu1 %v1175_v39 }
  0x59   : > { %647 = vmatmul.mubr.bf16.vlgmr.msra.gmra.mrb[0].mxu0 %v1176_v43 }
  0x5a   : > { %654 = vmatprep.mubr.bf16.mxu0 %v1181_v44 }
  0x5b   : > { %1084 = vmatmul.mubr.bf16.vlgmr.msra.gmra.mrb[0].mxu1 %v1180_v45 }
  0x5c   : > { %1087 = vmatprep.mubr.bf16.mxu1 %v1187_v46  ;;  %v1011_v46 = vld [vmem:[%s310_s24] ss:$0 sm:$0xff] (!%p1010_p13) }
  0x61   : > { %655 = vmatmul.mubr.bf16.gmra.mrb[4].mxu0 %v1183_v47 }
  0x62   : > { %662 = vmatprep.mubr.bf16.mxu0 %v1184_v48 }
  0x63   : > { %1088 = vmatmul.mubr.bf16.gmra.mrb[4].mxu1 %v1188_v49 }
  0x69   : > { %663 = vmatmul.mubr.bf16.gmra.mrb[8].mxu0 %v1186_v50 }
  0x6a   : > { %670 = vmatprep.mubr.bf16.mxu0 %v1189_v51 }
  0x71   : > { %671 = vmatmul.mubr.bf16.gmra.mrb[12].mxu0 %v1191_v52 }
 0x12c   : > { %v1031_v53 = vpop.f32.mrb[0].mxu0 }
 0x12d   : > { %v1032_v54 = vpop.f32.mrb[1].mxu0 }
 0x12e   : > { %v1033_v55 = vadd.f32 %v1032_v54, %v1031_v53  ;;  %v1034_v56 = vpop.f32.mrb[2].mxu0  ;;  %v1085_v57 = vpop.f32.mrb[0].mxu1 }
 0x12f   : > { %v1035_v58 = vpop.f32.mrb[3].mxu0  ;;  %v713_v60 = vpop.f32.mrb[1].mxu1 }
 0x130   : > { %v1036_v61 = vadd.f32 %v1035_v58, %v1034_v56  ;;  %v714_v62 = vadd.f32 %v1033_v55, %v713_v60  ;;  %v1086_v63 = vpop.f32.mrb[2].mxu1 }
 0x131   : > { %v716_v1 = vpop.f32.mrb[3].mxu1 }
 0x132   : > { %v744_v2 = vadd.f32 %v714_v62, %v334_v59  ;;  %v717_v3 = vadd.f32 %v1036_v61, %v716_v1 }
 0x134   : > { %752 = vst [vmem:[%s1364_s12] sm:$0xff] %v744_v2  ;;  %v745_v4 = vadd.f32 %v717_v3, %v335_v0  ;;  %v1037_v5 = vpop.f32.mrb[4].mxu0 }
 0x135   : > { %v1038_v6 = vpop.f32.mrb[5].mxu0 }
 0x136   : > { %753 = vst [vmem:[%s1364_s12 + $0x8] sm:$0xff] %v745_v4  ;;  %v1039_v7 = vadd.f32 %v1038_v6, %v1037_v5  ;;  %v1040_v8 = vpop.f32.mrb[6].mxu0  ;;  %v1089_v9 = vpop.f32.mrb[4].mxu1 }
 0x137   : > { %v1041_v11 = vpop.f32.mrb[7].mxu0  ;;  %v729_v12 = vpop.f32.mrb[5].mxu1 }
 0x138   : > { %v722_v13 = vadd.f32 %v1085_v57, %v1039_v7  ;;  %v1042_v14 = vadd.f32 %v1041_v11, %v1040_v8  ;;  %v1090_v15 = vpop.f32.mrb[6].mxu1 }
 0x139   : > { %v732_v17 = vpop.f32.mrb[7].mxu1 }
 0x13a   : > { %v746_v18 = vadd.f32 %v722_v13, %v336_v10  ;;  %v725_v19 = vadd.f32 %v1086_v63, %v1042_v14 }
 0x13b   : > { %v764_v45 = vld [vmem:[%s1364_s12] sm:$0xff] (!%p1010_p13) }
 0x13c   : > { %754 = vst [vmem:[%s1364_s12 + $0x10] sm:$0xff] %v746_v18  ;;  %v747_v20 = vadd.f32 %v725_v19, %v337_v16  ;;  %v1043_v21 = vpop.f32.mrb[8].mxu0  ;;  %v779_v48 = vadd.f32 (!%p1010_p13), %v1011_v46, %v764_v45 }
 0x13d   : > { %v1044_v22 = vpop.f32.mrb[9].mxu0  ;;  %v765_v47 = vld [vmem:[%s1364_s12 + $0x8] sm:$0xff] (!%p1010_p13) }
 0x13e   : > { %755 = vst [vmem:[%s1364_s12 + $0x18] sm:$0xff] %v747_v20  ;;  %v1045_v23 = vadd.f32 %v1044_v22, %v1043_v21  ;;  %v1046_v24 = vpop.f32.mrb[10].mxu0  ;;  %v780_v49 = vadd.f32 (!%p1010_p13), %v1011_v46, %v765_v47  ;;  %vm787_vm0 = vcmp.ge.f32.partialorder (!%p1010_p13), %v779_v48, 0.0  ;;  %v795_v59 = vmul.f32 (!%p1010_p13), 0.1, %v779_v48 }
 0x13f   : > { %v1047_v25 = vpop.f32.mrb[11].mxu0 }
 0x140   : > { %v1048_v27 = vadd.f32 %v1047_v25, %v1046_v24  ;;  %v730_v28 = vadd.f32 %v1045_v23, %v729_v12  ;;  %vm788_vm1 = vcmp.ge.f32.partialorder (!%p1010_p13), %v780_v49, 0.0  ;;  %v796_v60 = vmul.f32 (!%p1010_p13), 0.1, %v780_v49 }
 0x141   : > { %v803_v63 = vsel (!%p1010_p13), %vm787_vm0, %v779_v48, %v795_v59 }
 0x142   : > { %v748_v30 = vadd.f32 %v730_v28, %v338_v26  ;;  %v733_v31 = vadd.f32 %v1048_v27, %v732_v17  ;;  %v804_v0 = vsel (!%p1010_p13), %vm788_vm1, %v780_v49, %v796_v60  ;;  %811 = vst [vmem:[%s1364_s12] sm:$0xff] (!%p1010_p13), %v803_v63 }
 0x143   : > { %v766_v50 = vld [vmem:[%s1364_s12 + $0x10] sm:$0xff] (!%p1010_p13)  ;;  %812 = vst [vmem:[%s1364_s12 + $0x8] sm:$0xff] (!%p1010_p13), %v804_v0 }
 0x144   : > { %756 = vst [vmem:[%s1364_s12 + $0x20] sm:$0xff] %v748_v30  ;;  %v749_v32 = vadd.f32 %v733_v31, %v339_v29  ;;  %v1049_v33 = vpop.f32.mrb[12].mxu0  ;;  %v781_v53 = vadd.f32 (!%p1010_p13), %v1011_v46, %v766_v50 }
 0x145   : > { %v1050_v34 = vpop.f32.mrb[13].mxu0  ;;  %v767_v51 = vld [vmem:[%s1364_s12 + $0x18] sm:$0xff] (!%p1010_p13) }
 0x146   : > { %757 = vst [vmem:[%s1364_s12 + $0x28] sm:$0xff] %v749_v32  ;;  %v1051_v35 = vadd.f32 %v1050_v34, %v1049_v33  ;;  %v1052_v36 = vpop.f32.mrb[14].mxu0  ;;  %v782_v54 = vadd.f32 (!%p1010_p13), %v1011_v46, %v767_v51  ;;  %vm789_vm2 = vcmp.ge.f32.partialorder (!%p1010_p13), %v781_v53, 0.0  ;;  %v797_v61 = vmul.f32 (!%p1010_p13), 0.1, %v781_v53 }
 0x147   : > { %v1053_v38 = vpop.f32.mrb[15].mxu0 }
 0x148   : > { %v738_v39 = vadd.f32 %v1089_v9, %v1051_v35  ;;  %v1054_v40 = vadd.f32 %v1053_v38, %v1052_v36  ;;  %763 = sbr.rel (%p1010_p13) target bundleno = 348 (0x15c), region = 66  ;;  %vm790_vm3 = vcmp.ge.f32.partialorder (!%p1010_p13), %v782_v54, 0.0  ;;  %v798_v62 = vmul.f32 (!%p1010_p13), 0.1, %v782_v54 }
 0x149   : > { %v805_v2 = vsel (!%p1010_p13), %vm789_vm2, %v781_v53, %v797_v61 }
 0x14a   : > { %v750_v42 = vadd.f32 %v738_v39, %v340_v37  ;;  %v741_v43 = vadd.f32 %v1090_v15, %v1054_v40  ;;  %v806_v3 = vsel (!%p1010_p13), %vm790_vm3, %v782_v54, %v798_v62  ;;  %813 = vst [vmem:[%s1364_s12 + $0x10] sm:$0xff] (!%p1010_p13), %v805_v2 }
 0x14b   : > { %v768_v52 = vld [vmem:[%s1364_s12 + $0x20] sm:$0xff] (!%p1010_p13)  ;;  %814 = vst [vmem:[%s1364_s12 + $0x18] sm:$0xff] (!%p1010_p13), %v806_v3 }
 0x14c   : > { %758 = vst [vmem:[%s1364_s12 + $0x30] sm:$0xff] %v750_v42  ;;  %v751_v44 = vadd.f32 %v741_v43, %v341_v41  ;;  %v783_v55 = vadd.f32 (!%p1010_p13), %v1011_v46, %v768_v52 }
 0x14d   : > { %v769_v56 = vld [vmem:[%s1364_s12 + $0x28] sm:$0xff] (!%p1010_p13) }
 0x14e   : > { %759 = vst [vmem:[%s1364_s12 + $0x38] sm:$0xff] %v751_v44  ;;  %vm791_vm4 = vcmp.ge.f32.partialorder (!%p1010_p13), %v783_v55, 0.0  ;;  %v799_v1 = vmul.f32 (!%p1010_p13), 0.1, %v783_v55  ;;  %v784_v4 = vadd.f32 (!%p1010_p13), %v1011_v46, %v769_v56 }
 0x150   : > { %v807_v6 = vsel %vm791_vm4, %v783_v55, %v799_v1  ;;  %vm792_vm5 = vcmp.ge.f32.partialorder %v784_v4, 0.0  ;;  %v800_v8 = vmul.f32 0.1, %v784_v4 }
 0x151   : > { %815 = vst [vmem:[%s1364_s12 + $0x20] sm:$0xff] %v807_v6 }
 0x152   : > { %v808_v11 = vsel %vm792_vm5, %v784_v4, %v800_v8 }
 0x153   : > { %v770_v57 = vld [vmem:[%s1364_s12 + $0x30] sm:$0xff]  ;;  %816 = vst [vmem:[%s1364_s12 + $0x28] sm:$0xff] %v808_v11 }
 0x154   : > { %v785_v5 = vadd.f32 %v1011_v46, %v770_v57 }
 0x155   : > { %v771_v58 = vld [vmem:[%s1364_s12 + $0x38] sm:$0xff] }
 0x156   : > { %v786_v7 = vadd.f32 %v1011_v46, %v771_v58  ;;  %vm793_vm6 = vcmp.ge.f32.partialorder %v785_v5, 0.0  ;;  %v801_v9 = vmul.f32 0.1, %v785_v5 }
 0x158   : > { %vm794_vm7 = vcmp.ge.f32.partialorder %v786_v7, 0.0  ;;  %v802_v10 = vmul.f32 0.1, %v786_v7  ;;  %v809_v12 = vsel %vm793_vm6, %v785_v5, %v801_v9 }
 0x159   : > { %817 = vst [vmem:[%s1364_s12 + $0x30] sm:$0xff] %v809_v12 }
 0x15a   : > { %v810_v13 = vsel %vm794_vm7, %v786_v7, %v802_v10 }
 0x15b   : > { %818 = vst [vmem:[%s1364_s12 + $0x38] sm:$0xff] %v810_v13 }
 0x15c PF: > { %s13_s18 = sadd.s32 1, %s1246_s18   ;;  %s1481_s12 = smov %s1226_s13 }
 0x15d   : > { %p10_p0 = scmp.ge.s32.totalorder %s13_s18, 16   ;;  %s1482_s13 = smov %s1320_s25 }
 0x15e   : > { %s1483_s14 = smov %s1238_s16  ;;  %s1484_s15 = smov %s1242_s17 }
 0x15f   : > { %s1485_s16 = smov %s1488_s19  ;;  %s1486_s17 = smov %s1492_s20 }
 0x160   :  { %12 = sbr.rel (!%p10_p0) target bundleno = 4 (0x4), region = 113 }

// kernel: _lambda_.11
= control target key start
LH: loop header
LB: loop body
LE: loop exit
PB: predicated region body
PF: predicated region fallthrough
CT: control target
= control target key end

     0   :  { %s1023_s12 = smov 0   ;;  %s1025_s13 = smov 0   ;;  %s1174_s0 = inlined_call_operand.vmem [shape: bf16[4,16,2688], index: 0, kind: input, shape index: {}]   ;;  %s1175_s1 = inlined_call_operand.vmem [shape: bf16[4,2688,128], index: 1, kind: input, shape index: {}]   ;;  %s1176_s2 = inlined_call_operand.vmem [shape: f32[4,1,128], index: 2, kind: input, shape index: {}]   ;;  %s1177_s3 = inlined_call_operand.vmem [shape: f32[4,16,128], index: 3, kind: output, shape index: {}]  }
   0x1   :  { %s1027_s14 = smov 0   ;;  %s1029_s15 = smov 0  }
   0x2   :  { %s1031_s16 = smov 0   ;;  %s1033_s17 = smov 0  }
   0x3   :  { %s1035_s18 = smov 0  }
   0x4 LB: > { %s25_s19 = sadd.s32 1, %s990_s16  ;;  %s32_s20 = sadd.s32 1, %s994_s17  ;;  %s998_s18 = sphi %s1035_s18, %s13_s18   ;;  %s994_s17 = sphi %s1033_s17, %s1183_s17   ;;  %s990_s16 = sphi %s1031_s16, %s1182_s16   ;;  %s986_s15 = sphi %s1029_s15, %s1181_s15   ;;  %s982_s14 = sphi %s1027_s14, %s1180_s14   ;;  %s978_s13 = sphi %s1025_s13, %s1179_s13   ;;  %s974_s12 = sphi %s1023_s12, %s1178_s12  }
   0x5   : > { %p26_p0 = scmp.ge.s32.totalorder %s25_s19, 7  ;;  %p50_p1 = scmp.ne.s32.totalorder %s978_s13, %s974_s12 }
   0x6   : > { %p51_p2 = scmp.eq.s32.totalorder %s998_s18, 0  ;;  %s43_s24 = sadd.s32 1, %s978_s13 }
   0x7   : > { %s1185_s19 = smov (%p26_p0, %s25_s19), 0  ;;  %s1187_s20 = smov (!%p26_p0, %s32_s20), %s994_s17 }
   0x8   : > { %p52_p3 = por %p51_p2, %p50_p1  ;;  %p34_p4 = scmp.ge.s32.totalorder %s1187_s20, 4 }
   0x9   : > { %s39_s21 = ssub.s32 %s990_s16, %s1185_s19  ;;  %p759_p6 = scmp.ge.s32.totalorder %s998_s18, 28 }
   0xa   : > { %s1189_s20 = smov (%p34_p4, %s1187_s20), 0 }
   0xb   : > { %s36_s22 = ssub.s32 %s994_s17, %s1189_s20  ;;  %158 = sbr.rel (%p759_p6) target bundleno = 29 (0x1d), region = 16 }
   0xc   : > { %s40_s23 = sor.u32 %s39_s21, %s36_s22 }
   0xd   : > { %p41_p5 = scmp.eq.s32.totalorder %s40_s23, 0 }
   0xf   : > { %s1074_s25 = scalar_select %p41_p5, %s978_s13, %s43_s24  }
  0x12   : > { %161 = sbr.rel (!%p52_p3) target bundleno = 29 (0x1d), region = 20  ;;  %s163_s26 = sand.u32 (%p52_p3), 1, %s978_s13  }
  0x13   : > { %s167_s27 = smul.u32 (%p52_p3), 3, %s990_s16 }
  0x14   : > { %s853_s28 = smul.u32 (%p52_p3), 24, %s163_s26 }
  0x15   : > { %s854_s29 = smul.u32 (%p52_p3), 42, %s994_s17 }
  0x16   : > { %s165_s8 = scalar_lea.vmem (%p52_p3), [#allocation2], %s853_s28 }
  0x17   : > { %s171_s30 = sadd.s32 (%p52_p3), %s854_s29, %s167_s27 }
  0x18   : > { %s760_s4 = sshll.u32 (%p52_p3), %s171_s30, 2 }
  0x19   : > { %s173_s7 = scalar_lea.vmem %s1174_s0, %s760_s4 }
  0x1a   : > { %v188_v0 = vld [vmem:[%s173_s7] sm:$0xff]  ;;  %v190_v1 = vld [vmem:[%s173_s7 + $0x54] sm:$0xff]  ;;  %v761_v2 = vld [vmem:[%s173_s7 + $0x8] sm:$0xf] }
  0x1b   : > { %189 = vst [vmem:[%s165_s8] sm:$0xff] %v188_v0  ;;  %191 = vst [vmem:[%s165_s8 + $0xc] sm:$0xff] %v190_v1  ;;  %v763_v3 = vld [vmem:[%s173_s7 + $0x5c] sm:$0xf] }
  0x1c   : > { %762 = vst [vmem:[%s165_s8 + $0x8] sm:$0xf] %v761_v2  ;;  %764 = vst [vmem:[%s165_s8 + $0x14] sm:$0xf] %v763_v3 }
  0x1d PF: > { %p765_p7 = scmp.ge.s32.totalorder %s998_s18, 1  ;;  %p226_p8 = scmp.lt.s32.totalorder %s998_s18, 29 }
  0x1f   : > { %p227_p9 = pnand %p765_p7, %p226_p8 }
  0x20   : > { %s233_s9 = sand.u32 (!%p227_p9), 1, %s974_s12   ;;  %s274_s10 = smul.u32 (!%p227_p9), 48, %s982_s14 }
  0x21   : > { %230 = sbr.rel (%p227_p9) target bundleno = 317 (0x13d), region = 54  ;;  %p275_p10 = scmp.lt.s32.totalorder (!%p227_p9), %s986_s15, 3 }
  0x22   : > { %s855_s11 = smul.u32 (!%p227_p9), 24, %s233_s9  ;;  %p277_p11 = scmp.lt.s32.totalorder (!%p227_p9), %s274_s10, 335 }
  0x23   : > { %p769_p12 = scmp.ne.s32.totalorder (!%p227_p9), %s982_s14, 0 }
  0x24   : > { %s1107_s7 = scalar_lea.vmem (!%p227_p9), [#allocation2], %s855_s11 }
  0x28   : > { %s1191_s15 = smov (!%p275_p10, %s986_s15), 3  ;;  %s1193_s10 = smov (!%p277_p11, %s274_s10), 335 }
  0x29   : > { %s856_s21 = smul.u32 336, %s1191_s15  ;;  %s286_s24 = scalar_lea.vmem %s1176_s2, %s1191_s15  ;;  %v1000_v4 = vmov (!%p769_p12), 0.0  }
  0x2a   : > { %s801_s26 = sshll.u32 %s1191_s15, 4  ;;  %301 = sbr.rel (%p769_p12) target bundleno = 49 (0x31), region = 62 }
  0x2b   : > { %s280_s27 = sadd.s32 %s856_s21, %s1193_s10  ;;  %s1100_s12 = scalar_lea.vmem %s1177_s3, %s801_s26 }
  0x2c   : > { %s766_s30 = sshll.u32 %s280_s27, 2  ;;  %302 = vst [vmem:[%s1100_s12] sm:$0xff] (!%p769_p12), %v1000_v4  ;;  %303 = vst [vmem:[%s1100_s12 + $0x8] sm:$0xff] (!%p769_p12), %v1000_v4 }
  0x2d   : > { %s1105_s6 = scalar_lea.vmem %s1175_s1, %s766_s30 }
  0x31 PF: > { %v916_v5 = vld [vmem:[%s1105_s6 + $0x40] sm:$0xff]   ;;  %v1001_v6 = vmov 0.0   ;;  %vm1002_vm0 = vmmov 0   ;;  %v919_v9 = vld [vmem:[%s1105_s6 + $0x48] sm:$0xff]   ;;  %v922_v12 = vld [vmem:[%s1105_s6 + $0x50] sm:$0xff]   ;;  %p797_p13 = scmp.ne.s32.totalorder %s982_s14, 6 }
  0x32   : > { %833 = vmatprep.subr.bf16.mxu1 %v1001_v6  ;;  %v917_v7 = vld [vmem:[%s1105_s6] sm:$0xff]   ;;  %802 = vmatprep.subr.bf16.mxu0 %v916_v5  ;;  %v920_v10 = vld [vmem:[%s1105_s6 + $0x8] sm:$0xff]   ;;  %v923_v13 = vld [vmem:[%s1105_s6 + $0x10] sm:$0xff]  }
  0x33   : > { %v918_v8 = vld [vmem:[%s1105_s6 + $0x80] sm:$0xff]   ;;  %849 = vmatprep.mubr.msk.bf16.mxu1 %vm1002_vm0, %v1001_v6  ;;  %803 = vmatpush3.bf16.msra.mxu0 %v917_v7  ;;  %v921_v11 = vld [vmem:[%s1105_s6 + $0x88] sm:$0xff]   ;;  %v924_v14 = vld [vmem:[%s1105_s6 + $0x90] sm:$0xff]  }
  0x34   : > { %834 = vmatpush3.bf16.msra.mxu1 %v918_v8  ;;  %804 = vmatprep.subr.bf16.mxu0 %v919_v9  ;;  %v925_v15 = vld [vmem:[%s1105_s6 + $0x58] sm:$0xff]   ;;  %v928_v18 = vld [vmem:[%s1105_s6 + $0x60] sm:$0xff]   ;;  %v931_v21 = vld [vmem:[%s1105_s6 + $0x68] sm:$0xff]  }
  0x35   : > { %835 = vmatprep.subr.bf16.mxu1 %v1001_v6  ;;  %v926_v16 = vld [vmem:[%s1105_s6 + $0x18] sm:$0xff]   ;;  %v929_v19 = vld [vmem:[%s1105_s6 + $0x20] sm:$0xff]   ;;  %v932_v22 = vld [vmem:[%s1105_s6 + $0x28] sm:$0xff]  }
  0x36   : > { %v927_v17 = vld [vmem:[%s1105_s6 + $0x98] sm:$0xff]   ;;  %v930_v20 = vld [vmem:[%s1105_s6 + $0xa0] sm:$0xff]   ;;  %v933_v23 = vld [vmem:[%s1105_s6 + $0xa8] sm:$0xff]  }
  0x37   : > { %805 = vmatpush3.bf16.msra.mxu0 %v920_v10  ;;  %v934_v24 = vld [vmem:[%s1105_s6 + $0x70] sm:$0xff]   ;;  %v937_v27 = vld [vmem:[%s1105_s6 + $0x78] sm:$0xff]   ;;  %v304_v39 = vld [vmem:[%s1100_s12] sm:$0xff] }
  0x38   : > { %836 = vmatpush3.bf16.msra.mxu1 %v921_v11  ;;  %806 = vmatprep.subr.bf16.mxu0 %v922_v12  ;;  %v935_v25 = vld [vmem:[%s1105_s6 + $0x30] sm:$0xff]   ;;  %v938_v29 = vld [vmem:[%s1105_s6 + $0x38] sm:$0xff]   ;;  %v305_v45 = vld [vmem:[%s1100_s12 + $0x8] sm:$0xff] }
  0x39   : > { %837 = vmatprep.subr.bf16.mxu1 %v1001_v6  ;;  %v936_v26 = vld [vmem:[%s1105_s6 + $0xb0] sm:$0xff]   ;;  %v939_v30 = vld [vmem:[%s1105_s6 + $0xb8] sm:$0xff]   ;;  %v798_v50 = vld [vmem:[%s286_s24] ss:$0 sm:$0xff] (!%p797_p13) }
  0x3a   : > { %v942_v28 = vld [vmem:[%s1107_s7 + $0x4] ss:$12 sps:$4 sm:$0xff]   ;;  %v940_v31 = vld [vmem:[%s1107_s7] ss:$12 sps:$4 sm:$0xff]   ;;  %v943_v32 = vld [vmem:[%s1107_s7 + $0x8] ss:$12 sps:$4 sm:$0xff]  }
  0x3b   : > { %807 = vmatpush3.bf16.msra.mxu0 %v923_v13  ;;  %550 = vmatprep.mubr.bf16.mxu0 %v942_v28 }
  0x3c   : > { %838 = vmatpush3.bf16.msra.mxu1 %v924_v14  ;;  %808 = vmatprep.subr.bf16.mxu0 %v925_v15 }
  0x3d   : > { %839 = vmatprep.subr.bf16.mxu1 %v1001_v6 }
  0x3f   : > { %809 = vmatpush3.bf16.msra.mxu0 %v926_v16 }
  0x40   : > { %840 = vmatpush3.bf16.msra.mxu1 %v927_v17  ;;  %810 = vmatprep.subr.bf16.mxu0 %v928_v18 }
  0x41   : > { %841 = vmatprep.subr.bf16.mxu1 %v1001_v6 }
  0x43   : > { %811 = vmatpush3.bf16.msra.mxu0 %v929_v19 }
  0x44   : > { %842 = vmatpush3.bf16.msra.mxu1 %v930_v20  ;;  %812 = vmatprep.subr.bf16.mxu0 %v931_v21 }
  0x45   : > { %843 = vmatprep.subr.bf16.mxu1 %v1001_v6 }
  0x47   : > { %813 = vmatpush3.bf16.msra.mxu0 %v932_v22 }
  0x48   : > { %844 = vmatpush3.bf16.msra.mxu1 %v933_v23  ;;  %814 = vmatprep.subr.bf16.mxu0 %v934_v24 }
  0x49   : > { %845 = vmatprep.subr.bf16.mxu1 %v1001_v6 }
  0x4b   : > { %815 = vmatpush3.bf16.msra.mxu0 %v935_v25 }
  0x4c   : > { %846 = vmatpush3.bf16.msra.mxu1 %v936_v26  ;;  %816 = vmatprep.subr.bf16.mxu0 %v937_v27 }
  0x4d   : > { %847 = vmatprep.subr.bf16.mxu1 %v1001_v6 }
  0x4f   : > { %817 = vmatpush3.bf16.msra.mxu0 %v938_v29 }
  0x50   : > { %848 = vmatpush3.bf16.msra.mxu1 %v939_v30 }
  0x52   : > { %551 = vmatmul.mubr.bf16.vlgmr.msra.gmra.mrb[0].mxu0 %v940_v31 }
  0x53   : > { %850 = vmatmul.mubr.bf16.vlgmr.msra.gmra.mrb[0].mxu1 %v943_v32 }
 0x125   : > { %v818_v33 = vpop.f32.mrb[0].mxu0 }
 0x126   : > { %v593_v34 = vpop.f32.mrb[0].mxu1  ;;  %v819_v35 = vpop.f32.mrb[1].mxu0 }
 0x127   : > { %v820_v36 = vadd.f32 %v819_v35, %v818_v33  ;;  %v851_v37 = vpop.f32.mrb[1].mxu1  ;;  %v821_v38 = vpop.f32.mrb[2].mxu0 }
 0x128   : > { %v596_v40 = vpop.f32.mrb[2].mxu1  ;;  %v822_v41 = vpop.f32.mrb[3].mxu0 }
 0x129   : > { %v594_v42 = vadd.f32 %v820_v36, %v593_v34  ;;  %v823_v43 = vadd.f32 %v822_v41, %v821_v38  ;;  %v852_v44 = vpop.f32.mrb[3].mxu1  ;;  %607 = sbr.rel (%p797_p13) target bundleno = 317 (0x13d), region = 66 }
 0x12b   : > { %v600_v46 = vadd.f32 %v594_v42, %v304_v39  ;;  %v597_v47 = vadd.f32 %v823_v43, %v596_v40 }
 0x12d   : > { %602 = vst [vmem:[%s1100_s12] sm:$0xff] %v600_v46  ;;  %v601_v48 = vadd.f32 %v597_v47, %v305_v45 }
 0x12f   : > { %603 = vst [vmem:[%s1100_s12 + $0x8] sm:$0xff] %v601_v48 }
 0x134   : > { %v608_v49 = vld [vmem:[%s1100_s12] sm:$0xff] }
 0x135   : > { %v617_v52 = vadd.f32 %v798_v50, %v608_v49 }
 0x136   : > { %v609_v51 = vld [vmem:[%s1100_s12 + $0x8] sm:$0xff] }
 0x137   : > { %v618_v53 = vadd.f32 %v798_v50, %v609_v51  ;;  %vm619_vm1 = vcmp.ge.f32.partialorder %v617_v52, 0.0  ;;  %v621_v54 = vmul.f32 0.1, %v617_v52 }
 0x139   : > { %vm620_vm2 = vcmp.ge.f32.partialorder %v618_v53, 0.0  ;;  %v622_v55 = vmul.f32 0.1, %v618_v53  ;;  %v623_v56 = vsel %vm619_vm1, %v617_v52, %v621_v54 }
 0x13a   : > { %625 = vst [vmem:[%s1100_s12] sm:$0xff] %v623_v56 }
 0x13b   : > { %v624_v57 = vsel %vm620_vm2, %v618_v53, %v622_v55 }
 0x13c   : > { %626 = vst [vmem:[%s1100_s12 + $0x8] sm:$0xff] %v624_v57 }
 0x13d PF: > { %s13_s18 = sadd.s32 1, %s998_s18   ;;  %s1178_s12 = smov %s978_s13 }
 0x13e   : > { %p10_p0 = scmp.ge.s32.totalorder %s13_s18, 30   ;;  %s1179_s13 = smov %s1074_s25 }
 0x13f   : > { %s1180_s14 = smov %s990_s16  ;;  %s1181_s15 = smov %s994_s17 }
 0x140   : > { %s1182_s16 = smov %s1185_s19  ;;  %s1183_s17 = smov %s1189_s20 }
 0x141   :  { %12 = sbr.rel (!%p10_p0) target bundleno = 4 (0x4), region = 113 }

// kernel: _lambda_.12
= control target key start
LH: loop header
LB: loop body
LE: loop exit
PB: predicated region body
PF: predicated region fallthrough
CT: control target
= control target key end

     0   :  { %s929_s12 = smov 0   ;;  %s931_s13 = smov 0   ;;  %s1040_s0 = inlined_call_operand.vmem [shape: bf16[8,8,2688], index: 0, kind: input, shape index: {}]   ;;  %s1041_s1 = inlined_call_operand.vmem [shape: bf16[8,2688,128], index: 1, kind: input, shape index: {}]   ;;  %s1042_s2 = inlined_call_operand.vmem [shape: f32[8,1,128], index: 2, kind: input, shape index: {}]   ;;  %s1043_s3 = inlined_call_operand.vmem [shape: f32[8,8,128], index: 3, kind: output, shape index: {}]  }
   0x1   :  { %s933_s14 = smov 0   ;;  %s935_s15 = smov 0  }
   0x2   :  { %s937_s16 = smov 0  }
   0x3 LB: > { %s25_s17 = sadd.s32 1, %s896_s14  ;;  %s32_s18 = sadd.s32 1, %s900_s15  ;;  %s904_s16 = sphi %s937_s16, %s13_s16   ;;  %s900_s15 = sphi %s935_s15, %s1047_s15   ;;  %s896_s14 = sphi %s933_s14, %s1046_s14   ;;  %s892_s13 = sphi %s931_s13, %s1045_s13   ;;  %s888_s12 = sphi %s929_s12, %s1044_s12  }
   0x4   : > { %p26_p0 = scmp.ge.s32.totalorder %s25_s17, 7  ;;  %p707_p1 = scmp.ge.s32.totalorder %s904_s16, 1 }
   0x5   : > { %p196_p2 = scmp.lt.s32.totalorder %s904_s16, 57 }
   0x6   : > { %s1049_s17 = smov (%p26_p0, %s25_s17), 0  ;;  %s1051_s18 = smov (!%p26_p0, %s32_s18), %s900_s15 }
   0x7   : > { %p197_p3 = pnand %p707_p1, %p196_p2  ;;  %p34_p4 = scmp.ge.s32.totalorder %s1051_s18, 8 }
   0x8   : > { %s242_s19 = smul.u32 (!%p197_p3), 3, %s888_s12  ;;  %p243_p5 = scmp.lt.s32.totalorder (!%p197_p3), %s892_s13, 7 }
   0x9   : > { %s1053_s18 = smov (%p34_p4, %s1051_s18), 0  ;;  %200 = sbr.rel (%p197_p3) target bundleno = 296 (0x128), region = 32 }
   0xa   : > { %s256_s20 = smul.u32 (!%p197_p3), 48, %s888_s12  ;;  %p247_p6 = scmp.lt.s32.totalorder (!%p197_p3), %s242_s19, 20 }
   0xb   : > { %p711_p8 = scmp.ne.s32.totalorder (!%p197_p3), %s888_s12, 0 }
   0xc   : > { %p259_p7 = scmp.lt.s32.totalorder (!%p197_p3), %s256_s20, 335 }
  0x10   : > { %s1055_s13 = smov (!%p243_p5, %s892_s13), 7  ;;  %s1057_s19 = smov (!%p247_p6, %s242_s19), 20 }
  0x11   : > { %s794_s21 = smul.u32 21, %s1055_s13  ;;  %s268_s24 = scalar_lea.vmem %s1042_s2, %s1055_s13  ;;  %v906_v0 = vmov (!%p711_p8), 0.0  }
  0x12   : > { %s1059_s20 = smov (!%p259_p7, %s256_s20), 335  ;;  %s795_s26 = smul.u32 336, %s1055_s13 }
  0x13   : > { %s252_s25 = sadd.s32 %s794_s21, %s1057_s19  ;;  %s710_s28 = sshll.u32 %s1055_s13, 3 }
  0x14   : > { %s708_s27 = sshll.u32 %s252_s25, 2  ;;  %s262_s5 = sadd.s32 %s795_s26, %s1059_s20 }
  0x15   : > { %s975_s4 = scalar_lea.vmem %s1040_s0, %s708_s27  ;;  %s709_s6 = sshll.u32 %s262_s5, 2 }
  0x16   : > { %s980_s9 = scalar_lea.vmem %s1043_s3, %s710_s28  ;;  %s985_s22 = scalar_lea.vmem %s1041_s1, %s709_s6 }
  0x17   : > { %280 = sbr.rel (%p711_p8) target bundleno = 30 (0x1e), region = 36  ;;  %281 = vst [vmem:[%s980_s9] sm:$0xff] (!%p711_p8), %v906_v0 }
  0x1e PF: > { %v839_v1 = vld [vmem:[%s985_s22 + $0x40] sm:$0xff]   ;;  %v907_v2 = vmov 0.0   ;;  %vm908_vm0 = vmmov 0   ;;  %v842_v5 = vld [vmem:[%s985_s22 + $0x48] sm:$0xff]   ;;  %v845_v8 = vld [vmem:[%s985_s22 + $0x50] sm:$0xff]   ;;  %p739_p9 = scmp.ne.s32.totalorder %s888_s12, 6 }
  0x1f   : > { %774 = vmatprep.subr.bf16.mxu1 %v907_v2  ;;  %v840_v3 = vld [vmem:[%s985_s22] sm:$0xff]   ;;  %743 = vmatprep.subr.bf16.mxu0 %v839_v1  ;;  %v843_v6 = vld [vmem:[%s985_s22 + $0x8] sm:$0xff]   ;;  %v846_v9 = vld [vmem:[%s985_s22 + $0x10] sm:$0xff]  }
  0x20   : > { %v841_v4 = vld [vmem:[%s985_s22 + $0x80] sm:$0xff]   ;;  %790 = vmatprep.mubr.msk.bf16.mxu1 %vm908_vm0, %v907_v2  ;;  %744 = vmatpush3.bf16.msra.mxu0 %v840_v3  ;;  %v844_v7 = vld [vmem:[%s985_s22 + $0x88] sm:$0xff]   ;;  %v847_v10 = vld [vmem:[%s985_s22 + $0x90] sm:$0xff]  }
  0x21   : > { %775 = vmatpush3.bf16.msra.mxu1 %v841_v4  ;;  %745 = vmatprep.subr.bf16.mxu0 %v842_v5  ;;  %v848_v11 = vld [vmem:[%s985_s22 + $0x58] sm:$0xff]   ;;  %v851_v14 = vld [vmem:[%s985_s22 + $0x60] sm:$0xff]   ;;  %v854_v17 = vld [vmem:[%s985_s22 + $0x68] sm:$0xff]  }
  0x22   : > { %776 = vmatprep.subr.bf16.mxu1 %v907_v2  ;;  %v849_v12 = vld [vmem:[%s985_s22 + $0x18] sm:$0xff]   ;;  %v852_v15 = vld [vmem:[%s985_s22 + $0x20] sm:$0xff]   ;;  %v855_v18 = vld [vmem:[%s985_s22 + $0x28] sm:$0xff]  }
  0x23   : > { %v850_v13 = vld [vmem:[%s985_s22 + $0x98] sm:$0xff]   ;;  %v853_v16 = vld [vmem:[%s985_s22 + $0xa0] sm:$0xff]   ;;  %v856_v19 = vld [vmem:[%s985_s22 + $0xa8] sm:$0xff]  }
  0x24   : > { %746 = vmatpush3.bf16.msra.mxu0 %v843_v6  ;;  %v857_v20 = vld [vmem:[%s985_s22 + $0x70] sm:$0xff]   ;;  %v860_v23 = vld [vmem:[%s985_s22 + $0x78] sm:$0xff]   ;;  %v283_v24 = vld [vmem:[%s975_s4] sm:$0xff] }
  0x25   : > { %777 = vmatpush3.bf16.msra.mxu1 %v844_v7  ;;  %747 = vmatprep.subr.bf16.mxu0 %v845_v8  ;;  %v858_v21 = vld [vmem:[%s985_s22 + $0x30] sm:$0xff]   ;;  %v713_v25 = vcombine.high %v283_v24, %v283_v24  ;;  %v861_v26 = vld [vmem:[%s985_s22 + $0x38] sm:$0xff]   ;;  %v712_v28 = vcombine.low %v283_v24, %v283_v24  ;;  %v865_v29 = vld [vmem:[%s975_s4 + $0x8] ss:$0 sps:$4 sm:$0xff]  }
  0x26   : > { %778 = vmatprep.subr.bf16.mxu1 %v907_v2  ;;  %v859_v22 = vld [vmem:[%s985_s22 + $0xb0] sm:$0xff]   ;;  %v862_v27 = vld [vmem:[%s985_s22 + $0xb8] sm:$0xff]   ;;  %v282_v36 = vld [vmem:[%s980_s9] sm:$0xff] }
  0x27   : > { %520 = vmatprep.mubr.bf16.mxu0 %v713_v25  ;;  %v740_v43 = vld [vmem:[%s268_s24] ss:$0 sm:$0xff] (!%p739_p9) }
  0x28   : > { %748 = vmatpush3.bf16.msra.mxu0 %v846_v9 }
  0x29   : > { %779 = vmatpush3.bf16.msra.mxu1 %v847_v10  ;;  %749 = vmatprep.subr.bf16.mxu0 %v848_v11 }
  0x2a   : > { %780 = vmatprep.subr.bf16.mxu1 %v907_v2 }
  0x2c   : > { %750 = vmatpush3.bf16.msra.mxu0 %v849_v12 }
  0x2d   : > { %781 = vmatpush3.bf16.msra.mxu1 %v850_v13  ;;  %751 = vmatprep.subr.bf16.mxu0 %v851_v14 }
  0x2e   : > { %782 = vmatprep.subr.bf16.mxu1 %v907_v2 }
  0x30   : > { %752 = vmatpush3.bf16.msra.mxu0 %v852_v15 }
  0x31   : > { %783 = vmatpush3.bf16.msra.mxu1 %v853_v16  ;;  %753 = vmatprep.subr.bf16.mxu0 %v854_v17 }
  0x32   : > { %784 = vmatprep.subr.bf16.mxu1 %v907_v2 }
  0x34   : > { %754 = vmatpush3.bf16.msra.mxu0 %v855_v18 }
  0x35   : > { %785 = vmatpush3.bf16.msra.mxu1 %v856_v19  ;;  %755 = vmatprep.subr.bf16.mxu0 %v857_v20 }
  0x36   : > { %786 = vmatprep.subr.bf16.mxu1 %v907_v2 }
  0x38   : > { %756 = vmatpush3.bf16.msra.mxu0 %v858_v21 }
  0x39   : > { %787 = vmatpush3.bf16.msra.mxu1 %v859_v22  ;;  %757 = vmatprep.subr.bf16.mxu0 %v860_v23 }
  0x3a   : > { %788 = vmatprep.subr.bf16.mxu1 %v907_v2 }
  0x3c   : > { %758 = vmatpush3.bf16.msra.mxu0 %v861_v26 }
  0x3d   : > { %789 = vmatpush3.bf16.msra.mxu1 %v862_v27 }
  0x3f   : > { %521 = vmatmul.mubr.bf16.vlgmr.msra.gmra.mrb[0].mxu0 %v712_v28 }
  0x40   : > { %791 = vmatmul.mubr.bf16.vlgmr.msra.gmra.mrb[0].mxu1 %v865_v29 }
 0x112   : > { %v759_v30 = vpop.f32.mrb[0].mxu0 }
 0x113   : > { %v562_v31 = vpop.f32.mrb[0].mxu1  ;;  %v760_v32 = vpop.f32.mrb[1].mxu0 }
 0x114   : > { %v761_v33 = vadd.f32 %v760_v32, %v759_v30  ;;  %v792_v34 = vpop.f32.mrb[1].mxu1  ;;  %v762_v35 = vpop.f32.mrb[2].mxu0  ;;  %573 = sbr.rel (%p739_p9) target bundleno = 296 (0x128), region = 40 }
 0x115   : > { %v565_v37 = vpop.f32.mrb[2].mxu1  ;;  %v763_v38 = vpop.f32.mrb[3].mxu0 }
 0x116   : > { %v563_v39 = vadd.f32 %v761_v33, %v562_v31  ;;  %v793_v40 = vpop.f32.mrb[3].mxu1 }
 0x118   : > { %v568_v41 = vadd.f32 %v563_v39, %v282_v36 }
 0x11a   : > { %569 = vst [vmem:[%s980_s9] sm:$0xff] %v568_v41 }
 0x121   : > { %v574_v42 = vld [vmem:[%s980_s9] sm:$0xff] }
 0x122   : > { %v582_v44 = vadd.f32 %v740_v43, %v574_v42 }
 0x124   : > { %vm583_vm1 = vcmp.ge.f32.partialorder %v582_v44, 0.0  ;;  %v584_v45 = vmul.f32 0.1, %v582_v44 }
 0x126   : > { %v585_v46 = vsel %vm583_vm1, %v582_v44, %v584_v45 }
 0x127   : > { %586 = vst [vmem:[%s980_s9] sm:$0xff] %v585_v46 }
 0x128 PF: > { %s13_s16 = sadd.s32 1, %s904_s16   ;;  %s1044_s12 = smov %s896_s14 }
 0x129   : > { %p10_p10 = scmp.ge.s32.totalorder %s13_s16, 58   ;;  %s1045_s13 = smov %s900_s15 }
 0x12a   : > { %s1046_s14 = smov %s1049_s17  ;;  %s1047_s15 = smov %s1053_s18 }
 0x12b   :  { %12 = sbr.rel (!%p10_p10) target bundleno = 3 (0x3), region = 76 }

// kernel: _lambda_.13
= control target key start
LH: loop header
LB: loop body
LE: loop exit
PB: predicated region body
PF: predicated region fallthrough
CT: control target
= control target key end

     0   :  { %s929_s12 = smov 0   ;;  %s931_s13 = smov 0   ;;  %s1040_s0 = inlined_call_operand.vmem [shape: bf16[8,8,5376], index: 0, kind: input, shape index: {}]   ;;  %s1041_s1 = inlined_call_operand.vmem [shape: bf16[8,5376,128], index: 1, kind: input, shape index: {}]   ;;  %s1042_s2 = inlined_call_operand.vmem [shape: f32[8,1,128], index: 2, kind: input, shape index: {}]   ;;  %s1043_s3 = inlined_call_operand.vmem [shape: f32[8,8,128], index: 3, kind: output, shape index: {}]  }
   0x1   :  { %s933_s14 = smov 0   ;;  %s935_s15 = smov 0  }
   0x2   :  { %s937_s16 = smov 0  }
   0x3 LB: > { %s25_s17 = sadd.s32 1, %s896_s14  ;;  %s32_s18 = sadd.s32 1, %s900_s15  ;;  %s904_s16 = sphi %s937_s16, %s13_s16   ;;  %s900_s15 = sphi %s935_s15, %s1047_s15   ;;  %s896_s14 = sphi %s933_s14, %s1046_s14   ;;  %s892_s13 = sphi %s931_s13, %s1045_s13   ;;  %s888_s12 = sphi %s929_s12, %s1044_s12  }
   0x4   : > { %p26_p0 = scmp.ge.s32.totalorder %s25_s17, 14  ;;  %p707_p1 = scmp.ge.s32.totalorder %s904_s16, 1 }
   0x5   : > { %p196_p2 = scmp.lt.s32.totalorder %s904_s16, 113 }
   0x6   : > { %s1049_s17 = smov (%p26_p0, %s25_s17), 0  ;;  %s1051_s18 = smov (!%p26_p0, %s32_s18), %s900_s15 }
   0x7   : > { %p197_p3 = pnand %p707_p1, %p196_p2  ;;  %p34_p4 = scmp.ge.s32.totalorder %s1051_s18, 8 }
   0x8   : > { %s242_s19 = smul.u32 (!%p197_p3), 3, %s888_s12  ;;  %p243_p5 = scmp.lt.s32.totalorder (!%p197_p3), %s892_s13, 7 }
   0x9   : > { %s1053_s18 = smov (%p34_p4, %s1051_s18), 0  ;;  %200 = sbr.rel (%p197_p3) target bundleno = 296 (0x128), region = 32 }
   0xa   : > { %s256_s20 = smul.u32 (!%p197_p3), 48, %s888_s12  ;;  %p247_p6 = scmp.lt.s32.totalorder (!%p197_p3), %s242_s19, 41 }
   0xb   : > { %p711_p8 = scmp.ne.s32.totalorder (!%p197_p3), %s888_s12, 0 }
   0xc   : > { %p259_p7 = scmp.lt.s32.totalorder (!%p197_p3), %s256_s20, 671 }
  0x10   : > { %s1055_s13 = smov (!%p243_p5, %s892_s13), 7  ;;  %s1057_s19 = smov (!%p247_p6, %s242_s19), 41 }
  0x11   : > { %s794_s21 = smul.u32 42, %s1055_s13  ;;  %s268_s24 = scalar_lea.vmem %s1042_s2, %s1055_s13  ;;  %v906_v0 = vmov (!%p711_p8), 0.0  }
  0x12   : > { %s1059_s20 = smov (!%p259_p7, %s256_s20), 671  ;;  %s795_s26 = smul.u32 672, %s1055_s13 }
  0x13   : > { %s252_s25 = sadd.s32 %s794_s21, %s1057_s19  ;;  %s710_s28 = sshll.u32 %s1055_s13, 3 }
  0x14   : > { %s708_s27 = sshll.u32 %s252_s25, 2  ;;  %s262_s5 = sadd.s32 %s795_s26, %s1059_s20 }
  0x15   : > { %s975_s4 = scalar_lea.vmem %s1040_s0, %s708_s27  ;;  %s709_s6 = sshll.u32 %s262_s5, 2 }
  0x16   : > { %s980_s9 = scalar_lea.vmem %s1043_s3, %s710_s28  ;;  %s985_s22 = scalar_lea.vmem %s1041_s1, %s709_s6 }
  0x17   : > { %280 = sbr.rel (%p711_p8) target bundleno = 30 (0x1e), region = 36  ;;  %281 = vst [vmem:[%s980_s9] sm:$0xff] (!%p711_p8), %v906_v0 }
  0x1e PF: > { %v839_v1 = vld [vmem:[%s985_s22 + $0x40] sm:$0xff]   ;;  %v907_v2 = vmov 0.0   ;;  %vm908_vm0 = vmmov 0   ;;  %v842_v5 = vld [vmem:[%s985_s22 + $0x48] sm:$0xff]   ;;  %v845_v8 = vld [vmem:[%s985_s22 + $0x50] sm:$0xff]   ;;  %p739_p9 = scmp.ne.s32.totalorder %s888_s12, 13 }
  0x1f   : > { %774 = vmatprep.subr.bf16.mxu1 %v907_v2  ;;  %v840_v3 = vld [vmem:[%s985_s22] sm:$0xff]   ;;  %743 = vmatprep.subr.bf16.mxu0 %v839_v1  ;;  %v843_v6 = vld [vmem:[%s985_s22 + $0x8] sm:$0xff]   ;;  %v846_v9 = vld [vmem:[%s985_s22 + $0x10] sm:$0xff]  }
  0x20   : > { %v841_v4 = vld [vmem:[%s985_s22 + $0x80] sm:$0xff]   ;;  %790 = vmatprep.mubr.msk.bf16.mxu1 %vm908_vm0, %v907_v2  ;;  %744 = vmatpush3.bf16.msra.mxu0 %v840_v3  ;;  %v844_v7 = vld [vmem:[%s985_s22 + $0x88] sm:$0xff]   ;;  %v847_v10 = vld [vmem:[%s985_s22 + $0x90] sm:$0xff]  }
  0x21   : > { %775 = vmatpush3.bf16.msra.mxu1 %v841_v4  ;;  %745 = vmatprep.subr.bf16.mxu0 %v842_v5  ;;  %v848_v11 = vld [vmem:[%s985_s22 + $0x58] sm:$0xff]   ;;  %v851_v14 = vld [vmem:[%s985_s22 + $0x60] sm:$0xff]   ;;  %v854_v17 = vld [vmem:[%s985_s22 + $0x68] sm:$0xff]  }
  0x22   : > { %776 = vmatprep.subr.bf16.mxu1 %v907_v2  ;;  %v849_v12 = vld [vmem:[%s985_s22 + $0x18] sm:$0xff]   ;;  %v852_v15 = vld [vmem:[%s985_s22 + $0x20] sm:$0xff]   ;;  %v855_v18 = vld [vmem:[%s985_s22 + $0x28] sm:$0xff]  }
  0x23   : > { %v850_v13 = vld [vmem:[%s985_s22 + $0x98] sm:$0xff]   ;;  %v853_v16 = vld [vmem:[%s985_s22 + $0xa0] sm:$0xff]   ;;  %v856_v19 = vld [vmem:[%s985_s22 + $0xa8] sm:$0xff]  }
  0x24   : > { %746 = vmatpush3.bf16.msra.mxu0 %v843_v6  ;;  %v857_v20 = vld [vmem:[%s985_s22 + $0x70] sm:$0xff]   ;;  %v860_v23 = vld [vmem:[%s985_s22 + $0x78] sm:$0xff]   ;;  %v283_v24 = vld [vmem:[%s975_s4] sm:$0xff] }
  0x25   : > { %777 = vmatpush3.bf16.msra.mxu1 %v844_v7  ;;  %747 = vmatprep.subr.bf16.mxu0 %v845_v8  ;;  %v858_v21 = vld [vmem:[%s985_s22 + $0x30] sm:$0xff]   ;;  %v713_v25 = vcombine.high %v283_v24, %v283_v24  ;;  %v861_v26 = vld [vmem:[%s985_s22 + $0x38] sm:$0xff]   ;;  %v712_v28 = vcombine.low %v283_v24, %v283_v24  ;;  %v865_v29 = vld [vmem:[%s975_s4 + $0x8] ss:$0 sps:$4 sm:$0xff]  }
  0x26   : > { %778 = vmatprep.subr.bf16.mxu1 %v907_v2  ;;  %v859_v22 = vld [vmem:[%s985_s22 + $0xb0] sm:$0xff]   ;;  %v862_v27 = vld [vmem:[%s985_s22 + $0xb8] sm:$0xff]   ;;  %v282_v36 = vld [vmem:[%s980_s9] sm:$0xff] }
  0x27   : > { %520 = vmatprep.mubr.bf16.mxu0 %v713_v25  ;;  %v740_v43 = vld [vmem:[%s268_s24] ss:$0 sm:$0xff] (!%p739_p9) }
  0x28   : > { %748 = vmatpush3.bf16.msra.mxu0 %v846_v9 }
  0x29   : > { %779 = vmatpush3.bf16.msra.mxu1 %v847_v10  ;;  %749 = vmatprep.subr.bf16.mxu0 %v848_v11 }
  0x2a   : > { %780 = vmatprep.subr.bf16.mxu1 %v907_v2 }
  0x2c   : > { %750 = vmatpush3.bf16.msra.mxu0 %v849_v12 }
  0x2d   : > { %781 = vmatpush3.bf16.msra.mxu1 %v850_v13  ;;  %751 = vmatprep.subr.bf16.mxu0 %v851_v14 }
  0x2e   : > { %782 = vmatprep.subr.bf16.mxu1 %v907_v2 }
  0x30   : > { %752 = vmatpush3.bf16.msra.mxu0 %v852_v15 }
  0x31   : > { %783 = vmatpush3.bf16.msra.mxu1 %v853_v16  ;;  %753 = vmatprep.subr.bf16.mxu0 %v854_v17 }
  0x32   : > { %784 = vmatprep.subr.bf16.mxu1 %v907_v2 }
  0x34   : > { %754 = vmatpush3.bf16.msra.mxu0 %v855_v18 }
  0x35   : > { %785 = vmatpush3.bf16.msra.mxu1 %v856_v19  ;;  %755 = vmatprep.subr.bf16.mxu0 %v857_v20 }
  0x36   : > { %786 = vmatprep.subr.bf16.mxu1 %v907_v2 }
  0x38   : > { %756 = vmatpush3.bf16.msra.mxu0 %v858_v21 }
  0x39   : > { %787 = vmatpush3.bf16.msra.mxu1 %v859_v22  ;;  %757 = vmatprep.subr.bf16.mxu0 %v860_v23 }
  0x3a   : > { %788 = vmatprep.subr.bf16.mxu1 %v907_v2 }
  0x3c   : > { %758 = vmatpush3.bf16.msra.mxu0 %v861_v26 }
  0x3d   : > { %789 = vmatpush3.bf16.msra.mxu1 %v862_v27 }
  0x3f   : > { %521 = vmatmul.mubr.bf16.vlgmr.msra.gmra.mrb[0].mxu0 %v712_v28 }
  0x40   : > { %791 = vmatmul.mubr.bf16.vlgmr.msra.gmra.mrb[0].mxu1 %v865_v29 }
 0x112   : > { %v759_v30 = vpop.f32.mrb[0].mxu0 }
 0x113   : > { %v562_v31 = vpop.f32.mrb[0].mxu1  ;;  %v760_v32 = vpop.f32.mrb[1].mxu0 }
 0x114   : > { %v761_v33 = vadd.f32 %v760_v32, %v759_v30  ;;  %v792_v34 = vpop.f32.mrb[1].mxu1  ;;  %v762_v35 = vpop.f32.mrb[2].mxu0  ;;  %573 = sbr.rel (%p739_p9) target bundleno = 296 (0x128), region = 40 }
 0x115   : > { %v565_v37 = vpop.f32.mrb[2].mxu1  ;;  %v763_v38 = vpop.f32.mrb[3].mxu0 }
 0x116   : > { %v563_v39 = vadd.f32 %v761_v33, %v562_v31  ;;  %v793_v40 = vpop.f32.mrb[3].mxu1 }
 0x118   : > { %v568_v41 = vadd.f32 %v563_v39, %v282_v36 }
 0x11a   : > { %569 = vst [vmem:[%s980_s9] sm:$0xff] %v568_v41 }
 0x121   : > { %v574_v42 = vld [vmem:[%s980_s9] sm:$0xff] }
 0x122   : > { %v582_v44 = vadd.f32 %v740_v43, %v574_v42 }
 0x124   : > { %vm583_vm1 = vcmp.ge.f32.partialorder %v582_v44, 0.0  ;;  %v584_v45 = vmul.f32 0.1, %v582_v44 }
 0x126   : > { %v585_v46 = vsel %vm583_vm1, %v582_v44, %v584_v45 }
 0x127   : > { %586 = vst [vmem:[%s980_s9] sm:$0xff] %v585_v46 }
 0x128 PF: > { %s13_s16 = sadd.s32 1, %s904_s16   ;;  %s1044_s12 = smov %s896_s14 }
 0x129   : > { %p10_p10 = scmp.ge.s32.totalorder %s13_s16, 114   ;;  %s1045_s13 = smov %s900_s15 }
 0x12a   : > { %s1046_s14 = smov %s1049_s17  ;;  %s1047_s15 = smov %s1053_s18 }
 0x12b   :  { %12 = sbr.rel (!%p10_p10) target bundleno = 3 (0x3), region = 76 }

// kernel: _lambda_.14
= control target key start
LH: loop header
LB: loop body
LE: loop exit
PB: predicated region body
PF: predicated region fallthrough
CT: control target
= control target key end

     0   :  { %s2778_s12 = smov 0   ;;  %s2780_s13 = smov 0   ;;  %s3238_s0 = inlined_call_operand.vmem [shape: bf16[1,8,5120], index: 0, kind: input, shape index: {}]   ;;  %s3239_s1 = inlined_call_operand.vmem [shape: bf16[1,5120,1024], index: 1, kind: input, shape index: {}]   ;;  %s3240_s2 = inlined_call_operand.vmem [shape: f32[1,1,1024], index: 2, kind: input, shape index: {}]   ;;  %s3241_s3 = inlined_call_operand.vmem [shape: f32[1,8,1024], index: 3, kind: output, shape index: {}]  }
   0x1   :  { %s2782_s14 = smov 0  }
   0x2 LB: > { %s25_s15 = sadd.s32 1, %s2751_s13  ;;  %p2432_p0 = scmp.ge.s32.totalorder %s2755_s14, 1  ;;  %s2755_s14 = sphi %s2782_s14, %s13_s14   ;;  %s2751_s13 = sphi %s2780_s13, %s3243_s13   ;;  %s2747_s12 = sphi %s2778_s12, %s3242_s12  }
   0x3   : > { %p26_p1 = scmp.ge.s32.totalorder %s25_s15, 10  ;;  %p198_p2 = scmp.lt.s32.totalorder %s2755_s14, 11 }
   0x5   : > { %s3245_s15 = smov (%p26_p1, %s25_s15), 0  ;;  %p199_p3 = pnand %p2432_p0, %p198_p2 }
   0x6   : > { %s2433_s16 = sshll.u32 (!%p199_p3), %s2747_s12, 2  ;;  %s2435_s17 = sshll.u32 (!%p199_p3), %s2747_s12, 6 }
   0x7   : > { %202 = sbr.rel (%p199_p3) target bundleno = 518 (0x206), region = 32  ;;  %p253_p4 = scmp.lt.s32.totalorder (!%p199_p3), %s2433_s16, 39 }
   0x8   : > { %p265_p5 = scmp.lt.s32.totalorder (!%p199_p3), %s2435_s17, 639  ;;  %p2438_p6 = scmp.ne.s32.totalorder (!%p199_p3), %s2747_s12, 0 }
   0xe   : > { %s3247_s16 = smov (!%p253_p4, %s2433_s16), 39  ;;  %s3249_s17 = smov (!%p265_p5, %s2435_s17), 639 }
   0xf   : > { %s2434_s18 = sshll.u32 %s3247_s16, 2  ;;  %s2703_s22 = sshll.u32 %s3249_s17, 5  ;;  %v2757_v0 = vmov (!%p2438_p6), 0.0  }
  0x10   : > { %s2803_s21 = scalar_lea.vmem %s3238_s0, %s2434_s18  ;;  %s2808_s25 = scalar_lea.vmem %s3239_s1, %s2703_s22  ;;  %290 = vst [vmem:[%s3241_s3] sm:$0xff] (!%p2438_p6), %v2757_v0  ;;  %291 = vst [vmem:[%s3241_s3 + $0x8] sm:$0xff] (!%p2438_p6), %v2757_v0 }
  0x11   : > { %289 = sbr.rel (%p2438_p6) target bundleno = 24 (0x18), region = 36  ;;  %292 = vst [vmem:[%s3241_s3 + $0x10] sm:$0xff] (!%p2438_p6), %v2757_v0  ;;  %293 = vst [vmem:[%s3241_s3 + $0x18] sm:$0xff] (!%p2438_p6), %v2757_v0 }
  0x12   : > { %294 = vst [vmem:[%s3241_s3 + $0x20] sm:$0xff] (!%p2438_p6), %v2757_v0  ;;  %295 = vst [vmem:[%s3241_s3 + $0x28] sm:$0xff] (!%p2438_p6), %v2757_v0 }
  0x13   : > { %296 = vst [vmem:[%s3241_s3 + $0x30] sm:$0xff] (!%p2438_p6), %v2757_v0  ;;  %297 = vst [vmem:[%s3241_s3 + $0x38] sm:$0xff] (!%p2438_p6), %v2757_v0 }
  0x18 PF: > { %v308_v1 = vld [vmem:[%s2808_s25] sm:$0xff]  ;;  %v2867_v55 = vld [vmem:[%s2803_s21 + $0x8] sm:$0xff]  ;;  %p2699_p7 = scmp.ne.s32.totalorder %s2747_s12, 9 }
  0x19   : > { %v312_v2 = vld [vmem:[%s2808_s25 + $0x20] sm:$0xff]  ;;  %v2877_v60 = vcombine.high %v2867_v55, %v2867_v55 }
  0x1a   : > { %v436_v3 = vld [vmem:[%s2808_s25 + $0x400] sm:$0xff]  ;;  %v2444_v4 = vcombine.high %v308_v1, %v312_v2  ;;  %v2443_v6 = vcombine.low %v308_v1, %v312_v2 }
  0x1b   : > { %v440_v5 = vld [vmem:[%s2808_s25 + $0x420] sm:$0xff]  ;;  %1931 = vmatprep.mubr.bf16.mxu1 %v2877_v60 }
  0x1c   : > { %v316_v7 = vld [vmem:[%s2808_s25 + $0x40] sm:$0xff]  ;;  %v2572_v9 = vcombine.high %v436_v3, %v440_v5  ;;  %v2571_v10 = vcombine.low %v436_v3, %v440_v5  ;;  %1858 = vmatprep.subr.bf16.mxu0 %v2444_v4 }
  0x1d   : > { %v320_v8 = vld [vmem:[%s2808_s25 + $0x60] sm:$0xff]  ;;  %1859 = vmatpush1.bf16.msra.mxu0 %v2443_v6 }
  0x1e   : > { %v2452_v11 = vcombine.high %v316_v7, %v320_v8  ;;  %v444_v12 = vld [vmem:[%s2808_s25 + $0x440] sm:$0xff]  ;;  %1899 = vmatprep.subr.bf16.mxu1 %v2572_v9  ;;  %v2451_v19 = vcombine.low %v316_v7, %v320_v8 }
  0x1f   : > { %v448_v13 = vld [vmem:[%s2808_s25 + $0x460] sm:$0xff]  ;;  %1900 = vmatpush1.bf16.msra.mxu1 %v2571_v10 }
  0x20   : > { %v324_v14 = vld [vmem:[%s2808_s25 + $0x80] sm:$0xff]  ;;  %v2580_v15 = vcombine.high %v444_v12, %v448_v13  ;;  %1860 = vmatprep.subr.bf16.mxu0 %v2452_v11  ;;  %v2579_v20 = vcombine.low %v444_v12, %v448_v13 }
  0x21   : > { %v328_v16 = vld [vmem:[%s2808_s25 + $0xa0] sm:$0xff]  ;;  %1861 = vmatpush1.bf16.msra.mxu0 %v2451_v19 }
  0x22   : > { %v452_v17 = vld [vmem:[%s2808_s25 + $0x480] sm:$0xff]  ;;  %v2460_v21 = vcombine.high %v324_v14, %v328_v16  ;;  %1901 = vmatprep.subr.bf16.mxu1 %v2580_v15  ;;  %v2459_v27 = vcombine.low %v324_v14, %v328_v16 }
  0x23   : > { %v456_v18 = vld [vmem:[%s2808_s25 + $0x4a0] sm:$0xff]  ;;  %1902 = vmatpush1.bf16.msra.mxu1 %v2579_v20 }
  0x24   : > { %v2588_v22 = vcombine.high %v452_v17, %v456_v18  ;;  %v332_v23 = vld [vmem:[%s2808_s25 + $0xc0] sm:$0xff]  ;;  %1862 = vmatprep.subr.bf16.mxu0 %v2460_v21  ;;  %v2587_v28 = vcombine.low %v452_v17, %v456_v18 }
  0x25   : > { %v336_v24 = vld [vmem:[%s2808_s25 + $0xe0] sm:$0xff]  ;;  %1863 = vmatpush1.bf16.msra.mxu0 %v2459_v27 }
  0x26   : > { %v460_v25 = vld [vmem:[%s2808_s25 + $0x4c0] sm:$0xff]  ;;  %v2468_v29 = vcombine.high %v332_v23, %v336_v24  ;;  %1903 = vmatprep.subr.bf16.mxu1 %v2588_v22  ;;  %v2467_v35 = vcombine.low %v332_v23, %v336_v24 }
  0x27   : > { %v464_v26 = vld [vmem:[%s2808_s25 + $0x4e0] sm:$0xff]  ;;  %1904 = vmatpush1.bf16.msra.mxu1 %v2587_v28 }
  0x28   : > { %v2596_v30 = vcombine.high %v460_v25, %v464_v26  ;;  %v340_v31 = vld [vmem:[%s2808_s25 + $0x100] sm:$0xff]  ;;  %1864 = vmatprep.subr.bf16.mxu0 %v2468_v29  ;;  %v2595_v36 = vcombine.low %v460_v25, %v464_v26 }
  0x29   : > { %v344_v32 = vld [vmem:[%s2808_s25 + $0x120] sm:$0xff]  ;;  %1865 = vmatpush1.bf16.msra.mxu0 %v2467_v35 }
  0x2a   : > { %v468_v33 = vld [vmem:[%s2808_s25 + $0x500] sm:$0xff]  ;;  %v2476_v37 = vcombine.high %v340_v31, %v344_v32  ;;  %1905 = vmatprep.subr.bf16.mxu1 %v2596_v30  ;;  %v2475_v43 = vcombine.low %v340_v31, %v344_v32 }
  0x2b   : > { %v472_v34 = vld [vmem:[%s2808_s25 + $0x520] sm:$0xff]  ;;  %1906 = vmatpush1.bf16.msra.mxu1 %v2595_v36 }
  0x2c   : > { %v2604_v38 = vcombine.high %v468_v33, %v472_v34  ;;  %v348_v39 = vld [vmem:[%s2808_s25 + $0x140] sm:$0xff]  ;;  %1866 = vmatprep.subr.bf16.mxu0 %v2476_v37  ;;  %v2603_v44 = vcombine.low %v468_v33, %v472_v34 }
  0x2d   : > { %v352_v40 = vld [vmem:[%s2808_s25 + $0x160] sm:$0xff]  ;;  %1867 = vmatpush1.bf16.msra.mxu0 %v2475_v43 }
  0x2e   : > { %v476_v41 = vld [vmem:[%s2808_s25 + $0x540] sm:$0xff]  ;;  %v2484_v45 = vcombine.high %v348_v39, %v352_v40  ;;  %1907 = vmatprep.subr.bf16.mxu1 %v2604_v38  ;;  %v2483_v51 = vcombine.low %v348_v39, %v352_v40 }
  0x2f   : > { %v480_v42 = vld [vmem:[%s2808_s25 + $0x560] sm:$0xff]  ;;  %1908 = vmatpush1.bf16.msra.mxu1 %v2603_v44 }
  0x30   : > { %v2612_v46 = vcombine.high %v476_v41, %v480_v42  ;;  %v356_v47 = vld [vmem:[%s2808_s25 + $0x180] sm:$0xff]  ;;  %1868 = vmatprep.subr.bf16.mxu0 %v2484_v45  ;;  %v2611_v52 = vcombine.low %v476_v41, %v480_v42 }
  0x31   : > { %v360_v48 = vld [vmem:[%s2808_s25 + $0x1a0] sm:$0xff]  ;;  %1869 = vmatpush1.bf16.msra.mxu0 %v2483_v51 }
  0x32   : > { %v484_v49 = vld [vmem:[%s2808_s25 + $0x580] sm:$0xff]  ;;  %v2492_v53 = vcombine.high %v356_v47, %v360_v48  ;;  %1909 = vmatprep.subr.bf16.mxu1 %v2612_v46  ;;  %v2491_v63 = vcombine.low %v356_v47, %v360_v48 }
  0x33   : > { %v488_v50 = vld [vmem:[%s2808_s25 + $0x5a0] sm:$0xff]  ;;  %1910 = vmatpush1.bf16.msra.mxu1 %v2611_v52 }
  0x34   : > { %v2864_v54 = vld [vmem:[%s2803_s21] sm:$0xff]  ;;  %v2620_v56 = vcombine.high %v484_v49, %v488_v50  ;;  %1870 = vmatprep.subr.bf16.mxu0 %v2492_v53  ;;  %v2619_v0 = vcombine.low %v484_v49, %v488_v50 }
  0x35   : > { %v364_v57 = vld [vmem:[%s2808_s25 + $0x1c0] sm:$0xff]  ;;  %v2873_v59 = vcombine.high %v2864_v54, %v2864_v54  ;;  %1871 = vmatpush1.bf16.msra.mxu0 %v2491_v63 }
  0x36   : > { %v368_v58 = vld [vmem:[%s2808_s25 + $0x1e0] sm:$0xff]  ;;  %1911 = vmatprep.subr.bf16.mxu1 %v2620_v56 }
  0x37   : > { %v492_v61 = vld [vmem:[%s2808_s25 + $0x5c0] sm:$0xff]  ;;  %1890 = vmatprep.mubr.bf16.mxu0 %v2873_v59  ;;  %v2500_v1 = vcombine.high %v364_v57, %v368_v58  ;;  %v2499_v7 = vcombine.low %v364_v57, %v368_v58  ;;  %1912 = vmatpush1.bf16.msra.mxu1 %v2619_v0 }
  0x38   : > { %v496_v62 = vld [vmem:[%s2808_s25 + $0x5e0] sm:$0xff] }
  0x39   : > { %v2628_v2 = vcombine.high %v492_v61, %v496_v62  ;;  %v372_v3 = vld [vmem:[%s2808_s25 + $0x200] sm:$0xff]  ;;  %1872 = vmatprep.subr.bf16.mxu0 %v2500_v1  ;;  %v2627_v8 = vcombine.low %v492_v61, %v496_v62 }
  0x3a   : > { %v376_v4 = vld [vmem:[%s2808_s25 + $0x220] sm:$0xff]  ;;  %1873 = vmatpush1.bf16.msra.mxu0 %v2499_v7  ;;  %v309_v7 = vld [vmem:[%s2808_s25 + $0x8] sm:$0xff] }
  0x3b   : > { %v500_v5 = vld [vmem:[%s2808_s25 + $0x600] sm:$0xff]  ;;  %v2508_v9 = vcombine.high %v372_v3, %v376_v4  ;;  %1913 = vmatprep.subr.bf16.mxu1 %v2628_v2  ;;  %v2507_v15 = vcombine.low %v372_v3, %v376_v4 }
  0x3c   : > { %v504_v6 = vld [vmem:[%s2808_s25 + $0x620] sm:$0xff]  ;;  %1914 = vmatpush1.bf16.msra.mxu1 %v2627_v8  ;;  %v313_v8 = vld [vmem:[%s2808_s25 + $0x28] sm:$0xff] }
  0x3d   : > { %v2636_v10 = vcombine.high %v500_v5, %v504_v6  ;;  %v380_v11 = vld [vmem:[%s2808_s25 + $0x240] sm:$0xff]  ;;  %1874 = vmatprep.subr.bf16.mxu0 %v2508_v9  ;;  %v2635_v16 = vcombine.low %v500_v5, %v504_v6  ;;  %v437_v9 = vld [vmem:[%s2808_s25 + $0x408] sm:$0xff] }
  0x3e   : > { %v384_v12 = vld [vmem:[%s2808_s25 + $0x260] sm:$0xff]  ;;  %1875 = vmatpush1.bf16.msra.mxu0 %v2507_v15  ;;  %v317_v15 = vld [vmem:[%s2808_s25 + $0x48] sm:$0xff] }
  0x3f   : > { %v508_v13 = vld [vmem:[%s2808_s25 + $0x640] sm:$0xff]  ;;  %v2516_v17 = vcombine.high %v380_v11, %v384_v12  ;;  %1915 = vmatprep.subr.bf16.mxu1 %v2636_v10  ;;  %v2515_v23 = vcombine.low %v380_v11, %v384_v12  ;;  %v441_v10 = vld [vmem:[%s2808_s25 + $0x428] sm:$0xff] }
  0x40   : > { %v512_v14 = vld [vmem:[%s2808_s25 + $0x660] sm:$0xff]  ;;  %1916 = vmatpush1.bf16.msra.mxu1 %v2635_v16  ;;  %v321_v16 = vld [vmem:[%s2808_s25 + $0x68] sm:$0xff] }
  0x41   : > { %v2644_v18 = vcombine.high %v508_v13, %v512_v14  ;;  %v388_v19 = vld [vmem:[%s2808_s25 + $0x280] sm:$0xff]  ;;  %1876 = vmatprep.subr.bf16.mxu0 %v2516_v17  ;;  %v2643_v24 = vcombine.low %v508_v13, %v512_v14  ;;  %v2446_v13 = vcombine.high %v309_v7, %v313_v8  ;;  %v2574_v14 = vcombine.high %v437_v9, %v441_v10 }
  0x42   : > { %v392_v20 = vld [vmem:[%s2808_s25 + $0x2a0] sm:$0xff]  ;;  %1877 = vmatpush1.bf16.msra.mxu0 %v2515_v23  ;;  %v2923_v17 = vcombine.low %v2864_v54, %v2864_v54  ;;  %v2454_v23 = vcombine.high %v317_v15, %v321_v16  ;;  %v329_v54 = vld [vmem:[%s2808_s25 + $0xa8] sm:$0xff] }
  0x43   : > { %v516_v21 = vld [vmem:[%s2808_s25 + $0x680] sm:$0xff]  ;;  %v2524_v25 = vcombine.high %v388_v19, %v392_v20  ;;  %1917 = vmatprep.subr.bf16.mxu1 %v2644_v18  ;;  %v2523_v31 = vcombine.low %v388_v19, %v392_v20  ;;  %v445_v18 = vld [vmem:[%s2808_s25 + $0x448] sm:$0xff]  ;;  %v2929_v20 = vcombine.low %v2867_v55, %v2867_v55  ;;  %v2453_v55 = vcombine.low %v317_v15, %v321_v16 }
  0x44   : > { %v520_v22 = vld [vmem:[%s2808_s25 + $0x6a0] sm:$0xff]  ;;  %1918 = vmatpush1.bf16.msra.mxu1 %v2643_v24  ;;  %v449_v19 = vld [vmem:[%s2808_s25 + $0x468] sm:$0xff] }
  0x45   : > { %v2652_v26 = vcombine.high %v516_v21, %v520_v22  ;;  %v396_v27 = vld [vmem:[%s2808_s25 + $0x2c0] sm:$0xff]  ;;  %1878 = vmatprep.subr.bf16.mxu0 %v2524_v25  ;;  %v2651_v32 = vcombine.low %v516_v21, %v520_v22  ;;  %v2445_v21 = vcombine.low %v309_v7, %v313_v8  ;;  %v2573_v22 = vcombine.low %v437_v9, %v441_v10  ;;  %v325_v25 = vld [vmem:[%s2808_s25 + $0x88] sm:$0xff] }
  0x46   : > { %v400_v28 = vld [vmem:[%s2808_s25 + $0x2e0] sm:$0xff]  ;;  %1879 = vmatpush1.bf16.msra.mxu0 %v2523_v31  ;;  %v2582_v24 = vcombine.high %v445_v18, %v449_v19  ;;  %v333_v31 = vld [vmem:[%s2808_s25 + $0xc8] sm:$0xff] }
  0x47   : > { %v524_v29 = vld [vmem:[%s2808_s25 + $0x6c0] sm:$0xff]  ;;  %v2532_v33 = vcombine.high %v396_v27, %v400_v28  ;;  %1919 = vmatprep.subr.bf16.mxu1 %v2652_v26  ;;  %v2531_v39 = vcombine.low %v396_v27, %v400_v28  ;;  %v453_v26 = vld [vmem:[%s2808_s25 + $0x488] sm:$0xff]  ;;  %v2581_v28 = vcombine.low %v445_v18, %v449_v19 }
  0x48   : > { %v528_v30 = vld [vmem:[%s2808_s25 + $0x6e0] sm:$0xff]  ;;  %1920 = vmatpush1.bf16.msra.mxu1 %v2651_v32  ;;  %v457_v27 = vld [vmem:[%s2808_s25 + $0x4a8] sm:$0xff] }
  0x49   : > { %v2660_v34 = vcombine.high %v524_v29, %v528_v30  ;;  %v404_v35 = vld [vmem:[%s2808_s25 + $0x300] sm:$0xff]  ;;  %1880 = vmatprep.subr.bf16.mxu0 %v2532_v33  ;;  %v2659_v40 = vcombine.low %v524_v29, %v528_v30  ;;  %v2462_v29 = vcombine.high %v325_v25, %v329_v54  ;;  %v2590_v30 = vcombine.high %v453_v26, %v457_v27  ;;  %v337_v32 = vld [vmem:[%s2808_s25 + $0xe8] sm:$0xff] }
  0x4a   : > { %v408_v36 = vld [vmem:[%s2808_s25 + $0x320] sm:$0xff]  ;;  %1881 = vmatpush1.bf16.msra.mxu0 %v2531_v39  ;;  %v461_v33 = vld [vmem:[%s2808_s25 + $0x4c8] sm:$0xff] }
  0x4b   : > { %v532_v37 = vld [vmem:[%s2808_s25 + $0x700] sm:$0xff]  ;;  %v2540_v41 = vcombine.high %v404_v35, %v408_v36  ;;  %1921 = vmatprep.subr.bf16.mxu1 %v2660_v34  ;;  %v2539_v47 = vcombine.low %v404_v35, %v408_v36  ;;  %v465_v34 = vld [vmem:[%s2808_s25 + $0x4e8] sm:$0xff]  ;;  %v2461_v35 = vcombine.low %v325_v25, %v329_v54  ;;  %v2589_v36 = vcombine.low %v453_v26, %v457_v27 }
  0x4c   : > { %v536_v38 = vld [vmem:[%s2808_s25 + $0x720] sm:$0xff]  ;;  %1922 = vmatpush1.bf16.msra.mxu1 %v2659_v40  ;;  %v341_v39 = vld [vmem:[%s2808_s25 + $0x108] sm:$0xff] }
  0x4d   : > { %v2668_v42 = vcombine.high %v532_v37, %v536_v38  ;;  %v412_v43 = vld [vmem:[%s2808_s25 + $0x340] sm:$0xff]  ;;  %1882 = vmatprep.subr.bf16.mxu0 %v2540_v41  ;;  %v2667_v48 = vcombine.low %v532_v37, %v536_v38  ;;  %v2470_v37 = vcombine.high %v333_v31, %v337_v32  ;;  %v2598_v38 = vcombine.high %v461_v33, %v465_v34  ;;  %v345_v40 = vld [vmem:[%s2808_s25 + $0x128] sm:$0xff] }
  0x4e   : > { %v416_v44 = vld [vmem:[%s2808_s25 + $0x360] sm:$0xff]  ;;  %1883 = vmatpush1.bf16.msra.mxu0 %v2539_v47  ;;  %v469_v41 = vld [vmem:[%s2808_s25 + $0x508] sm:$0xff] }
  0x4f   : > { %v540_v45 = vld [vmem:[%s2808_s25 + $0x740] sm:$0xff]  ;;  %v2548_v49 = vcombine.high %v412_v43, %v416_v44  ;;  %1923 = vmatprep.subr.bf16.mxu1 %v2668_v42  ;;  %v2547_v57 = vcombine.low %v412_v43, %v416_v44  ;;  %v473_v42 = vld [vmem:[%s2808_s25 + $0x528] sm:$0xff]  ;;  %v2469_v43 = vcombine.low %v333_v31, %v337_v32  ;;  %v2597_v44 = vcombine.low %v461_v33, %v465_v34 }
  0x50   : > { %v544_v46 = vld [vmem:[%s2808_s25 + $0x760] sm:$0xff]  ;;  %1924 = vmatpush1.bf16.msra.mxu1 %v2667_v48  ;;  %v349_v47 = vld [vmem:[%s2808_s25 + $0x148] sm:$0xff] }
  0x51   : > { %v2676_v50 = vcombine.high %v540_v45, %v544_v46  ;;  %v420_v51 = vld [vmem:[%s2808_s25 + $0x380] sm:$0xff]  ;;  %1884 = vmatprep.subr.bf16.mxu0 %v2548_v49  ;;  %v2675_v58 = vcombine.low %v540_v45, %v544_v46  ;;  %v2478_v45 = vcombine.high %v341_v39, %v345_v40  ;;  %v2606_v46 = vcombine.high %v469_v41, %v473_v42  ;;  %v353_v48 = vld [vmem:[%s2808_s25 + $0x168] sm:$0xff] }
  0x52   : > { %v424_v52 = vld [vmem:[%s2808_s25 + $0x3a0] sm:$0xff]  ;;  %1885 = vmatpush1.bf16.msra.mxu0 %v2547_v57  ;;  %v477_v49 = vld [vmem:[%s2808_s25 + $0x548] sm:$0xff] }
  0x53   : > { %v548_v53 = vld [vmem:[%s2808_s25 + $0x780] sm:$0xff]  ;;  %v2556_v61 = vcombine.high %v420_v51, %v424_v52  ;;  %1925 = vmatprep.subr.bf16.mxu1 %v2676_v50  ;;  %v2555_v3 = vcombine.low %v420_v51, %v424_v52  ;;  %v481_v50 = vld [vmem:[%s2808_s25 + $0x568] sm:$0xff]  ;;  %v2477_v51 = vcombine.low %v341_v39, %v345_v40  ;;  %v2605_v52 = vcombine.low %v469_v41, %v473_v42 }
  0x54   : > { %v552_v56 = vld [vmem:[%s2808_s25 + $0x7a0] sm:$0xff]  ;;  %1926 = vmatpush1.bf16.msra.mxu1 %v2675_v58  ;;  %v357_v57 = vld [vmem:[%s2808_s25 + $0x188] sm:$0xff] }
  0x55   : > { %v2684_v62 = vcombine.high %v548_v53, %v552_v56  ;;  %v428_v63 = vld [vmem:[%s2808_s25 + $0x3c0] sm:$0xff]  ;;  %1886 = vmatprep.subr.bf16.mxu0 %v2556_v61  ;;  %v2683_v4 = vcombine.low %v548_v53, %v552_v56  ;;  %v2486_v53 = vcombine.high %v349_v47, %v353_v48  ;;  %v2614_v56 = vcombine.high %v477_v49, %v481_v50  ;;  %v361_v58 = vld [vmem:[%s2808_s25 + $0x1a8] sm:$0xff] }
  0x56   : > { %v432_v0 = vld [vmem:[%s2808_s25 + $0x3e0] sm:$0xff]  ;;  %1887 = vmatpush1.bf16.msra.mxu0 %v2555_v3  ;;  %v485_v61 = vld [vmem:[%s2808_s25 + $0x588] sm:$0xff]  ;;  %v2493_v7 = vcombine.low %v357_v57, %v361_v58 }
  0x57   : > { %v556_v1 = vld [vmem:[%s2808_s25 + $0x7c0] sm:$0xff]  ;;  %v2564_v5 = vcombine.high %v428_v63, %v432_v0  ;;  %1927 = vmatprep.subr.bf16.mxu1 %v2684_v62  ;;  %v2563_v11 = vcombine.low %v428_v63, %v432_v0  ;;  %v489_v62 = vld [vmem:[%s2808_s25 + $0x5a8] sm:$0xff]  ;;  %v2485_v63 = vcombine.low %v349_v47, %v353_v48  ;;  %v2613_v0 = vcombine.low %v477_v49, %v481_v50 }
  0x58   : > { %v560_v2 = vld [vmem:[%s2808_s25 + $0x7e0] sm:$0xff]  ;;  %1928 = vmatpush1.bf16.msra.mxu1 %v2683_v4  ;;  %v365_v3 = vld [vmem:[%s2808_s25 + $0x1c8] sm:$0xff]  ;;  %v2621_v8 = vcombine.low %v485_v61, %v489_v62 }
  0x59   : > { %v2692_v6 = vcombine.high %v556_v1, %v560_v2  ;;  %1888 = vmatprep.subr.bf16.mxu0 %v2564_v5  ;;  %v2691_v12 = vcombine.low %v556_v1, %v560_v2  ;;  %v2494_v1 = vcombine.high %v357_v57, %v361_v58  ;;  %v2622_v2 = vcombine.high %v485_v61, %v489_v62  ;;  %v369_v4 = vld [vmem:[%s2808_s25 + $0x1e8] sm:$0xff] }
  0x5a   : > { %1889 = vmatpush1.bf16.msra.mxu0 %v2563_v11  ;;  %v493_v5 = vld [vmem:[%s2808_s25 + $0x5c8] sm:$0xff]  ;;  %v2502_v9 = vcombine.high %v365_v3, %v369_v4  ;;  %v2501_v15 = vcombine.low %v365_v3, %v369_v4 }
  0x5b   : > { %1929 = vmatprep.subr.bf16.mxu1 %v2692_v6  ;;  %1940 = vmatprep.subr.bf16.mxu0 %v2446_v13  ;;  %v497_v6 = vld [vmem:[%s2808_s25 + $0x5e8] sm:$0xff] }
  0x5c   : > { %1930 = vmatpush1.bf16.msra.mxu1 %v2691_v12  ;;  %v2630_v10 = vcombine.high %v493_v5, %v497_v6  ;;  %v373_v11 = vld [vmem:[%s2808_s25 + $0x208] sm:$0xff]  ;;  %v2629_v16 = vcombine.low %v493_v5, %v497_v6 }
  0x5d   : > { %1981 = vmatprep.subr.bf16.mxu1 %v2574_v14  ;;  %1891 = vmatmul.mubr.bf16.vlgmr.msra.gmra.mrb[0].mxu0 %v2923_v17  ;;  %v377_v12 = vld [vmem:[%s2808_s25 + $0x228] sm:$0xff] }
  0x5e   : > { %1941 = vmatpush1.bf16.msra.mxu0 %v2445_v21  ;;  %1972 = vmatprep.mubr.bf16.mxu0 %v2873_v59  ;;  %v501_v13 = vld [vmem:[%s2808_s25 + $0x608] sm:$0xff]  ;;  %v2510_v18 = vcombine.high %v373_v11, %v377_v12  ;;  %v2509_v25 = vcombine.low %v373_v11, %v377_v12 }
  0x5f   : > { %1932 = vmatmul.mubr.bf16.vlgmr.msra.gmra.mrb[0].mxu1 %v2929_v20  ;;  %1942 = vmatprep.subr.bf16.mxu0 %v2454_v23  ;;  %v505_v14 = vld [vmem:[%s2808_s25 + $0x628] sm:$0xff] }
  0x60   : > { %1982 = vmatpush1.bf16.msra.mxu1 %v2573_v22  ;;  %2013 = vmatprep.mubr.bf16.mxu1 %v2877_v60  ;;  %v2638_v19 = vcombine.high %v501_v13, %v505_v14  ;;  %v381_v21 = vld [vmem:[%s2808_s25 + $0x248] sm:$0xff]  ;;  %v2637_v54 = vcombine.low %v501_v13, %v505_v14 }
  0x61   : > { %1983 = vmatprep.subr.bf16.mxu1 %v2582_v24  ;;  %v385_v22 = vld [vmem:[%s2808_s25 + $0x268] sm:$0xff] }
  0x62   : > { %1943 = vmatpush1.bf16.msra.mxu0 %v2453_v55  ;;  %v509_v23 = vld [vmem:[%s2808_s25 + $0x648] sm:$0xff]  ;;  %v2518_v26 = vcombine.high %v381_v21, %v385_v22  ;;  %v2517_v31 = vcombine.low %v381_v21, %v385_v22 }
  0x63   : > { %1944 = vmatprep.subr.bf16.mxu0 %v2462_v29  ;;  %v513_v24 = vld [vmem:[%s2808_s25 + $0x668] sm:$0xff] }
  0x64   : > { %1984 = vmatpush1.bf16.msra.mxu1 %v2581_v28  ;;  %v2646_v27 = vcombine.high %v509_v23, %v513_v24  ;;  %v389_v55 = vld [vmem:[%s2808_s25 + $0x288] sm:$0xff]  ;;  %v2645_v32 = vcombine.low %v509_v23, %v513_v24 }
  0x65   : > { %1985 = vmatprep.subr.bf16.mxu1 %v2590_v30  ;;  %v393_v28 = vld [vmem:[%s2808_s25 + $0x2a8] sm:$0xff] }
  0x66   : > { %1945 = vmatpush1.bf16.msra.mxu0 %v2461_v35  ;;  %v517_v29 = vld [vmem:[%s2808_s25 + $0x688] sm:$0xff]  ;;  %v2526_v33 = vcombine.high %v389_v55, %v393_v28  ;;  %v2525_v39 = vcombine.low %v389_v55, %v393_v28 }
  0x67   : > { %1946 = vmatprep.subr.bf16.mxu0 %v2470_v37  ;;  %v521_v30 = vld [vmem:[%s2808_s25 + $0x6a8] sm:$0xff] }
  0x68   : > { %1986 = vmatpush1.bf16.msra.mxu1 %v2589_v36  ;;  %v2654_v34 = vcombine.high %v517_v29, %v521_v30  ;;  %v397_v35 = vld [vmem:[%s2808_s25 + $0x2c8] sm:$0xff]  ;;  %v2653_v40 = vcombine.low %v517_v29, %v521_v30 }
  0x69   : > { %1987 = vmatprep.subr.bf16.mxu1 %v2598_v38  ;;  %v401_v36 = vld [vmem:[%s2808_s25 + $0x2e8] sm:$0xff] }
  0x6a   : > { %1947 = vmatpush1.bf16.msra.mxu0 %v2469_v43  ;;  %v525_v37 = vld [vmem:[%s2808_s25 + $0x6c8] sm:$0xff]  ;;  %v2534_v41 = vcombine.high %v397_v35, %v401_v36  ;;  %v2533_v47 = vcombine.low %v397_v35, %v401_v36 }
  0x6b   : > { %1948 = vmatprep.subr.bf16.mxu0 %v2478_v45  ;;  %v529_v38 = vld [vmem:[%s2808_s25 + $0x6e8] sm:$0xff] }
  0x6c   : > { %1988 = vmatpush1.bf16.msra.mxu1 %v2597_v44  ;;  %v2662_v42 = vcombine.high %v525_v37, %v529_v38  ;;  %v405_v43 = vld [vmem:[%s2808_s25 + $0x308] sm:$0xff]  ;;  %v2661_v48 = vcombine.low %v525_v37, %v529_v38 }
  0x6d   : > { %1989 = vmatprep.subr.bf16.mxu1 %v2606_v46  ;;  %v409_v44 = vld [vmem:[%s2808_s25 + $0x328] sm:$0xff] }
  0x6e   : > { %1949 = vmatpush1.bf16.msra.mxu0 %v2477_v51  ;;  %v533_v45 = vld [vmem:[%s2808_s25 + $0x708] sm:$0xff]  ;;  %v2542_v49 = vcombine.high %v405_v43, %v409_v44  ;;  %v2541_v57 = vcombine.low %v405_v43, %v409_v44 }
  0x6f   : > { %1950 = vmatprep.subr.bf16.mxu0 %v2486_v53  ;;  %v537_v46 = vld [vmem:[%s2808_s25 + $0x728] sm:$0xff] }
  0x70   : > { %1990 = vmatpush1.bf16.msra.mxu1 %v2605_v52  ;;  %v2670_v50 = vcombine.high %v533_v45, %v537_v46  ;;  %v413_v51 = vld [vmem:[%s2808_s25 + $0x348] sm:$0xff]  ;;  %v2669_v58 = vcombine.low %v533_v45, %v537_v46 }
  0x71   : > { %1991 = vmatprep.subr.bf16.mxu1 %v2614_v56  ;;  %v417_v52 = vld [vmem:[%s2808_s25 + $0x368] sm:$0xff] }
  0x72   : > { %1951 = vmatpush1.bf16.msra.mxu0 %v2485_v63  ;;  %v541_v53 = vld [vmem:[%s2808_s25 + $0x748] sm:$0xff]  ;;  %v2550_v61 = vcombine.high %v413_v51, %v417_v52  ;;  %v2549_v3 = vcombine.low %v413_v51, %v417_v52 }
  0x73   : > { %1952 = vmatprep.subr.bf16.mxu0 %v2494_v1  ;;  %v545_v56 = vld [vmem:[%s2808_s25 + $0x768] sm:$0xff] }
  0x74   : > { %1992 = vmatpush1.bf16.msra.mxu1 %v2613_v0  ;;  %v2678_v62 = vcombine.high %v541_v53, %v545_v56  ;;  %v421_v63 = vld [vmem:[%s2808_s25 + $0x388] sm:$0xff]  ;;  %v2677_v4 = vcombine.low %v541_v53, %v545_v56 }
  0x75   : > { %1993 = vmatprep.subr.bf16.mxu1 %v2622_v2  ;;  %v425_v0 = vld [vmem:[%s2808_s25 + $0x3a8] sm:$0xff] }
  0x76   : > { %1953 = vmatpush1.bf16.msra.mxu0 %v2493_v7  ;;  %v549_v1 = vld [vmem:[%s2808_s25 + $0x788] sm:$0xff]  ;;  %v2558_v5 = vcombine.high %v421_v63, %v425_v0  ;;  %v2557_v11 = vcombine.low %v421_v63, %v425_v0 }
  0x77   : > { %1954 = vmatprep.subr.bf16.mxu0 %v2502_v9  ;;  %v553_v2 = vld [vmem:[%s2808_s25 + $0x7a8] sm:$0xff] }
  0x78   : > { %1994 = vmatpush1.bf16.msra.mxu1 %v2621_v8  ;;  %v2686_v6 = vcombine.high %v549_v1, %v553_v2  ;;  %v429_v7 = vld [vmem:[%s2808_s25 + $0x3c8] sm:$0xff]  ;;  %v2685_v12 = vcombine.low %v549_v1, %v553_v2 }
  0x79   : > { %1995 = vmatprep.subr.bf16.mxu1 %v2630_v10  ;;  %v433_v8 = vld [vmem:[%s2808_s25 + $0x3e8] sm:$0xff] }
  0x7a   : > { %1955 = vmatpush1.bf16.msra.mxu0 %v2501_v15  ;;  %v557_v9 = vld [vmem:[%s2808_s25 + $0x7c8] sm:$0xff]  ;;  %v2566_v13 = vcombine.high %v429_v7, %v433_v8  ;;  %v310_v15 = vld [vmem:[%s2808_s25 + $0x10] sm:$0xff]  ;;  %v2565_v21 = vcombine.low %v429_v7, %v433_v8 }
  0x7b   : > { %1956 = vmatprep.subr.bf16.mxu0 %v2510_v18  ;;  %v561_v10 = vld [vmem:[%s2808_s25 + $0x7e8] sm:$0xff]  ;;  %v438_v18 = vld [vmem:[%s2808_s25 + $0x410] sm:$0xff] }
  0x7c   : > { %1996 = vmatpush1.bf16.msra.mxu1 %v2629_v16  ;;  %v2694_v14 = vcombine.high %v557_v9, %v561_v10  ;;  %v314_v16 = vld [vmem:[%s2808_s25 + $0x30] sm:$0xff]  ;;  %v2693_v22 = vcombine.low %v557_v9, %v561_v10 }
  0x7d   : > { %1997 = vmatprep.subr.bf16.mxu1 %v2638_v19  ;;  %v442_v19 = vld [vmem:[%s2808_s25 + $0x430] sm:$0xff]  ;;  %v2448_v23 = vcombine.high %v310_v15, %v314_v16  ;;  %v2447_v55 = vcombine.low %v310_v15, %v314_v16 }
  0x7e   : > { %1957 = vmatpush1.bf16.msra.mxu0 %v2509_v25  ;;  %v2576_v24 = vcombine.high %v438_v18, %v442_v19  ;;  %v318_v25 = vld [vmem:[%s2808_s25 + $0x50] sm:$0xff]  ;;  %v2575_v28 = vcombine.low %v438_v18, %v442_v19 }
  0x7f   : > { %1958 = vmatprep.subr.bf16.mxu0 %v2518_v26  ;;  %v446_v26 = vld [vmem:[%s2808_s25 + $0x450] sm:$0xff] }
  0x80   : > { %1998 = vmatpush1.bf16.msra.mxu1 %v2637_v54  ;;  %v322_v54 = vld [vmem:[%s2808_s25 + $0x70] sm:$0xff] }
  0x81   : > { %1999 = vmatprep.subr.bf16.mxu1 %v2646_v27  ;;  %v450_v27 = vld [vmem:[%s2808_s25 + $0x470] sm:$0xff]  ;;  %v2456_v29 = vcombine.high %v318_v25, %v322_v54  ;;  %v2455_v35 = vcombine.low %v318_v25, %v322_v54 }
  0x82   : > { %1959 = vmatpush1.bf16.msra.mxu0 %v2517_v31  ;;  %v2584_v30 = vcombine.high %v446_v26, %v450_v27  ;;  %v326_v31 = vld [vmem:[%s2808_s25 + $0x90] sm:$0xff]  ;;  %v2583_v36 = vcombine.low %v446_v26, %v450_v27 }
  0x83   : > { %1960 = vmatprep.subr.bf16.mxu0 %v2526_v33  ;;  %v454_v33 = vld [vmem:[%s2808_s25 + $0x490] sm:$0xff] }
  0x84   : > { %2000 = vmatpush1.bf16.msra.mxu1 %v2645_v32  ;;  %v330_v32 = vld [vmem:[%s2808_s25 + $0xb0] sm:$0xff] }
  0x85   : > { %2001 = vmatprep.subr.bf16.mxu1 %v2654_v34  ;;  %v458_v34 = vld [vmem:[%s2808_s25 + $0x4b0] sm:$0xff]  ;;  %v2464_v37 = vcombine.high %v326_v31, %v330_v32  ;;  %v2463_v43 = vcombine.low %v326_v31, %v330_v32 }
  0x86   : > { %1961 = vmatpush1.bf16.msra.mxu0 %v2525_v39  ;;  %v2592_v38 = vcombine.high %v454_v33, %v458_v34  ;;  %v334_v39 = vld [vmem:[%s2808_s25 + $0xd0] sm:$0xff]  ;;  %v2591_v44 = vcombine.low %v454_v33, %v458_v34 }
  0x87   : > { %1962 = vmatprep.subr.bf16.mxu0 %v2534_v41  ;;  %v462_v41 = vld [vmem:[%s2808_s25 + $0x4d0] sm:$0xff] }
  0x88   : > { %2002 = vmatpush1.bf16.msra.mxu1 %v2653_v40  ;;  %v338_v40 = vld [vmem:[%s2808_s25 + $0xf0] sm:$0xff] }
  0x89   : > { %2003 = vmatprep.subr.bf16.mxu1 %v2662_v42  ;;  %v466_v42 = vld [vmem:[%s2808_s25 + $0x4f0] sm:$0xff]  ;;  %v2472_v45 = vcombine.high %v334_v39, %v338_v40  ;;  %v2471_v51 = vcombine.low %v334_v39, %v338_v40 }
  0x8a   : > { %1963 = vmatpush1.bf16.msra.mxu0 %v2533_v47  ;;  %v2600_v46 = vcombine.high %v462_v41, %v466_v42  ;;  %v342_v47 = vld [vmem:[%s2808_s25 + $0x110] sm:$0xff]  ;;  %v2599_v52 = vcombine.low %v462_v41, %v466_v42 }
  0x8b   : > { %1964 = vmatprep.subr.bf16.mxu0 %v2542_v49  ;;  %v470_v49 = vld [vmem:[%s2808_s25 + $0x510] sm:$0xff] }
  0x8c   : > { %2004 = vmatpush1.bf16.msra.mxu1 %v2661_v48  ;;  %v346_v48 = vld [vmem:[%s2808_s25 + $0x130] sm:$0xff] }
  0x8d   : > { %2005 = vmatprep.subr.bf16.mxu1 %v2670_v50  ;;  %v474_v50 = vld [vmem:[%s2808_s25 + $0x530] sm:$0xff]  ;;  %v2480_v53 = vcombine.high %v342_v47, %v346_v48  ;;  %v2479_v63 = vcombine.low %v342_v47, %v346_v48 }
  0x8e   : > { %1965 = vmatpush1.bf16.msra.mxu0 %v2541_v57  ;;  %v2608_v56 = vcombine.high %v470_v49, %v474_v50  ;;  %v350_v57 = vld [vmem:[%s2808_s25 + $0x150] sm:$0xff]  ;;  %v2607_v0 = vcombine.low %v470_v49, %v474_v50 }
  0x8f   : > { %1966 = vmatprep.subr.bf16.mxu0 %v2550_v61  ;;  %v478_v61 = vld [vmem:[%s2808_s25 + $0x550] sm:$0xff] }
  0x90   : > { %2006 = vmatpush1.bf16.msra.mxu1 %v2669_v58  ;;  %v354_v58 = vld [vmem:[%s2808_s25 + $0x170] sm:$0xff] }
  0x91   : > { %2007 = vmatprep.subr.bf16.mxu1 %v2678_v62  ;;  %v482_v62 = vld [vmem:[%s2808_s25 + $0x570] sm:$0xff]  ;;  %v2488_v1 = vcombine.high %v350_v57, %v354_v58  ;;  %v2487_v7 = vcombine.low %v350_v57, %v354_v58 }
  0x92   : > { %1967 = vmatpush1.bf16.msra.mxu0 %v2549_v3  ;;  %v2616_v2 = vcombine.high %v478_v61, %v482_v62  ;;  %v358_v3 = vld [vmem:[%s2808_s25 + $0x190] sm:$0xff]  ;;  %v2615_v8 = vcombine.low %v478_v61, %v482_v62 }
  0x93   : > { %1968 = vmatprep.subr.bf16.mxu0 %v2558_v5  ;;  %v486_v5 = vld [vmem:[%s2808_s25 + $0x590] sm:$0xff] }
  0x94   : > { %2008 = vmatpush1.bf16.msra.mxu1 %v2677_v4  ;;  %v362_v4 = vld [vmem:[%s2808_s25 + $0x1b0] sm:$0xff] }
  0x95   : > { %2009 = vmatprep.subr.bf16.mxu1 %v2686_v6  ;;  %v490_v6 = vld [vmem:[%s2808_s25 + $0x5b0] sm:$0xff]  ;;  %v2496_v9 = vcombine.high %v358_v3, %v362_v4  ;;  %v2495_v15 = vcombine.low %v358_v3, %v362_v4 }
  0x96   : > { %1969 = vmatpush1.bf16.msra.mxu0 %v2557_v11  ;;  %v2624_v10 = vcombine.high %v486_v5, %v490_v6  ;;  %v366_v11 = vld [vmem:[%s2808_s25 + $0x1d0] sm:$0xff]  ;;  %v2623_v16 = vcombine.low %v486_v5, %v490_v6 }
  0x97   : > { %1970 = vmatprep.subr.bf16.mxu0 %v2566_v13  ;;  %v494_v13 = vld [vmem:[%s2808_s25 + $0x5d0] sm:$0xff] }
  0x98   : > { %2010 = vmatpush1.bf16.msra.mxu1 %v2685_v12  ;;  %v370_v12 = vld [vmem:[%s2808_s25 + $0x1f0] sm:$0xff] }
  0x99   : > { %2011 = vmatprep.subr.bf16.mxu1 %v2694_v14  ;;  %v498_v14 = vld [vmem:[%s2808_s25 + $0x5f0] sm:$0xff]  ;;  %v2504_v18 = vcombine.high %v366_v11, %v370_v12  ;;  %v2503_v25 = vcombine.low %v366_v11, %v370_v12 }
  0x9a   : > { %1971 = vmatpush1.bf16.msra.mxu0 %v2565_v21  ;;  %v2632_v19 = vcombine.high %v494_v13, %v498_v14  ;;  %v374_v21 = vld [vmem:[%s2808_s25 + $0x210] sm:$0xff]  ;;  %v2631_v54 = vcombine.low %v494_v13, %v498_v14 }
  0x9b   : > { %2022 = vmatprep.subr.bf16.mxu0 %v2448_v23  ;;  %v502_v23 = vld [vmem:[%s2808_s25 + $0x610] sm:$0xff] }
  0x9c   : > { %2012 = vmatpush1.bf16.msra.mxu1 %v2693_v22  ;;  %v378_v22 = vld [vmem:[%s2808_s25 + $0x230] sm:$0xff] }
  0x9d   : > { %2063 = vmatprep.subr.bf16.mxu1 %v2576_v24  ;;  %1973 = vmatmul.mubr.bf16.vlgmr.msra.gmra.mrb[4].mxu0 %v2923_v17  ;;  %v506_v24 = vld [vmem:[%s2808_s25 + $0x630] sm:$0xff]  ;;  %v2512_v26 = vcombine.high %v374_v21, %v378_v22  ;;  %v2511_v31 = vcombine.low %v374_v21, %v378_v22 }
  0x9e   : > { %2023 = vmatpush1.bf16.msra.mxu0 %v2447_v55  ;;  %2054 = vmatprep.mubr.bf16.mxu0 %v2873_v59  ;;  %v2640_v27 = vcombine.high %v502_v23, %v506_v24  ;;  %v382_v55 = vld [vmem:[%s2808_s25 + $0x250] sm:$0xff]  ;;  %v2639_v32 = vcombine.low %v502_v23, %v506_v24 }
  0x9f   : > { %2014 = vmatmul.mubr.bf16.vlgmr.msra.gmra.mrb[4].mxu1 %v2929_v20  ;;  %2024 = vmatprep.subr.bf16.mxu0 %v2456_v29  ;;  %v510_v29 = vld [vmem:[%s2808_s25 + $0x650] sm:$0xff] }
  0xa0   : > { %2064 = vmatpush1.bf16.msra.mxu1 %v2575_v28  ;;  %2095 = vmatprep.mubr.bf16.mxu1 %v2877_v60  ;;  %v386_v28 = vld [vmem:[%s2808_s25 + $0x270] sm:$0xff] }
  0xa1   : > { %2065 = vmatprep.subr.bf16.mxu1 %v2584_v30  ;;  %v514_v30 = vld [vmem:[%s2808_s25 + $0x670] sm:$0xff]  ;;  %v2520_v33 = vcombine.high %v382_v55, %v386_v28  ;;  %v2519_v39 = vcombine.low %v382_v55, %v386_v28 }
  0xa2   : > { %2025 = vmatpush1.bf16.msra.mxu0 %v2455_v35  ;;  %v2648_v34 = vcombine.high %v510_v29, %v514_v30  ;;  %v390_v35 = vld [vmem:[%s2808_s25 + $0x290] sm:$0xff]  ;;  %v2647_v40 = vcombine.low %v510_v29, %v514_v30 }
  0xa3   : > { %2026 = vmatprep.subr.bf16.mxu0 %v2464_v37  ;;  %v518_v37 = vld [vmem:[%s2808_s25 + $0x690] sm:$0xff] }
  0xa4   : > { %2066 = vmatpush1.bf16.msra.mxu1 %v2583_v36  ;;  %v394_v36 = vld [vmem:[%s2808_s25 + $0x2b0] sm:$0xff] }
  0xa5   : > { %2067 = vmatprep.subr.bf16.mxu1 %v2592_v38  ;;  %v522_v38 = vld [vmem:[%s2808_s25 + $0x6b0] sm:$0xff]  ;;  %v2528_v41 = vcombine.high %v390_v35, %v394_v36  ;;  %v2527_v47 = vcombine.low %v390_v35, %v394_v36 }
  0xa6   : > { %2027 = vmatpush1.bf16.msra.mxu0 %v2463_v43  ;;  %v2656_v42 = vcombine.high %v518_v37, %v522_v38  ;;  %v398_v43 = vld [vmem:[%s2808_s25 + $0x2d0] sm:$0xff]  ;;  %v2655_v48 = vcombine.low %v518_v37, %v522_v38 }
  0xa7   : > { %2028 = vmatprep.subr.bf16.mxu0 %v2472_v45  ;;  %v526_v45 = vld [vmem:[%s2808_s25 + $0x6d0] sm:$0xff] }
  0xa8   : > { %2068 = vmatpush1.bf16.msra.mxu1 %v2591_v44  ;;  %v402_v44 = vld [vmem:[%s2808_s25 + $0x2f0] sm:$0xff] }
  0xa9   : > { %2069 = vmatprep.subr.bf16.mxu1 %v2600_v46  ;;  %v530_v46 = vld [vmem:[%s2808_s25 + $0x6f0] sm:$0xff]  ;;  %v2536_v49 = vcombine.high %v398_v43, %v402_v44  ;;  %v2535_v57 = vcombine.low %v398_v43, %v402_v44 }
  0xaa   : > { %2029 = vmatpush1.bf16.msra.mxu0 %v2471_v51  ;;  %v2664_v50 = vcombine.high %v526_v45, %v530_v46  ;;  %v406_v51 = vld [vmem:[%s2808_s25 + $0x310] sm:$0xff]  ;;  %v2663_v58 = vcombine.low %v526_v45, %v530_v46 }
  0xab   : > { %2030 = vmatprep.subr.bf16.mxu0 %v2480_v53  ;;  %v534_v53 = vld [vmem:[%s2808_s25 + $0x710] sm:$0xff] }
  0xac   : > { %2070 = vmatpush1.bf16.msra.mxu1 %v2599_v52  ;;  %v410_v52 = vld [vmem:[%s2808_s25 + $0x330] sm:$0xff] }
  0xad   : > { %2071 = vmatprep.subr.bf16.mxu1 %v2608_v56  ;;  %v538_v56 = vld [vmem:[%s2808_s25 + $0x730] sm:$0xff]  ;;  %v2544_v61 = vcombine.high %v406_v51, %v410_v52  ;;  %v2543_v3 = vcombine.low %v406_v51, %v410_v52 }
  0xae   : > { %2031 = vmatpush1.bf16.msra.mxu0 %v2479_v63  ;;  %v2672_v62 = vcombine.high %v534_v53, %v538_v56  ;;  %v414_v63 = vld [vmem:[%s2808_s25 + $0x350] sm:$0xff]  ;;  %v2671_v4 = vcombine.low %v534_v53, %v538_v56 }
  0xaf   : > { %2032 = vmatprep.subr.bf16.mxu0 %v2488_v1  ;;  %v542_v1 = vld [vmem:[%s2808_s25 + $0x750] sm:$0xff] }
  0xb0   : > { %2072 = vmatpush1.bf16.msra.mxu1 %v2607_v0  ;;  %v418_v0 = vld [vmem:[%s2808_s25 + $0x370] sm:$0xff] }
  0xb1   : > { %2073 = vmatprep.subr.bf16.mxu1 %v2616_v2  ;;  %v546_v2 = vld [vmem:[%s2808_s25 + $0x770] sm:$0xff]  ;;  %v2552_v5 = vcombine.high %v414_v63, %v418_v0  ;;  %v2551_v11 = vcombine.low %v414_v63, %v418_v0 }
  0xb2   : > { %2033 = vmatpush1.bf16.msra.mxu0 %v2487_v7  ;;  %v2680_v6 = vcombine.high %v542_v1, %v546_v2  ;;  %v422_v7 = vld [vmem:[%s2808_s25 + $0x390] sm:$0xff]  ;;  %v2679_v12 = vcombine.low %v542_v1, %v546_v2  ;;  %v351_v1 = vld [vmem:[%s2808_s25 + $0x158] sm:$0xff] }
  0xb3   : > { %2034 = vmatprep.subr.bf16.mxu0 %v2496_v9  ;;  %v550_v9 = vld [vmem:[%s2808_s25 + $0x790] sm:$0xff]  ;;  %v355_v2 = vld [vmem:[%s2808_s25 + $0x178] sm:$0xff] }
  0xb4   : > { %2074 = vmatpush1.bf16.msra.mxu1 %v2615_v8  ;;  %v426_v8 = vld [vmem:[%s2808_s25 + $0x3b0] sm:$0xff] }
  0xb5   : > { %2075 = vmatprep.subr.bf16.mxu1 %v2624_v10  ;;  %v554_v10 = vld [vmem:[%s2808_s25 + $0x7b0] sm:$0xff]  ;;  %v2560_v13 = vcombine.high %v422_v7, %v426_v8  ;;  %v2559_v21 = vcombine.low %v422_v7, %v426_v8  ;;  %v2490_v7 = vcombine.high %v351_v1, %v355_v2 }
  0xb6   : > { %2035 = vmatpush1.bf16.msra.mxu0 %v2495_v15  ;;  %v2688_v14 = vcombine.high %v550_v9, %v554_v10  ;;  %v430_v15 = vld [vmem:[%s2808_s25 + $0x3d0] sm:$0xff]  ;;  %v2687_v22 = vcombine.low %v550_v9, %v554_v10  ;;  %v359_v9 = vld [vmem:[%s2808_s25 + $0x198] sm:$0xff] }
  0xb7   : > { %2036 = vmatprep.subr.bf16.mxu0 %v2504_v18  ;;  %v558_v18 = vld [vmem:[%s2808_s25 + $0x7d0] sm:$0xff]  ;;  %v363_v10 = vld [vmem:[%s2808_s25 + $0x1b8] sm:$0xff] }
  0xb8   : > { %2076 = vmatpush1.bf16.msra.mxu1 %v2623_v16  ;;  %v434_v16 = vld [vmem:[%s2808_s25 + $0x3f0] sm:$0xff] }
  0xb9   : > { %2077 = vmatprep.subr.bf16.mxu1 %v2632_v19  ;;  %v562_v19 = vld [vmem:[%s2808_s25 + $0x7f0] sm:$0xff]  ;;  %v2568_v23 = vcombine.high %v430_v15, %v434_v16  ;;  %v2567_v55 = vcombine.low %v430_v15, %v434_v16  ;;  %v2498_v15 = vcombine.high %v359_v9, %v363_v10 }
  0xba   : > { %2037 = vmatpush1.bf16.msra.mxu0 %v2503_v25  ;;  %v2696_v24 = vcombine.high %v558_v18, %v562_v19  ;;  %v311_v25 = vld [vmem:[%s2808_s25 + $0x18] sm:$0xff]  ;;  %v2695_v28 = vcombine.low %v558_v18, %v562_v19 }
  0xbb   : > { %2038 = vmatprep.subr.bf16.mxu0 %v2512_v26  ;;  %v439_v26 = vld [vmem:[%s2808_s25 + $0x418] sm:$0xff] }
  0xbc   : > { %2078 = vmatpush1.bf16.msra.mxu1 %v2631_v54  ;;  %v315_v54 = vld [vmem:[%s2808_s25 + $0x38] sm:$0xff] }
  0xbd   : > { %2079 = vmatprep.subr.bf16.mxu1 %v2640_v27  ;;  %v443_v27 = vld [vmem:[%s2808_s25 + $0x438] sm:$0xff]  ;;  %v2450_v29 = vcombine.high %v311_v25, %v315_v54  ;;  %v2449_v35 = vcombine.low %v311_v25, %v315_v54 }
  0xbe   : > { %2039 = vmatpush1.bf16.msra.mxu0 %v2511_v31  ;;  %v2578_v30 = vcombine.high %v439_v26, %v443_v27  ;;  %v319_v31 = vld [vmem:[%s2808_s25 + $0x58] sm:$0xff]  ;;  %v2577_v36 = vcombine.low %v439_v26, %v443_v27 }
  0xbf   : > { %2040 = vmatprep.subr.bf16.mxu0 %v2520_v33  ;;  %v447_v33 = vld [vmem:[%s2808_s25 + $0x458] sm:$0xff] }
  0xc0   : > { %2080 = vmatpush1.bf16.msra.mxu1 %v2639_v32  ;;  %v323_v32 = vld [vmem:[%s2808_s25 + $0x78] sm:$0xff] }
  0xc1   : > { %2081 = vmatprep.subr.bf16.mxu1 %v2648_v34  ;;  %v451_v34 = vld [vmem:[%s2808_s25 + $0x478] sm:$0xff]  ;;  %v2458_v37 = vcombine.high %v319_v31, %v323_v32  ;;  %v2457_v43 = vcombine.low %v319_v31, %v323_v32 }
  0xc2   : > { %2041 = vmatpush1.bf16.msra.mxu0 %v2519_v39  ;;  %v2586_v38 = vcombine.high %v447_v33, %v451_v34  ;;  %v327_v39 = vld [vmem:[%s2808_s25 + $0x98] sm:$0xff]  ;;  %v2585_v44 = vcombine.low %v447_v33, %v451_v34 }
  0xc3   : > { %2042 = vmatprep.subr.bf16.mxu0 %v2528_v41  ;;  %v455_v41 = vld [vmem:[%s2808_s25 + $0x498] sm:$0xff] }
  0xc4   : > { %2082 = vmatpush1.bf16.msra.mxu1 %v2647_v40  ;;  %v331_v40 = vld [vmem:[%s2808_s25 + $0xb8] sm:$0xff] }
  0xc5   : > { %2083 = vmatprep.subr.bf16.mxu1 %v2656_v42  ;;  %v459_v42 = vld [vmem:[%s2808_s25 + $0x4b8] sm:$0xff]  ;;  %v2466_v45 = vcombine.high %v327_v39, %v331_v40  ;;  %v2465_v51 = vcombine.low %v327_v39, %v331_v40 }
  0xc6   : > { %2043 = vmatpush1.bf16.msra.mxu0 %v2527_v47  ;;  %v2594_v46 = vcombine.high %v455_v41, %v459_v42  ;;  %v335_v47 = vld [vmem:[%s2808_s25 + $0xd8] sm:$0xff]  ;;  %v2593_v52 = vcombine.low %v455_v41, %v459_v42 }
  0xc7   : > { %2044 = vmatprep.subr.bf16.mxu0 %v2536_v49  ;;  %v463_v49 = vld [vmem:[%s2808_s25 + $0x4d8] sm:$0xff] }
  0xc8   : > { %2084 = vmatpush1.bf16.msra.mxu1 %v2655_v48  ;;  %v339_v48 = vld [vmem:[%s2808_s25 + $0xf8] sm:$0xff] }
  0xc9   : > { %2085 = vmatprep.subr.bf16.mxu1 %v2664_v50  ;;  %v467_v50 = vld [vmem:[%s2808_s25 + $0x4f8] sm:$0xff]  ;;  %v2474_v53 = vcombine.high %v335_v47, %v339_v48 }
  0xca   : > { %2045 = vmatpush1.bf16.msra.mxu0 %v2535_v57  ;;  %v2602_v56 = vcombine.high %v463_v49, %v467_v50  ;;  %v343_v57 = vld [vmem:[%s2808_s25 + $0x118] sm:$0xff] }
  0xcb   : > { %2046 = vmatprep.subr.bf16.mxu0 %v2544_v61  ;;  %v471_v61 = vld [vmem:[%s2808_s25 + $0x518] sm:$0xff] }
  0xcc   : > { %2086 = vmatpush1.bf16.msra.mxu1 %v2663_v58  ;;  %v347_v58 = vld [vmem:[%s2808_s25 + $0x138] sm:$0xff] }
  0xcd   : > { %2087 = vmatprep.subr.bf16.mxu1 %v2672_v62  ;;  %v2473_v62 = vcombine.low %v335_v47, %v339_v48  ;;  %v2482_v63 = vcombine.high %v343_v57, %v347_v58  ;;  %v367_v18 = vld [vmem:[%s2808_s25 + $0x1d8] sm:$0xff] }
  0xce   : > { %2047 = vmatpush1.bf16.msra.mxu0 %v2543_v3  ;;  %v479_v3 = vld [vmem:[%s2808_s25 + $0x558] sm:$0xff] }
  0xcf   : > { %2048 = vmatprep.subr.bf16.mxu0 %v2552_v5  ;;  %v2481_v5 = vcombine.low %v343_v57, %v347_v58  ;;  %v371_v19 = vld [vmem:[%s2808_s25 + $0x1f8] sm:$0xff] }
  0xd0   : > { %2088 = vmatpush1.bf16.msra.mxu1 %v2671_v4  ;;  %v483_v4 = vld [vmem:[%s2808_s25 + $0x578] sm:$0xff]  ;;  %v2506_v25 = vcombine.high %v367_v18, %v371_v19 }
  0xd1   : > { %2089 = vmatprep.subr.bf16.mxu1 %v2680_v6  ;;  %v2618_v8 = vcombine.high %v479_v3, %v483_v4  ;;  %v375_v26 = vld [vmem:[%s2808_s25 + $0x218] sm:$0xff] }
  0xd2   : > { %2049 = vmatpush1.bf16.msra.mxu0 %v2551_v11  ;;  %v487_v11 = vld [vmem:[%s2808_s25 + $0x598] sm:$0xff] }
  0xd3   : > { %2050 = vmatprep.subr.bf16.mxu0 %v2560_v13  ;;  %v2489_v13 = vcombine.low %v351_v1, %v355_v2  ;;  %v379_v27 = vld [vmem:[%s2808_s25 + $0x238] sm:$0xff] }
  0xd4   : > { %2090 = vmatpush1.bf16.msra.mxu1 %v2679_v12  ;;  %v491_v12 = vld [vmem:[%s2808_s25 + $0x5b8] sm:$0xff]  ;;  %v2514_v31 = vcombine.high %v375_v26, %v379_v27 }
  0xd5   : > { %2091 = vmatprep.subr.bf16.mxu1 %v2688_v14  ;;  %v2617_v14 = vcombine.low %v479_v3, %v483_v4  ;;  %v2626_v16 = vcombine.high %v487_v11, %v491_v12  ;;  %v383_v33 = vld [vmem:[%s2808_s25 + $0x258] sm:$0xff] }
  0xd6   : > { %2051 = vmatpush1.bf16.msra.mxu0 %v2559_v21  ;;  %v495_v21 = vld [vmem:[%s2808_s25 + $0x5d8] sm:$0xff] }
  0xd7   : > { %2052 = vmatprep.subr.bf16.mxu0 %v2568_v23  ;;  %v2497_v23 = vcombine.low %v359_v9, %v363_v10  ;;  %v387_v34 = vld [vmem:[%s2808_s25 + $0x278] sm:$0xff] }
  0xd8   : > { %2092 = vmatpush1.bf16.msra.mxu1 %v2687_v22  ;;  %v499_v22 = vld [vmem:[%s2808_s25 + $0x5f8] sm:$0xff]  ;;  %v2522_v39 = vcombine.high %v383_v33, %v387_v34 }
  0xd9   : > { %2093 = vmatprep.subr.bf16.mxu1 %v2696_v24  ;;  %v2625_v24 = vcombine.low %v487_v11, %v491_v12  ;;  %v2634_v54 = vcombine.high %v495_v21, %v499_v22  ;;  %v391_v41 = vld [vmem:[%s2808_s25 + $0x298] sm:$0xff] }
  0xda   : > { %2053 = vmatpush1.bf16.msra.mxu0 %v2567_v55  ;;  %v503_v55 = vld [vmem:[%s2808_s25 + $0x618] sm:$0xff] }
  0xdb   : > { %2104 = vmatprep.subr.bf16.mxu0 %v2450_v29  ;;  %v2505_v29 = vcombine.low %v367_v18, %v371_v19  ;;  %v395_v42 = vld [vmem:[%s2808_s25 + $0x2b8] sm:$0xff] }
  0xdc   : > { %2094 = vmatpush1.bf16.msra.mxu1 %v2695_v28  ;;  %v507_v28 = vld [vmem:[%s2808_s25 + $0x638] sm:$0xff]  ;;  %v2530_v47 = vcombine.high %v391_v41, %v395_v42 }
  0xdd   : > { %2145 = vmatprep.subr.bf16.mxu1 %v2578_v30  ;;  %2055 = vmatmul.mubr.bf16.vlgmr.msra.gmra.mrb[8].mxu0 %v2923_v17  ;;  %v2633_v30 = vcombine.low %v495_v21, %v499_v22  ;;  %v2642_v32 = vcombine.high %v503_v55, %v507_v28  ;;  %v415_v3 = vld [vmem:[%s2808_s25 + $0x358] sm:$0xff] }
  0xde   : > { %2105 = vmatpush1.bf16.msra.mxu0 %v2449_v35  ;;  %2136 = vmatprep.mubr.bf16.mxu0 %v2873_v59  ;;  %v475_v59 = vld [vmem:[%s2808_s25 + $0x538] sm:$0xff] }
  0xdf   : > { %2096 = vmatmul.mubr.bf16.vlgmr.msra.gmra.mrb[8].mxu1 %v2929_v20  ;;  %2106 = vmatprep.subr.bf16.mxu0 %v2458_v37  ;;  %v2610_v0 = vcombine.high %v471_v61, %v475_v59  ;;  %v2609_v6 = vcombine.low %v471_v61, %v475_v59  ;;  %v511_v35 = vld [vmem:[%s2808_s25 + $0x658] sm:$0xff]  ;;  %v2513_v37 = vcombine.low %v375_v26, %v379_v27 }
  0xe0   : > { %2146 = vmatpush1.bf16.msra.mxu1 %v2577_v36  ;;  %2177 = vmatprep.mubr.bf16.mxu1 %v2877_v60  ;;  %v2601_v60 = vcombine.low %v463_v49, %v467_v50  ;;  %v515_v36 = vld [vmem:[%s2808_s25 + $0x678] sm:$0xff] }
  0xe1   : > { %2147 = vmatprep.subr.bf16.mxu1 %v2586_v38  ;;  %v2641_v38 = vcombine.low %v503_v55, %v507_v28  ;;  %v2650_v40 = vcombine.high %v511_v35, %v515_v36  ;;  %v399_v49 = vld [vmem:[%s2808_s25 + $0x2d8] sm:$0xff] }
  0xe2   : > { %2107 = vmatpush1.bf16.msra.mxu0 %v2457_v43  ;;  %v519_v43 = vld [vmem:[%s2808_s25 + $0x698] sm:$0xff] }
  0xe3   : > { %2108 = vmatprep.subr.bf16.mxu0 %v2466_v45  ;;  %v2521_v45 = vcombine.low %v383_v33, %v387_v34  ;;  %v403_v50 = vld [vmem:[%s2808_s25 + $0x2f8] sm:$0xff]  ;;  %v299_v34 = vld [vmem:[%s3241_s3 + $0x8] sm:$0xff] }
  0xe4   : > { %2148 = vmatpush1.bf16.msra.mxu1 %v2585_v44  ;;  %v523_v44 = vld [vmem:[%s2808_s25 + $0x6b8] sm:$0xff]  ;;  %v2538_v57 = vcombine.high %v399_v49, %v403_v50 }
  0xe5   : > { %2149 = vmatprep.subr.bf16.mxu1 %v2594_v46  ;;  %v2649_v46 = vcombine.low %v511_v35, %v515_v36  ;;  %v2658_v48 = vcombine.high %v519_v43, %v523_v44  ;;  %v407_v61 = vld [vmem:[%s2808_s25 + $0x318] sm:$0xff] }
  0xe6   : > { %2109 = vmatpush1.bf16.msra.mxu0 %v2465_v51  ;;  %v527_v51 = vld [vmem:[%s2808_s25 + $0x6d8] sm:$0xff] }
  0xe7   : > { %2110 = vmatprep.subr.bf16.mxu0 %v2474_v53  ;;  %v2529_v53 = vcombine.low %v391_v41, %v395_v42  ;;  %v411_v59 = vld [vmem:[%s2808_s25 + $0x338] sm:$0xff]  ;;  %v300_v42 = vld [vmem:[%s3241_s3 + $0x10] sm:$0xff] }
  0xe8   : > { %2150 = vmatpush1.bf16.msra.mxu1 %v2593_v52  ;;  %v531_v52 = vld [vmem:[%s2808_s25 + $0x6f8] sm:$0xff]  ;;  %v2546_v1 = vcombine.high %v407_v61, %v411_v59 }
  0xe9   : > { %2151 = vmatprep.subr.bf16.mxu1 %v2602_v56  ;;  %v2657_v56 = vcombine.low %v519_v43, %v523_v44  ;;  %v2666_v58 = vcombine.high %v527_v51, %v531_v52  ;;  %v419_v4 = vld [vmem:[%s2808_s25 + $0x378] sm:$0xff] }
  0xea   : > { %2111 = vmatpush1.bf16.msra.mxu0 %v2473_v62  ;;  %v535_v62 = vld [vmem:[%s2808_s25 + $0x718] sm:$0xff]  ;;  %v2554_v9 = vcombine.high %v415_v3, %v419_v4 }
  0xeb   : > { %2112 = vmatprep.subr.bf16.mxu0 %v2482_v63  ;;  %v2537_v63 = vcombine.low %v399_v49, %v403_v50  ;;  %v423_v11 = vld [vmem:[%s2808_s25 + $0x398] sm:$0xff] }
  0xec   : > { %2152 = vmatpush1.bf16.msra.mxu1 %v2601_v60  ;;  %v539_v60 = vld [vmem:[%s2808_s25 + $0x738] sm:$0xff] }
  0xed   : > { %2153 = vmatprep.subr.bf16.mxu1 %v2610_v0  ;;  %v2665_v0 = vcombine.low %v527_v51, %v531_v52  ;;  %v2674_v2 = vcombine.high %v535_v62, %v539_v60  ;;  %v427_v12 = vld [vmem:[%s2808_s25 + $0x3b8] sm:$0xff] }
  0xee   : > { %2113 = vmatpush1.bf16.msra.mxu0 %v2481_v5  ;;  %v543_v5 = vld [vmem:[%s2808_s25 + $0x758] sm:$0xff]  ;;  %v2562_v18 = vcombine.high %v423_v11, %v427_v12 }
  0xef   : > { %2114 = vmatprep.subr.bf16.mxu0 %v2490_v7  ;;  %v2545_v7 = vcombine.low %v407_v61, %v411_v59  ;;  %v431_v21 = vld [vmem:[%s2808_s25 + $0x3d8] sm:$0xff] }
  0xf0   : > { %2154 = vmatpush1.bf16.msra.mxu1 %v2609_v6  ;;  %v547_v6 = vld [vmem:[%s2808_s25 + $0x778] sm:$0xff] }
  0xf1   : > { %2155 = vmatprep.subr.bf16.mxu1 %v2618_v8  ;;  %v2673_v8 = vcombine.low %v535_v62, %v539_v60  ;;  %v2682_v10 = vcombine.high %v543_v5, %v547_v6  ;;  %v435_v22 = vld [vmem:[%s2808_s25 + $0x3f8] sm:$0xff]  ;;  %v303_v60 = vld [vmem:[%s3241_s3 + $0x28] sm:$0xff] }
  0xf2   : > { %2115 = vmatpush1.bf16.msra.mxu0 %v2489_v13  ;;  %v551_v13 = vld [vmem:[%s2808_s25 + $0x798] sm:$0xff]  ;;  %v2570_v26 = vcombine.high %v431_v21, %v435_v22  ;;  %v2569_v55 = vcombine.low %v431_v21, %v435_v22 }
  0xf3   : > { %2116 = vmatprep.subr.bf16.mxu0 %v2498_v15  ;;  %v2553_v15 = vcombine.low %v415_v3, %v419_v4 }
  0xf4   : > { %2156 = vmatpush1.bf16.msra.mxu1 %v2617_v14  ;;  %v555_v14 = vld [vmem:[%s2808_s25 + $0x7b8] sm:$0xff] }
  0xf5   : > { %2157 = vmatprep.subr.bf16.mxu1 %v2626_v16  ;;  %v2681_v16 = vcombine.low %v543_v5, %v547_v6  ;;  %v2690_v19 = vcombine.high %v551_v13, %v555_v14 }
  0xf6   : > { %2117 = vmatpush1.bf16.msra.mxu0 %v2497_v23  ;;  %v559_v23 = vld [vmem:[%s2808_s25 + $0x7d8] sm:$0xff] }
  0xf7   : > { %2118 = vmatprep.subr.bf16.mxu0 %v2506_v25  ;;  %v2561_v25 = vcombine.low %v423_v11, %v427_v12  ;;  %v305_v12 = vld [vmem:[%s3241_s3 + $0x38] sm:$0xff] }
  0xf8   : > { %2158 = vmatpush1.bf16.msra.mxu1 %v2625_v24  ;;  %v563_v24 = vld [vmem:[%s2808_s25 + $0x7f8] sm:$0xff] }
  0xf9   : > { %2159 = vmatprep.subr.bf16.mxu1 %v2634_v54  ;;  %v2689_v54 = vcombine.low %v551_v13, %v555_v14  ;;  %v2698_v27 = vcombine.high %v559_v23, %v563_v24  ;;  %v2697_v28 = vcombine.low %v559_v23, %v563_v24  ;;  %v2216_v23 = vlaneseq (!%p2699_p7) }
  0xfa   : > { %2119 = vmatpush1.bf16.msra.mxu0 %v2505_v29 }
  0xfb   : > { %2120 = vmatprep.subr.bf16.mxu0 %v2514_v31  ;;  %v2217_v24 = vshrl.u32 (!%p2699_p7), %v2216_v23, 7 }
  0xfc   : > { %2160 = vmatpush1.bf16.msra.mxu1 %v2633_v30  ;;  %v298_v30 = vld [vmem:[%s3241_s3] sm:$0xff] }
  0xfd   : > { %2161 = vmatprep.subr.bf16.mxu1 %v2642_v32 }
  0xfe   : > { %2121 = vmatpush1.bf16.msra.mxu0 %v2513_v37 }
  0xff   : > { %2122 = vmatprep.subr.bf16.mxu0 %v2522_v39 }
 0x100   : > { %2162 = vmatpush1.bf16.msra.mxu1 %v2641_v38 }
 0x101   : > { %2163 = vmatprep.subr.bf16.mxu1 %v2650_v40 }
 0x102   : > { %2123 = vmatpush1.bf16.msra.mxu0 %v2521_v45 }
 0x103   : > { %2124 = vmatprep.subr.bf16.mxu0 %v2530_v47 }
 0x104   : > { %2164 = vmatpush1.bf16.msra.mxu1 %v2649_v46  ;;  %v301_v46 = vld [vmem:[%s3241_s3 + $0x18] sm:$0xff] }
 0x105   : > { %2165 = vmatprep.subr.bf16.mxu1 %v2658_v48 }
 0x106   : > { %2125 = vmatpush1.bf16.msra.mxu0 %v2529_v53 }
 0x107   : > { %2126 = vmatprep.subr.bf16.mxu0 %v2538_v57 }
 0x108   : > { %2166 = vmatpush1.bf16.msra.mxu1 %v2657_v56 }
 0x109   : > { %2167 = vmatprep.subr.bf16.mxu1 %v2666_v58  ;;  %v302_v58 = vld [vmem:[%s3241_s3 + $0x20] sm:$0xff] }
 0x10a   : > { %2127 = vmatpush1.bf16.msra.mxu0 %v2537_v63 }
 0x10b   : > { %2128 = vmatprep.subr.bf16.mxu0 %v2546_v1 }
 0x10c   : > { %2168 = vmatpush1.bf16.msra.mxu1 %v2665_v0 }
 0x10d   : > { %2169 = vmatprep.subr.bf16.mxu1 %v2674_v2 }
 0x10e   : > { %2129 = vmatpush1.bf16.msra.mxu0 %v2545_v7 }
 0x10f   : > { %2130 = vmatprep.subr.bf16.mxu0 %v2554_v9 }
 0x110   : > { %2170 = vmatpush1.bf16.msra.mxu1 %v2673_v8  ;;  %v304_v8 = vld [vmem:[%s3241_s3 + $0x30] sm:$0xff] }
 0x111   : > { %2171 = vmatprep.subr.bf16.mxu1 %v2682_v10 }
 0x112   : > { %2131 = vmatpush1.bf16.msra.mxu0 %v2553_v15 }
 0x113   : > { %2132 = vmatprep.subr.bf16.mxu0 %v2562_v18 }
 0x114   : > { %2172 = vmatpush1.bf16.msra.mxu1 %v2681_v16 }
 0x115   : > { %2173 = vmatprep.subr.bf16.mxu1 %v2690_v19 }
 0x116   : > { %2133 = vmatpush1.bf16.msra.mxu0 %v2561_v25 }
 0x117   : > { %2134 = vmatprep.subr.bf16.mxu0 %v2570_v26  ;;  %v2218_v26 = vsub.s32 (!%p2699_p7), 0, %v2217_v24 }
 0x118   : > { %2174 = vmatpush1.bf16.msra.mxu1 %v2689_v54  ;;  %v2214_v54 = vld [vmem:[%s3240_s2] sm:$0xff] (!%p2699_p7) }
 0x119   : > { %2175 = vmatprep.subr.bf16.mxu1 %v2698_v27 }
 0x11a   : > { %2135 = vmatpush1.bf16.msra.mxu0 %v2569_v55  ;;  %v2222_v55 = vsub.s32 (!%p2699_p7), 1, %v2217_v24 }
 0x11c   : > { %2176 = vmatpush1.bf16.msra.mxu1 %v2697_v28 }
 0x11d   : > { %2137 = vmatmul.mubr.bf16.vlgmr.msra.gmra.mrb[12].mxu0 %v2923_v17 }
 0x11f   : > { %2178 = vmatmul.mubr.bf16.vlgmr.msra.gmra.mrb[12].mxu1 %v2929_v20 }
 0x130   : > { %v1892_v29 = vpop.f32.mrb[0].mxu0 }
 0x131   : > { %v1894_v32 = vpop.f32.mrb[1].mxu0 }
 0x132   : > { %v1933_v31 = vpop.f32.mrb[0].mxu1  ;;  %v1896_v36 = vpop.f32.mrb[2].mxu0 }
 0x133   : > { %v1934_v33 = vadd.f32 %v1933_v31, %v1892_v29  ;;  %v1935_v35 = vpop.f32.mrb[1].mxu1  ;;  %v1897_v39 = vpop.f32.mrb[3].mxu0  ;;  %v2226_v29 = vsub.s32 (!%p2699_p7), 2, %v2217_v24  ;;  %v2246_v36 = vsub.s32 (!%p2699_p7), 7, %v2217_v24 }
 0x134   : > { %v1936_v37 = vadd.f32 %v1935_v35, %v1894_v32  ;;  %v1937_v38 = vpop.f32.mrb[2].mxu1  ;;  %v2242_v35 = vsub.s32 (!%p2699_p7), 6, %v2217_v24 }
 0x135   : > { %v2186_v17 = vadd.f32 %v1934_v33, %v298_v30  ;;  %v1938_v40 = vpop.f32.mrb[3].mxu1  ;;  %v2230_v30 = vsub.s32 (!%p2699_p7), 3, %v2217_v24  ;;  %v2234_v33 = vsub.s32 (!%p2699_p7), 4, %v2217_v24  ;;  %v2223_v38 = vrot.slane (!%p2699_p7), %v2214_v54, %v2222_v55 }
 0x136   : > { %v2187_v20 = vadd.f32 %v1936_v37, %v299_v34  ;;  %v2238_v34 = vsub.s32 (!%p2699_p7), 5, %v2217_v24  ;;  %v2219_v37 = vrot.slane (!%p2699_p7), %v2214_v54, %v2218_v26  ;;  %v2227_v39 = vrot.slane (!%p2699_p7), %v2214_v54, %v2226_v29 }
 0x137   : > { %2194 = vst [vmem:[%s3241_s3] sm:$0xff] %v2186_v17  ;;  %v2231_v17 = vrot.slane (!%p2699_p7), %v2214_v54, %v2230_v30 }
 0x138   : > { %2195 = vst [vmem:[%s3241_s3 + $0x8] sm:$0xff] %v2187_v20 }
 0x13e   : > { %v2206_v25 = vld [vmem:[%s3241_s3] sm:$0xff] (!%p2699_p7) }
 0x13f   : > { %v2207_v27 = vld [vmem:[%s3241_s3 + $0x8] sm:$0xff] (!%p2699_p7) }
 0x170   : > { %v1974_v41 = vpop.f32.mrb[4].mxu0 }
 0x171   : > { %v1976_v44 = vpop.f32.mrb[5].mxu0 }
 0x172   : > { %v2015_v43 = vpop.f32.mrb[4].mxu1  ;;  %v1978_v48 = vpop.f32.mrb[6].mxu0 }
 0x173   : > { %v2016_v45 = vadd.f32 %v2015_v43, %v1974_v41  ;;  %v2017_v47 = vpop.f32.mrb[5].mxu1  ;;  %v1979_v51 = vpop.f32.mrb[7].mxu0  ;;  %v2239_v43 = vrot.slane (!%p2699_p7), %v2214_v54, %v2238_v34 }
 0x174   : > { %v2018_v49 = vadd.f32 %v2017_v47, %v1976_v44  ;;  %v2019_v50 = vpop.f32.mrb[6].mxu1  ;;  %v2243_v44 = vrot.slane (!%p2699_p7), %v2214_v54, %v2242_v35  ;;  %v2257_v47 = vadd.f32 (!%p2699_p7), %v2223_v38, %v2207_v27 }
 0x175   : > { %v2188_v52 = vadd.f32 %v2016_v45, %v300_v42  ;;  %v2020_v53 = vpop.f32.mrb[7].mxu1  ;;  %v2235_v42 = vrot.slane (!%p2699_p7), %v2214_v54, %v2234_v33  ;;  %v2247_v45 = vrot.slane (!%p2699_p7), %v2214_v54, %v2246_v36 }
 0x176   : > { %v2189_v56 = vadd.f32 %v2018_v49, %v301_v46  ;;  %v2256_v46 = vadd.f32 (!%p2699_p7), %v2219_v37, %v2206_v25  ;;  %vm2265_vm1 = vcmp.ge.f32.partialorder (!%p2699_p7), %v2257_v47, 0.0 }
 0x177   : > { %2196 = vst [vmem:[%s3241_s3 + $0x10] sm:$0xff] %v2188_v52 }
 0x178   : > { %2197 = vst [vmem:[%s3241_s3 + $0x18] sm:$0xff] %v2189_v56  ;;  %vm2264_vm0 = vcmp.ge.f32.partialorder (!%p2699_p7), %v2256_v46, 0.0  ;;  %v2272_v56 = vmul.f32 (!%p2699_p7), 0.1, %v2256_v46 }
 0x17e   : > { %v2208_v28 = vld [vmem:[%s3241_s3 + $0x10] sm:$0xff] (!%p2699_p7) }
 0x17f   : > { %v2209_v31 = vld [vmem:[%s3241_s3 + $0x18] sm:$0xff] (!%p2699_p7)  ;;  %v2258_v48 = vadd.f32 (!%p2699_p7), %v2227_v39, %v2208_v28 }
 0x180   : > { %v2259_v49 = vadd.f32 (!%p2699_p7), %v2231_v17, %v2209_v31 }
 0x181   : > { %vm2266_vm2 = vcmp.ge.f32.partialorder (!%p2699_p7), %v2258_v48, 0.0 }
 0x182   : > { %vm2267_vm3 = vcmp.ge.f32.partialorder (!%p2699_p7), %v2259_v49, 0.0 }
 0x1b0   : > { %v2056_v57 = vpop.f32.mrb[8].mxu0 }
 0x1b1   : > { %v2058_v59 = vpop.f32.mrb[9].mxu0 }
 0x1b2   : > { %v2097_v61 = vpop.f32.mrb[8].mxu1  ;;  %v2060_v0 = vpop.f32.mrb[10].mxu0 }
 0x1b3   : > { %v2098_v62 = vadd.f32 %v2097_v61, %v2056_v57  ;;  %v2099_v63 = vpop.f32.mrb[9].mxu1  ;;  %v2061_v3 = vpop.f32.mrb[11].mxu0  ;;  %v2273_v57 = vmul.f32 (!%p2699_p7), 0.1, %v2257_v47  ;;  %v2275_v61 = vmul.f32 (!%p2699_p7), 0.1, %v2259_v49 }
 0x1b4   : > { %v2100_v1 = vadd.f32 %v2099_v63, %v2058_v59  ;;  %v2101_v2 = vpop.f32.mrb[10].mxu1  ;;  %v2280_v59 = vsel (!%p2699_p7), %vm2264_vm0, %v2256_v46, %v2272_v56 }
 0x1b5   : > { %v2190_v4 = vadd.f32 %v2098_v62, %v302_v58  ;;  %v2102_v5 = vpop.f32.mrb[11].mxu1  ;;  %v2274_v58 = vmul.f32 (!%p2699_p7), 0.1, %v2258_v48  ;;  %v2281_v62 = vsel (!%p2699_p7), %vm2265_vm1, %v2257_v47, %v2273_v57  ;;  %2288 = vst [vmem:[%s3241_s3] sm:$0xff] (!%p2699_p7), %v2280_v59  ;;  %v2283_v0 = vsel (!%p2699_p7), %vm2267_vm3, %v2259_v49, %v2275_v61 }
 0x1b6   : > { %v2191_v6 = vadd.f32 %v2100_v1, %v303_v60  ;;  %2289 = vst [vmem:[%s3241_s3 + $0x8] sm:$0xff] (!%p2699_p7), %v2281_v62  ;;  %2291 = vst [vmem:[%s3241_s3 + $0x18] sm:$0xff] (!%p2699_p7), %v2283_v0 }
 0x1b7   : > { %2198 = vst [vmem:[%s3241_s3 + $0x20] sm:$0xff] %v2190_v4  ;;  %v2282_v63 = vsel (!%p2699_p7), %vm2266_vm2, %v2258_v48, %v2274_v58 }
 0x1b8   : > { %2199 = vst [vmem:[%s3241_s3 + $0x28] sm:$0xff] %v2191_v6  ;;  %2290 = vst [vmem:[%s3241_s3 + $0x10] sm:$0xff] (!%p2699_p7), %v2282_v63 }
 0x1be   : > { %v2210_v32 = vld [vmem:[%s3241_s3 + $0x20] sm:$0xff] (!%p2699_p7) }
 0x1bf   : > { %v2211_v40 = vld [vmem:[%s3241_s3 + $0x28] sm:$0xff] (!%p2699_p7)  ;;  %v2260_v50 = vadd.f32 (!%p2699_p7), %v2235_v42, %v2210_v32 }
 0x1c0   : > { %v2261_v51 = vadd.f32 (!%p2699_p7), %v2239_v43, %v2211_v40 }
 0x1c1   : > { %vm2268_vm4 = vcmp.ge.f32.partialorder (!%p2699_p7), %v2260_v50, 0.0  ;;  %v2276_v60 = vmul.f32 (!%p2699_p7), 0.1, %v2260_v50 }
 0x1c2   : > { %vm2269_vm5 = vcmp.ge.f32.partialorder (!%p2699_p7), %v2261_v51, 0.0  ;;  %v2277_v1 = vmul.f32 (!%p2699_p7), 0.1, %v2261_v51 }
 0x1c3   : > { %v2284_v2 = vsel (!%p2699_p7), %vm2268_vm4, %v2260_v50, %v2276_v60 }
 0x1c4   : > { %2292 = vst [vmem:[%s3241_s3 + $0x20] sm:$0xff] (!%p2699_p7), %v2284_v2  ;;  %v2285_v4 = vsel (!%p2699_p7), %vm2269_vm5, %v2261_v51, %v2277_v1 }
 0x1c5   : > { %2293 = vst [vmem:[%s3241_s3 + $0x28] sm:$0xff] (!%p2699_p7), %v2285_v4 }
 0x1f0   : > { %v2138_v7 = vpop.f32.mrb[12].mxu0 }
 0x1f1   : > { %v2140_v10 = vpop.f32.mrb[13].mxu0 }
 0x1f2   : > { %v2179_v9 = vpop.f32.mrb[12].mxu1  ;;  %v2142_v14 = vpop.f32.mrb[14].mxu0  ;;  %2205 = sbr.rel (%p2699_p7) target bundleno = 518 (0x206), region = 40 }
 0x1f3   : > { %v2180_v11 = vadd.f32 %v2179_v9, %v2138_v7  ;;  %v2181_v13 = vpop.f32.mrb[13].mxu1  ;;  %v2143_v18 = vpop.f32.mrb[15].mxu0 }
 0x1f4   : > { %v2182_v15 = vadd.f32 %v2181_v13, %v2140_v10  ;;  %v2183_v16 = vpop.f32.mrb[14].mxu1 }
 0x1f5   : > { %v2192_v19 = vadd.f32 %v2180_v11, %v304_v8  ;;  %v2184_v21 = vpop.f32.mrb[15].mxu1 }
 0x1f6   : > { %v2193_v22 = vadd.f32 %v2182_v15, %v305_v12 }
 0x1f7   : > { %2200 = vst [vmem:[%s3241_s3 + $0x30] sm:$0xff] %v2192_v19 }
 0x1f8   : > { %2201 = vst [vmem:[%s3241_s3 + $0x38] sm:$0xff] %v2193_v22 }
 0x1fe   : > { %v2212_v20 = vld [vmem:[%s3241_s3 + $0x30] sm:$0xff] }
 0x1ff   : > { %v2213_v41 = vld [vmem:[%s3241_s3 + $0x38] sm:$0xff]  ;;  %v2262_v52 = vadd.f32 %v2243_v44, %v2212_v20 }
 0x200   : > { %v2263_v53 = vadd.f32 %v2247_v45, %v2213_v41 }
 0x201   : > { %vm2270_vm6 = vcmp.ge.f32.partialorder %v2262_v52, 0.0  ;;  %v2278_v3 = vmul.f32 0.1, %v2262_v52 }
 0x202   : > { %vm2271_vm7 = vcmp.ge.f32.partialorder %v2263_v53, 0.0  ;;  %v2279_v5 = vmul.f32 0.1, %v2263_v53 }
 0x203   : > { %v2286_v6 = vsel %vm2270_vm6, %v2262_v52, %v2278_v3 }
 0x204   : > { %2294 = vst [vmem:[%s3241_s3 + $0x30] sm:$0xff] %v2286_v6  ;;  %v2287_v7 = vsel %vm2271_vm7, %v2263_v53, %v2279_v5 }
 0x205   : > { %2295 = vst [vmem:[%s3241_s3 + $0x38] sm:$0xff] %v2287_v7 }
 0x206 PF: > { %s13_s14 = sadd.s32 1, %s2755_s14   ;;  %s3242_s12 = smov %s2751_s13 }
 0x207   : > { %p10_p8 = scmp.ge.s32.totalorder %s13_s14, 12   ;;  %s3243_s13 = smov %s3245_s15 }
 0x209   :  { %12 = sbr.rel (!%p10_p8) target bundleno = 2 (0x2), region = 76 }

// kernel: _lambda_.15
= control target key start
LH: loop header
LB: loop body
LE: loop exit
PB: predicated region body
PF: predicated region fallthrough
CT: control target
= control target key end

     0   :  { %s966_s12 = smov 0   ;;  %s968_s13 = smov 0   ;;  %s1061_s0 = inlined_call_operand.vmem [shape: bf16[1,8,3072], index: 0, kind: input, shape index: {}]   ;;  %s1062_s1 = inlined_call_operand.vmem [shape: bf16[1,3072,128], index: 1, kind: input, shape index: {}]   ;;  %s1063_s2 = inlined_call_operand.vmem [shape: f32[1,1,128], index: 2, kind: input, shape index: {}]   ;;  %s1064_s3 = inlined_call_operand.vmem [shape: f32[1,8,128], index: 3, kind: output, shape index: {}]  }
   0x1   :  { %s970_s14 = smov 0  }
   0x2 LB: > { %s25_s15 = sadd.s32 1, %s939_s13  ;;  %p769_p0 = scmp.ge.s32.totalorder %s943_s14, 1  ;;  %s943_s14 = sphi %s970_s14, %s13_s14   ;;  %s939_s13 = sphi %s968_s13, %s1066_s13   ;;  %s935_s12 = sphi %s966_s12, %s1065_s12  }
   0x3   : > { %p26_p1 = scmp.ge.s32.totalorder %s25_s15, 6  ;;  %p196_p2 = scmp.lt.s32.totalorder %s943_s14, 7 }
   0x5   : > { %s1068_s15 = smov (%p26_p1, %s25_s15), 0  ;;  %p197_p3 = pnand %p769_p0, %p196_p2 }
   0x6   : > { %s770_s16 = sshll.u32 (!%p197_p3), %s935_s12, 2  ;;  %s772_s17 = sshll.u32 (!%p197_p3), %s935_s12, 6 }
   0x7   : > { %200 = sbr.rel (%p197_p3) target bundleno = 289 (0x121), region = 32  ;;  %p247_p4 = scmp.lt.s32.totalorder (!%p197_p3), %s770_s16, 23 }
   0x8   : > { %p259_p5 = scmp.lt.s32.totalorder (!%p197_p3), %s772_s17, 383  ;;  %p774_p6 = scmp.ne.s32.totalorder (!%p197_p3), %s935_s12, 0 }
   0xe   : > { %s1070_s16 = smov (!%p247_p4, %s770_s16), 23  ;;  %s1072_s17 = smov (!%p259_p5, %s772_s17), 383 }
   0xf   : > { %s771_s18 = sshll.u32 %s1070_s16, 2  ;;  %s773_s22 = sshll.u32 %s1072_s17, 2  ;;  %v945_v0 = vmov (!%p774_p6), 0.0  }
  0x10   : > { %s991_s21 = scalar_lea.vmem %s1061_s0, %s771_s18  ;;  %s996_s25 = scalar_lea.vmem %s1062_s1, %s773_s22  ;;  %281 = vst [vmem:[%s1064_s3] sm:$0xff] (!%p774_p6), %v945_v0 }
  0x11   : > { %280 = sbr.rel (%p774_p6) target bundleno = 24 (0x18), region = 36 }
  0x18 PF: > { %v885_v1 = vld [vmem:[%s996_s25 + $0x40] sm:$0xff]   ;;  %v889_v5 = vld [vmem:[%s996_s25 + $0x48] sm:$0xff]   ;;  %v893_v9 = vld [vmem:[%s996_s25 + $0x50] sm:$0xff]   ;;  %p811_p7 = scmp.ne.s32.totalorder %s935_s12, 5 }
  0x19   : > { %v886_v2 = vld [vmem:[%s996_s25 + $0xc0] sm:$0xff]   ;;  %816 = vmatprep.subr.bf16.mxu0 %v885_v1  ;;  %v890_v6 = vld [vmem:[%s996_s25 + $0xc8] sm:$0xff]   ;;  %v894_v10 = vld [vmem:[%s996_s25 + $0xd0] sm:$0xff]  }
  0x1a   : > { %v887_v3 = vld [vmem:[%s996_s25] sm:$0xff]   ;;  %838 = vmatprep.subr.bf16.mxu1 %v886_v2  ;;  %v891_v7 = vld [vmem:[%s996_s25 + $0x8] sm:$0xff]   ;;  %v895_v11 = vld [vmem:[%s996_s25 + $0x10] sm:$0xff]  }
  0x1b   : > { %v888_v4 = vld [vmem:[%s996_s25 + $0x80] sm:$0xff]   ;;  %817 = vmatpush3.bf16.msra.mxu0 %v887_v3  ;;  %v892_v8 = vld [vmem:[%s996_s25 + $0x88] sm:$0xff]   ;;  %v896_v12 = vld [vmem:[%s996_s25 + $0x90] sm:$0xff]  }
  0x1c   : > { %839 = vmatpush3.bf16.msra.mxu1 %v888_v4  ;;  %818 = vmatprep.subr.bf16.mxu0 %v889_v5  ;;  %v897_v13 = vld [vmem:[%s996_s25 + $0x58] sm:$0xff]   ;;  %v901_v17 = vld [vmem:[%s996_s25 + $0x60] sm:$0xff]   ;;  %v905_v21 = vld [vmem:[%s996_s25 + $0x68] sm:$0xff]  }
  0x1d   : > { %840 = vmatprep.subr.bf16.mxu1 %v890_v6  ;;  %v898_v14 = vld [vmem:[%s996_s25 + $0xd8] sm:$0xff]   ;;  %v902_v18 = vld [vmem:[%s996_s25 + $0xe0] sm:$0xff]   ;;  %v906_v22 = vld [vmem:[%s996_s25 + $0xe8] sm:$0xff]  }
  0x1e   : > { %v899_v15 = vld [vmem:[%s996_s25 + $0x18] sm:$0xff]   ;;  %v903_v19 = vld [vmem:[%s996_s25 + $0x20] sm:$0xff]   ;;  %v907_v23 = vld [vmem:[%s996_s25 + $0x28] sm:$0xff]  }
  0x1f   : > { %819 = vmatpush3.bf16.msra.mxu0 %v891_v7  ;;  %v900_v16 = vld [vmem:[%s996_s25 + $0x98] sm:$0xff]   ;;  %v904_v20 = vld [vmem:[%s996_s25 + $0xa0] sm:$0xff]   ;;  %v908_v24 = vld [vmem:[%s996_s25 + $0xa8] sm:$0xff]  }
  0x20   : > { %841 = vmatpush3.bf16.msra.mxu1 %v892_v8  ;;  %820 = vmatprep.subr.bf16.mxu0 %v893_v9  ;;  %v909_v25 = vld [vmem:[%s996_s25 + $0x70] sm:$0xff]   ;;  %v913_v29 = vld [vmem:[%s996_s25 + $0x78] sm:$0xff]   ;;  %v283_v33 = vld [vmem:[%s991_s21] sm:$0xff] }
  0x21   : > { %842 = vmatprep.subr.bf16.mxu1 %v894_v10  ;;  %v910_v26 = vld [vmem:[%s996_s25 + $0xf0] sm:$0xff]   ;;  %v914_v30 = vld [vmem:[%s996_s25 + $0xf8] sm:$0xff]   ;;  %v284_v34 = vld [vmem:[%s991_s21 + $0x8] sm:$0xff]  ;;  %v775_v35 = vcombine.low %v283_v33, %v283_v33  ;;  %v776_v36 = vcombine.high %v283_v33, %v283_v33 }
  0x22   : > { %v911_v27 = vld [vmem:[%s996_s25 + $0x30] sm:$0xff]   ;;  %v915_v31 = vld [vmem:[%s996_s25 + $0x38] sm:$0xff]   ;;  %v777_v37 = vcombine.low %v284_v34, %v284_v34  ;;  %v778_v38 = vcombine.high %v284_v34, %v284_v34  ;;  %v282_v47 = vld [vmem:[%s1064_s3] sm:$0xff] }
  0x23   : > { %821 = vmatpush3.bf16.msra.mxu0 %v895_v11  ;;  %v912_v28 = vld [vmem:[%s996_s25 + $0xb0] sm:$0xff]   ;;  %v916_v32 = vld [vmem:[%s996_s25 + $0xb8] sm:$0xff]   ;;  %587 = vmatprep.mubr.bf16.mxu0 %v776_v36  ;;  %v812_v53 = vld [vmem:[%s1063_s2] ss:$0 sm:$0xff] (!%p811_p7) }
  0x24   : > { %843 = vmatpush3.bf16.msra.mxu1 %v896_v12  ;;  %822 = vmatprep.subr.bf16.mxu0 %v897_v13 }
  0x25   : > { %844 = vmatprep.subr.bf16.mxu1 %v898_v14  ;;  %627 = vmatprep.mubr.bf16.mxu1 %v778_v38 }
  0x27   : > { %823 = vmatpush3.bf16.msra.mxu0 %v899_v15 }
  0x28   : > { %845 = vmatpush3.bf16.msra.mxu1 %v900_v16  ;;  %824 = vmatprep.subr.bf16.mxu0 %v901_v17 }
  0x29   : > { %846 = vmatprep.subr.bf16.mxu1 %v902_v18 }
  0x2b   : > { %825 = vmatpush3.bf16.msra.mxu0 %v903_v19 }
  0x2c   : > { %847 = vmatpush3.bf16.msra.mxu1 %v904_v20  ;;  %826 = vmatprep.subr.bf16.mxu0 %v905_v21 }
  0x2d   : > { %848 = vmatprep.subr.bf16.mxu1 %v906_v22 }
  0x2f   : > { %827 = vmatpush3.bf16.msra.mxu0 %v907_v23 }
  0x30   : > { %849 = vmatpush3.bf16.msra.mxu1 %v908_v24  ;;  %828 = vmatprep.subr.bf16.mxu0 %v909_v25 }
  0x31   : > { %850 = vmatprep.subr.bf16.mxu1 %v910_v26 }
  0x33   : > { %829 = vmatpush3.bf16.msra.mxu0 %v911_v27 }
  0x34   : > { %851 = vmatpush3.bf16.msra.mxu1 %v912_v28  ;;  %830 = vmatprep.subr.bf16.mxu0 %v913_v29 }
  0x35   : > { %852 = vmatprep.subr.bf16.mxu1 %v914_v30 }
  0x37   : > { %831 = vmatpush3.bf16.msra.mxu0 %v915_v31 }
  0x38   : > { %853 = vmatpush3.bf16.msra.mxu1 %v916_v32 }
  0x3a   : > { %588 = vmatmul.mubr.bf16.vlgmr.msra.gmra.mrb[0].mxu0 %v775_v35 }
  0x3b   : > { %628 = vmatmul.mubr.bf16.vlgmr.msra.gmra.mrb[0].mxu1 %v777_v37 }
 0x10d   : > { %v832_v39 = vpop.f32.mrb[0].mxu0 }
 0x10e   : > { %v854_v40 = vpop.f32.mrb[0].mxu1  ;;  %v833_v41 = vpop.f32.mrb[1].mxu0 }
 0x10f   : > { %v855_v42 = vpop.f32.mrb[1].mxu1  ;;  %v834_v43 = vadd.f32 %v833_v41, %v832_v39  ;;  %v835_v45 = vpop.f32.mrb[2].mxu0 }
 0x110   : > { %v856_v44 = vadd.f32 %v855_v42, %v854_v40  ;;  %v857_v46 = vpop.f32.mrb[2].mxu1  ;;  %v836_v48 = vpop.f32.mrb[3].mxu0  ;;  %640 = sbr.rel (%p811_p7) target bundleno = 289 (0x121), region = 40 }
 0x111   : > { %v858_v49 = vpop.f32.mrb[3].mxu1 }
 0x112   : > { %v630_v50 = vadd.f32 %v856_v44, %v834_v43 }
 0x114   : > { %v635_v51 = vadd.f32 %v630_v50, %v282_v47 }
 0x116   : > { %636 = vst [vmem:[%s1064_s3] sm:$0xff] %v635_v51 }
 0x11d   : > { %v641_v52 = vld [vmem:[%s1064_s3] sm:$0xff] }
 0x11e   : > { %v649_v54 = vadd.f32 %v812_v53, %v641_v52 }
 0x120   : > { %650 = vst [vmem:[%s1064_s3] sm:$0xff] %v649_v54 }
 0x121 PF: > { %s13_s14 = sadd.s32 1, %s943_s14   ;;  %s1065_s12 = smov %s939_s13 }
 0x122   : > { %p10_p8 = scmp.ge.s32.totalorder %s13_s14, 8   ;;  %s1066_s13 = smov %s1068_s15 }
 0x124   :  { %12 = sbr.rel (!%p10_p8) target bundleno = 2 (0x2), region = 76 }

</bundles_post_ra>
